<compile_context>
chip_gen: v5e
topology: v5e:2x2
jax: 0.10.0
libtpu: 0.0.40
codegen_flags: <defaults>
</compile_context>

<pallas_src>
import functools

import numpy as np

import jax
import jax.numpy as jnp
from jax.experimental import pallas as pl
from jax.experimental.pallas import tpu as pltpu


# ----------------------------------------------------------------------------
# Fused kernel: attention pooling -> cat_0 merge -> key regression -> kNN extract
# One batch-block (PB graphs = PB/2 (g, g+B/2) pairs), fully VMEM-resident.
# ----------------------------------------------------------------------------
def _key_extraction_kernel(x_ref, pos_ref, w_big_ref, w_bias_ref,
                           keyfeat_ref, kp_ref, *, knn_k, half, n_pool, n_key):
    x3 = x_ref[...].astype(jnp.float32)                  # (B, N, F)
    pos3 = pos_ref[...].astype(jnp.float32)              # (B, N, 3)
    B, N, F = x3.shape
    P, K = n_pool, n_key
    Fo = w_big_ref.shape[1] - P - K
    x2 = x3.reshape(B * N, F)

    # ---- single fused x-side MXU matmul: [pool logits | regress node part | extracted feats]
    y = jnp.dot(x2, w_big_ref[...], preferred_element_type=jnp.float32)    # (B*N, P+K+Fo)
    logit3 = y[:, :P].reshape(B, N, P)
    node_logit = y[:, P:P + K].reshape(B, N, K)
    # key_extract is a linear map -> apply it per node once; mean over the kNN set and a
    # linear map commute, so the gather below can average these directly.
    xe3 = y[:, P + K:].reshape(B, N, Fo)

    # ---- 1) attention global pooling (dgl.softmax_nodes + dgl.sum_nodes), one fused reduce
    l0 = logit3[:, :, 0:1]                                                 # (B, N, 1)
    e0 = jnp.exp(l0 - jnp.max(l0, axis=1, keepdims=True))
    prob = e0 / jnp.sum(e0, axis=1, keepdims=True)                         # exact softmax
    cat_xg = jnp.concatenate([x3, logit3[:, :, 1:]], axis=-1)              # (B, N, F+P-1)
    pg = jnp.sum(prob * cat_xg, axis=1)                                    # (B, F+P-1) = [pooled | global_deg0]

    # ---- 'cat_0' cross-pair merge -> per-graph bias of the regression logits.
    # feature_new @ W_regress == x @ W_node + bias(graph); the per-graph half is ONE tiny
    # matmul, and the partner term is a cyclic half-shift along the (block-local) batch
    # (replaces the old (B,B) permutation matmul + iota/mod/compare construction).
    b2 = jnp.dot(pg, w_bias_ref[...], preferred_element_type=jnp.float32)  # (B, 2K)
    b_self = b2[:, :K]
    b_part = b2[:, K:]
    bias = b_self + jnp.concatenate([b_part[half:], b_part[:half]], axis=0)  # (B, K)

    # ---- 2) key_regress softmax over nodes, with N on the lane axis ----
    rlogit = node_logit + bias[:, None, :]                                 # (B, N, K)
    rlt = jnp.swapaxes(rlogit, 1, 2)                                       # (B, K, N)
    re_ = jnp.exp(rlt - jnp.max(rlt, axis=-1, keepdims=True))
    rprob = re_ / jnp.sum(re_, axis=-1, keepdims=True)                     # (B, K, N)

    # ---- 3) keypoints + kNN selection + extraction, batched over ALL K keypoints ----
    kp = jnp.einsum('bkn,bnd->bkd', rprob, pos3,
                    preferred_element_type=jnp.float32)                    # (B, K, 3)
    pos_sq = jnp.sum(pos3 * pos3, axis=-1)                                 # (B, N)
    # squared distance minus the per-(b,k) constant ||kp||^2 (argmin-invariant)
    d = pos_sq[:, None, :] - 2.0 * jnp.einsum('bkd,bnd->bkn', kp, pos3,
                                              preferred_element_type=jnp.float32)   # (B, K, N)
    n_iota = jax.lax.broadcasted_iota(jnp.int32, (B, K, N), 2)

    def body(_, sel):
        dm = jnp.where(sel > 0.5, jnp.float32(1e30), d)
        dmin = jnp.min(dm, axis=-1, keepdims=True)
        cand = jnp.where(dm <= dmin, n_iota, jnp.int32(N))                 # smallest-index tie-break
        idx = jnp.min(cand, axis=-1, keepdims=True)
        return sel + (n_iota == idx).astype(jnp.float32)

    # one serial masked-argmin chain for ALL B*K keypoint rows (was K separate chains);
    # the feature gather is a single MXU einsum after the loop.
    sel = jax.lax.fori_loop(0, knn_k, body,
                            jnp.zeros((B, K, N), jnp.float32), unroll=True)
    feat = jnp.einsum('bkn,bnf->bkf', sel, xe3,
                      preferred_element_type=jnp.float32) * jnp.float32(1.0 / knn_k)

    # ---- single full-block stores ----
    keyfeat_ref[...] = feat.astype(keyfeat_ref.dtype)                      # (B, K, Fo)
    kp_ref[...] = kp.astype(kp_ref.dtype)                                  # (B, K, 3)


def _fused_forward(x, pos, w_big, w_bias, n_pool, n_key, knn_k, pair_block=8):
    B, N, F = x.shape
    P, K = n_pool, n_key
    Fo = w_big.shape[1] - P - K
    half = B // 2

    # Batch tiling (v7x dual-TensorCore): each grid block holds PB graphs = PB/2 (g, g+B/2)
    # pairs so the 'cat_0' merge stays block-local.  PB must be a multiple of 8 (or the
    # whole batch) to keep (8,128)-aligned blocks.
    PB = pair_block
    if PB % 8 != 0 or B % PB != 0 or PB % 2 != 0:
        PB = B
    nb = B // PB
    hb = PB // 2

    # reorder graphs so block i holds graphs [i*hb:(i+1)*hb] and their cat_0 partners
    perm_np = np.concatenate(
        [np.concatenate([np.arange(i * hb, (i + 1) * hb),
                         half + np.arange(i * hb, (i + 1) * hb)]) for i in range(nb)])
    if nb > 1:
        perm = jnp.asarray(perm_np, jnp.int32)
        inv_perm = jnp.asarray(np.argsort(perm_np), jnp.int32)
        xp = jnp.take(x, perm, axis=0)
        posp = jnp.take(pos, perm, axis=0)
    else:
        xp, posp, inv_perm = x, pos, None

    kernel = functools.partial(_key_extraction_kernel, knn_k=knn_k, half=hb,
                               n_pool=P, n_key=K)

    # Everything for a block stays in VMEM; the default VMEM limit is ample at these sizes.
    # TODO(synk): for large N/C, tile N with a pl.when-initialised accumulator and set
    #             vmem_limit_bytes so a block fits v7x's 64 MiB VMEM (vs 128 MiB v5e/v6e).
    kf, kp = pl.pallas_call(
        kernel,
        out_shape=(jax.ShapeDtypeStruct((B, K, Fo), jnp.float32),
                   jax.ShapeDtypeStruct((B, K, 3), jnp.float32)),
        grid_spec=pltpu.PrefetchScalarGridSpec(
            num_scalar_prefetch=0, grid=(nb,),
            in_specs=[pl.BlockSpec((PB, N, F), lambda i: (i, 0, 0)),
                      pl.BlockSpec((PB, N, 3), lambda i: (i, 0, 0)),
                      pl.BlockSpec((F, P + K + Fo), lambda i: (0, 0)),
                      pl.BlockSpec((F + P - 1, 2 * K), lambda i: (0, 0))],
            out_specs=[pl.BlockSpec((PB, K, Fo), lambda i: (i, 0, 0)),
                       pl.BlockSpec((PB, K, 3), lambda i: (i, 0, 0))]),
        compiler_params=pltpu.CompilerParams(dimension_semantics=("parallel",)),
    )(xp, posp, w_big, w_bias)

    if nb > 1:   # undo the pair-blocking permutation
        kf = jnp.take(kf, inv_perm, axis=0)
        kp = jnp.take(kp, inv_perm, axis=0)
    return kf, kp


# ----------------------------------------------------------------------------
# Static decomposition of W_regress into per-node / per-graph pieces.
# feature_new ('cat_0') column layout, for a fused fiber with degrees {0,1}:
#   [0, C)                    feat deg-0 of each channel                 (per node)
#   [C, C+2(P-1))             [global_deg0_self | global_deg0_partner]   (per graph)
#   [C+2(P-1), C+2(P-1)+2C)   [pooled deg-0 self | pooled deg-0 partner] (per graph)
#   [off0, off0+3C)           feat deg-1 (channel-major, xyz-minor)      (per node)
#   [off1, off1+3C)           pooled deg-1 (channel-major, xyz-minor)    (per graph)
# ----------------------------------------------------------------------------
def _decompose_regress_weight(w_regress, C, D, P):
    off0 = 3 * C + 2 * (P - 1)
    off1 = off0 + 3 * C
    c_of_f = np.repeat(np.arange(C), D)          # flat feature column -> channel
    d_of_f = np.tile(np.arange(D), C)            # flat feature column -> fiber dim
    node_rows = np.where(d_of_f == 0, c_of_f, off0 + 3 * c_of_f + (d_of_f - 1))
    gself_rows = np.where(d_of_f == 0, C + 2 * (P - 1) + c_of_f,
                          off1 + 3 * c_of_f + (d_of_f - 1))
    gpart_rows = np.where(d_of_f == 0, C + 2 * (P - 1) + C + c_of_f, 0)
    deg0_mask = jnp.asarray((d_of_f == 0), dtype=w_regress.dtype)[:, None]

    w_node = w_regress[node_rows]                        # (F, K) acts on x
    w_gself = w_regress[gself_rows]                      # (F, K) acts on own pooled
    w_gpart = w_regress[gpart_rows] * deg0_mask          # (F, K) acts on partner pooled
    w_extra_self = w_regress[C:C + (P - 1)]              # (P-1, K) acts on own global_deg0
    w_extra_part = w_regress[C + (P - 1):C + 2 * (P - 1)]
    return w_node, w_extra_self, w_extra_part, w_gself, w_gpart


# ----------------------------------------------------------------------------
# The module
# ----------------------------------------------------------------------------
class KeyExtractionLayerPallas:
    def __init__(self, w_pool, w_regress, w_extract,
                 key_mean_num=10, max_deg=1, key_global_merge='cat_0'):
        assert key_global_merge == 'cat_0', "only the implemented branch"
        assert max_deg == 1, "fused fiber with degrees {0, 1}"
        w_pool = jnp.asarray(w_pool, jnp.float32)
        w_regress = jnp.asarray(w_regress, jnp.float32)
        w_extract = jnp.asarray(w_extract, jnp.float32)
        F, P = w_pool.shape
        assert P > 1                                 # mirrors the logit-channel assert
        assert F % 4 == 0
        C, D = F // 4, 4
        assert w_regress.shape[0] == 9 * C + 2 * (P - 1)
        assert w_extract.shape == (F, F)

        # decompose + fuse the weights ONCE at construction (no stale-cache hazard)
        w_node, w_es, w_ep, w_gs, w_gp = _decompose_regress_weight(w_regress, C, D, P)
        self.w_big = jnp.concatenate([w_pool, w_node, w_extract], axis=1)   # (F, P+K+Fo)
        self.w_bias = jnp.concatenate(
            [jnp.concatenate([w_gs, w_es], axis=0),        # acts on [pooled | global_deg0]
             jnp.concatenate([w_gp, w_ep], axis=0)], axis=1)                # (F+P-1, 2K)
        self.n_pool = P
        self.n_key = w_regress.shape[1]
        self.C, self.D = C, D
        self.key_mean_num = int(key_mean_num)
        self.max_deg = max_deg

    def __call__(self, feature, pos):
        # feature: [B, N, C, D] fused fiber (D = 1 deg-0 + 3 deg-1 comps); pos: [B, N, 3]
        B, N, C, D = feature.shape
        assert B % 2 == 0 and (C, D) == (self.C, self.D)
        assert self.key_mean_num <= N
        x = feature.reshape(B, N, C * D)
        key_feat, keypoints = _fused_forward(
            x, pos, self.w_big, self.w_bias, self.n_pool, self.n_key, self.key_mean_num)
        K = self.n_key
        # TODO(synk): DGL biparti/homogeneous graph construction, remove_nodes and
        #             set_batch_num_* bookkeeping is host-side graph metadata with no
        #             Pallas equivalent; we return the key features / key points.
        return key_feat.reshape(B, K, C, D), keypoints


# ----------------------------------------------------------------------------
# Pure-JAX reference (mirrors the original forward math), used for validation
# ----------------------------------------------------------------------------
def _build_cat0_features_reference(feat, pooled, global_deg0):
    B, N, C, D = feat.shape
    half = B // 2
    feat00 = feat[..., 0:1]
    feat10 = feat[..., 1:]
    g = global_deg0[:, :, None]
    g1, g2 = g[:half], g[half:]
    extra_paired = jnp.concatenate(
        [jnp.concatenate([g1, g2], axis=1),
         jnp.concatenate([g2, g1], axis=1)], axis=0)
    t1, t2 = pooled[:half], pooled[half:]
    paired0 = jnp.concatenate(
        [jnp.concatenate([t1[:, :, 0:1], t2[:, :, 0:1]], axis=1),
         jnp.concatenate([t2[:, :, 0:1], t1[:, :, 0:1]], axis=1)], axis=0)
    extra_b = jnp.broadcast_to(extra_paired[:, None], (B, N) + extra_paired.shape[1:])
    paired_b = jnp.broadcast_to(paired0[:, None], (B, N) + paired0.shape[1:])
    nonzero_b = jnp.broadcast_to(pooled[:, None, :, 1:], (B, N, C, D - 1))
    new00 = jnp.concatenate([feat00, extra_b, paired_b], axis=2)
    new10 = jnp.concatenate([feat10, nonzero_b], axis=2)
    return jnp.concatenate(
        [new00.reshape(B, N, -1), new10.reshape(B, N, -1)], axis=-1)


def _reference_knn_extract(kp, pos, x, w_ext, knn_k):
    B, K, _ = kp.shape
    N = pos.shape[1]
    hi = jax.lax.Precision.HIGHEST
    d = jnp.sum((kp[:, :, None, :] - pos[:, None, :, :]) ** 2, axis=-1)   # (B, K, N)
    n_iota = jnp.arange(N)[None, None, :]
    sel = jnp.zeros((B, K, N), jnp.float32)
    for _ in range(knn_k):
        dm = jnp.where(sel > 0.5, jnp.float32(1e30), d)
        dmin = jnp.min(dm, axis=-1, keepdims=True)
        cand = jnp.where(dm <= dmin, n_iota, N)
        idx = jnp.min(cand, axis=-1, keepdims=True)
        sel = sel + (n_iota == idx).astype(jnp.float32)
    mean_feat = jnp.einsum('bkn,bnf->bkf', sel, x, precision=hi) / knn_k
    return jnp.einsum('bkf,fo->bko', mean_feat, w_ext, precision=hi)


def _reference_forward(feature, pos, w_pool, w_regress, w_extract, knn_k):
    B, N, C, D = feature.shape
    F = C * D
    hi = jax.lax.Precision.HIGHEST
    x = feature.reshape(B, N, F)
    logit = jnp.einsum('bnf,fp->bnp', x, w_pool, precision=hi)
    prob = jax.nn.softmax(logit[:, :, 0:1], axis=1)
    pooled = jnp.sum(prob * x, axis=1).reshape(B, C, D)
    gdeg0 = jnp.sum(prob * logit[:, :, 1:], axis=1)
    fnew = _build_cat0_features_reference(feature, pooled, gdeg0)
    rlogit = jnp.einsum('bnf,fk->bnk', fnew, w_regress, precision=hi)
    rprob = jax.nn.softmax(rlogit, axis=1)
    kp = jnp.einsum('bnk,bnd->bkd', rprob, pos, precision=hi)
    kfeat = _reference_knn_extract(kp, pos, x, w_extract, knn_k)
    K = kp.shape[1]
    return kfeat.reshape(B, K, C, D), kp


if __name__ == "__main__":
    B, N, C, D = 16, 16, 8, 4     # 16 graphs (8 cat_0 pairs), 16 nodes, 8 channels, fused dim 1+3
    P = 4                         # pool-logit channels (1 logit + 3 global deg-0)
    K = 4                         # number of key points regressed per graph
    KNN = 3                       # key_mean_num

    F = C * D
    Fn = 9 * C + 2 * (P - 1)

    key = jax.random.PRNGKey(0)
    k1, k2, k3, k4, k5 = jax.random.split(key, 5)
    feature = jax.random.normal(k1, (B, N, C, D), jnp.float32)
    pos = jax.random.normal(k2, (B, N, 3), jnp.float32)
    w_pool = 0.1 * jax.random.normal(k3, (F, P), jnp.float32)
    w_regress = 0.1 * jax.random.normal(k4, (Fn, K), jnp.float32)
    w_extract = 0.1 * jax.random.normal(k5, (F, F), jnp.float32)

    layer = KeyExtractionLayerPallas(w_pool, w_regress, w_extract,
                                     key_mean_num=KNN, max_deg=1,
                                     key_global_merge='cat_0')
    key_tensor, keypoints = layer(feature, pos)
    jax.block_until_ready((key_tensor, keypoints))
    assert key_tensor.shape == (B, K, C, D)
    assert keypoints.shape == (B, K, 3)

    # validate against a pure-JAX reference of the original forward math
    ref_key_tensor, ref_kp = _reference_forward(feature, pos, w_pool, w_regress,
                                                w_extract, KNN)
    assert jnp.allclose(keypoints, ref_kp, atol=1e-2, rtol=1e-2), \
        float(jnp.max(jnp.abs(keypoints - ref_kp)))
    # kNN + extraction checked against a reference fed the kernel's own keypoints
    # (the discrete neighbour selection could otherwise flip for near-equidistant nodes).
    hyb = _reference_knn_extract(keypoints, pos, feature.reshape(B, N, F),
                                 w_extract, KNN).reshape(B, K, C, D)
    assert jnp.allclose(key_tensor, hyb, atol=1e-2, rtol=1e-2), \
        float(jnp.max(jnp.abs(key_tensor - hyb)))

    print("KERNEL_OK")
</pallas_src>

<mosaic_0001>
module attributes {stable_mosaic.version = 11 : i64} {
  func.func @_key_extraction_kernel(%arg0: i32, %arg1: memref<8x16x32xf32, #tpu.memory_space<vmem>>, %arg2: memref<8x16x3xf32, #tpu.memory_space<vmem>>, %arg3: memref<32x40xf32, #tpu.memory_space<vmem>>, %arg4: memref<35x8xf32, #tpu.memory_space<vmem>>, %arg5: memref<8x4x32xf32, #tpu.memory_space<vmem>>, %arg6: memref<8x4x3xf32, #tpu.memory_space<vmem>>) attributes {dimension_semantics = [#tpu.dimension_semantics<parallel>], iteration_bounds = array<i64: 2>, scalar_prefetch = 0 : i64, scratch_operands = 0 : i64, tpu.core_type = #tpu.core_type<tc>, window_params = [{transform_indices = @transform_0, window_bounds = array<i64: 8, 16, 32>}, {transform_indices = @transform_1, window_bounds = array<i64: 8, 16, 3>}, {pipeline_mode = #tpu.pipeline_mode<synchronous>, transform_indices = @transform_2, window_bounds = array<i64: 32, 40>}, {pipeline_mode = #tpu.pipeline_mode<synchronous>, transform_indices = @transform_3, window_bounds = array<i64: 35, 8>}, {transform_indices = @transform_4, window_bounds = array<i64: 8, 4, 32>}, {transform_indices = @transform_5, window_bounds = array<i64: 8, 4, 3>}]} {
    %c0 = arith.constant 0 : index
    %c0_0 = arith.constant 0 : index
    %c0_1 = arith.constant 0 : index
    %0 = vector.load %arg1[%c0, %c0_0, %c0_1] : memref<8x16x32xf32, #tpu.memory_space<vmem>>, vector<8x16x32xf32>
    %c0_2 = arith.constant 0 : index
    %c0_3 = arith.constant 0 : index
    %c0_4 = arith.constant 0 : index
    %1 = vector.load %arg2[%c0_2, %c0_3, %c0_4] : memref<8x16x3xf32, #tpu.memory_space<vmem>>, vector<8x16x3xf32>
    %2 = vector.shape_cast %0 : vector<8x16x32xf32> to vector<128x32xf32>
    %c0_5 = arith.constant 0 : index
    %c0_6 = arith.constant 0 : index
    %3 = vector.load %arg3[%c0_5, %c0_6] : memref<32x40xf32, #tpu.memory_space<vmem>>, vector<32x40xf32>
    %cst = arith.constant dense<0.000000e+00> : vector<128x40xf32>
    %4 = tpu.matmul %2, %3, %cst {dimension_numbers = #tpu.dot_dimension_numbers<[1], [0], [0], [1], [0, 0, 1, 1], [], []>} : vector<128x32xf32>, vector<32x40xf32>, vector<128x40xf32> -> vector<128x40xf32>
    %5 = vector.extract_strided_slice %4 {offsets = [0, 0], sizes = [128, 4], strides = [1, 1]} : vector<128x40xf32> to vector<128x4xf32>
    %6 = vector.shape_cast %5 : vector<128x4xf32> to vector<8x16x4xf32>
    %7 = vector.extract_strided_slice %4 {offsets = [0, 4], sizes = [128, 4], strides = [1, 1]} : vector<128x40xf32> to vector<128x4xf32>
    %8 = vector.shape_cast %7 : vector<128x4xf32> to vector<8x16x4xf32>
    %9 = vector.extract_strided_slice %4 {offsets = [0, 8], sizes = [128, 32], strides = [1, 1]} : vector<128x40xf32> to vector<128x32xf32>
    %10 = vector.shape_cast %9 : vector<128x32xf32> to vector<8x16x32xf32>
    %11 = vector.extract_strided_slice %6 {offsets = [0, 0, 0], sizes = [8, 16, 1], strides = [1, 1, 1]} : vector<8x16x4xf32> to vector<8x16x1xf32>
    %cst_7 = arith.constant dense<0xFF800000> : vector<8x1xf32>
    %12 = vector.multi_reduction <maximumf>, %11, %cst_7 [1] : vector<8x16x1xf32> to vector<8x1xf32>
    %13 = vector.shape_cast %12 : vector<8x1xf32> to vector<8x1x1xf32>
    %14 = vector.broadcast %13 : vector<8x1x1xf32> to vector<8x16x1xf32>
    %15 = arith.subf %11, %14 : vector<8x16x1xf32>
    %16 = math.exp %15 : vector<8x16x1xf32>
    %cst_8 = arith.constant dense<0.000000e+00> : vector<8x1xf32>
    %17 = vector.multi_reduction <add>, %16, %cst_8 [1] : vector<8x16x1xf32> to vector<8x1xf32>
    %18 = vector.shape_cast %17 : vector<8x1xf32> to vector<8x1x1xf32>
    %19 = vector.broadcast %18 : vector<8x1x1xf32> to vector<8x16x1xf32>
    %20 = arith.divf %16, %19 : vector<8x16x1xf32>
    %21 = vector.extract_strided_slice %6 {offsets = [0, 0, 1], sizes = [8, 16, 3], strides = [1, 1, 1]} : vector<8x16x4xf32> to vector<8x16x3xf32>
    %22 = tpu.concatenate %0, %21 in 2 : vector<8x16x32xf32>, vector<8x16x3xf32> -> vector<8x16x35xf32>
    %23 = vector.broadcast %20 : vector<8x16x1xf32> to vector<8x16x35xf32>
    %24 = arith.mulf %23, %22 : vector<8x16x35xf32>
    %cst_9 = arith.constant dense<0.000000e+00> : vector<8x35xf32>
    %25 = vector.multi_reduction <add>, %24, %cst_9 [1] : vector<8x16x35xf32> to vector<8x35xf32>
    %c0_10 = arith.constant 0 : index
    %c0_11 = arith.constant 0 : index
    %26 = vector.load %arg4[%c0_10, %c0_11] : memref<35x8xf32, #tpu.memory_space<vmem>>, vector<35x8xf32>
    %cst_12 = arith.constant dense<0.000000e+00> : vector<8x8xf32>
    %27 = tpu.matmul %25, %26, %cst_12 {dimension_numbers = #tpu.dot_dimension_numbers<[1], [0], [0], [1], [0, 0, 1, 1], [], []>} : vector<8x35xf32>, vector<35x8xf32>, vector<8x8xf32> -> vector<8x8xf32>
    %28 = vector.extract_strided_slice %27 {offsets = [0, 0], sizes = [8, 4], strides = [1, 1]} : vector<8x8xf32> to vector<8x4xf32>
    %29 = vector.extract_strided_slice %27 {offsets = [0, 4], sizes = [8, 4], strides = [1, 1]} : vector<8x8xf32> to vector<8x4xf32>
    %30 = vector.extract_strided_slice %29 {offsets = [4, 0], sizes = [4, 4], strides = [1, 1]} : vector<8x4xf32> to vector<4x4xf32>
    %31 = vector.extract_strided_slice %29 {offsets = [0, 0], sizes = [4, 4], strides = [1, 1]} : vector<8x4xf32> to vector<4x4xf32>
    %32 = tpu.concatenate %30, %31 in 0 : vector<4x4xf32>, vector<4x4xf32> -> vector<8x4xf32>
    %33 = arith.addf %28, %32 : vector<8x4xf32>
    %34 = vector.shape_cast %33 : vector<8x4xf32> to vector<8x1x4xf32>
    %35 = vector.broadcast %34 : vector<8x1x4xf32> to vector<8x16x4xf32>
    %36 = arith.addf %8, %35 : vector<8x16x4xf32>
    %37 = tpu.transpose %36, [0, 2, 1] : vector<8x16x4xf32> -> vector<8x4x16xf32>
    %cst_13 = arith.constant dense<0xFF800000> : vector<8x4xf32>
    %38 = vector.multi_reduction <maximumf>, %37, %cst_13 [2] : vector<8x4x16xf32> to vector<8x4xf32>
    %39 = vector.shape_cast %38 : vector<8x4xf32> to vector<8x4x1xf32>
    %40 = vector.broadcast %39 : vector<8x4x1xf32> to vector<8x4x16xf32>
    %41 = arith.subf %37, %40 : vector<8x4x16xf32>
    %42 = math.exp %41 : vector<8x4x16xf32>
    %cst_14 = arith.constant dense<0.000000e+00> : vector<8x4xf32>
    %43 = vector.multi_reduction <add>, %42, %cst_14 [2] : vector<8x4x16xf32> to vector<8x4xf32>
    %44 = vector.shape_cast %43 : vector<8x4xf32> to vector<8x4x1xf32>
    %45 = vector.broadcast %44 : vector<8x4x1xf32> to vector<8x4x16xf32>
    %46 = arith.divf %42, %45 : vector<8x4x16xf32>
    "tpu.trace_start"() <{level = 10 : i32, message = "bkn,bnd->bkd"}> : () -> ()
    %cst_15 = arith.constant dense<0.000000e+00> : vector<8x4x3xf32>
    %47 = tpu.matmul %46, %1, %cst_15 {dimension_numbers = #tpu.dot_dimension_numbers<[2], [1], [1], [2], [0, 0, 0, 1, 1, 2], [0], [0]>} : vector<8x4x16xf32>, vector<8x16x3xf32>, vector<8x4x3xf32> -> vector<8x4x3xf32>
    "tpu.trace_stop"() : () -> ()
    %48 = arith.mulf %1, %1 : vector<8x16x3xf32>
    %cst_16 = arith.constant dense<0.000000e+00> : vector<8x16xf32>
    %49 = vector.multi_reduction <add>, %48, %cst_16 [2] : vector<8x16x3xf32> to vector<8x16xf32>
    %50 = vector.shape_cast %49 : vector<8x16xf32> to vector<8x1x16xf32>
    "tpu.trace_start"() <{level = 10 : i32, message = "bkd,bnd->bkn"}> : () -> ()
    %cst_17 = arith.constant dense<0.000000e+00> : vector<8x4x16xf32>
    %51 = tpu.matmul %47, %1, %cst_17 {dimension_numbers = #tpu.dot_dimension_numbers<[2], [2], [1], [1], [0, 0, 0, 1, 1, 1], [0], [0]>} : vector<8x4x3xf32>, vector<8x16x3xf32>, vector<8x4x16xf32> -> vector<8x4x16xf32>
    "tpu.trace_stop"() : () -> ()
    %cst_18 = arith.constant 2.000000e+00 : f32
    %52 = vector.broadcast %cst_18 : f32 to vector<8x4x16xf32>
    %53 = arith.mulf %52, %51 : vector<8x4x16xf32>
    %54 = vector.broadcast %50 : vector<8x1x16xf32> to vector<8x4x16xf32>
    %55 = arith.subf %54, %53 : vector<8x4x16xf32>
    %56 = tpu.iota {dimensions = array<i32: 2>} : vector<8x4x16xi32>
    %cst_19 = arith.constant 0.000000e+00 : f32
    %57 = vector.broadcast %cst_19 : f32 to vector<8x4x16xf32>
    %c0_i32 = arith.constant 0 : i32
    %cst_20 = arith.constant 5.000000e-01 : f32
    %58 = vector.broadcast %cst_20 : f32 to vector<8x4x16xf32>
    %59 = arith.cmpf ogt, %57, %58 : vector<8x4x16xf32>
    %cst_21 = arith.constant 1.000000e+30 : f32
    %60 = vector.broadcast %cst_21 : f32 to vector<8x4x16xf32>
    %61 = arith.select %59, %60, %55 : vector<8x4x16xi1>, vector<8x4x16xf32>
    %cst_22 = arith.constant dense<0x7F800000> : vector<8x4xf32>
    %62 = vector.multi_reduction <minimumf>, %61, %cst_22 [2] : vector<8x4x16xf32> to vector<8x4xf32>
    %63 = vector.shape_cast %62 : vector<8x4xf32> to vector<8x4x1xf32>
    %64 = vector.broadcast %63 : vector<8x4x1xf32> to vector<8x4x16xf32>
    %65 = arith.cmpf ole, %61, %64 : vector<8x4x16xf32>
    %c16_i32 = arith.constant 16 : i32
    %66 = vector.broadcast %c16_i32 : i32 to vector<8x4x16xi32>
    %67 = arith.select %65, %56, %66 : vector<8x4x16xi1>, vector<8x4x16xi32>
    %cst_23 = arith.constant dense<2147483647> : vector<8x4xi32>
    %68 = vector.multi_reduction <minsi>, %67, %cst_23 [2] : vector<8x4x16xi32> to vector<8x4xi32>
    %69 = vector.shape_cast %68 : vector<8x4xi32> to vector<8x4x1xi32>
    %70 = vector.broadcast %69 : vector<8x4x1xi32> to vector<8x4x16xi32>
    %71 = arith.cmpi eq, %56, %70 : vector<8x4x16xi32>
    %72 = arith.extui %71 : vector<8x4x16xi1> to vector<8x4x16xi32>
    %73 = arith.sitofp %72 : vector<8x4x16xi32> to vector<8x4x16xf32>
    %74 = arith.addf %57, %73 : vector<8x4x16xf32>
    %c1_i32 = arith.constant 1 : i32
    %cst_24 = arith.constant 5.000000e-01 : f32
    %75 = vector.broadcast %cst_24 : f32 to vector<8x4x16xf32>
    %76 = arith.cmpf ogt, %74, %75 : vector<8x4x16xf32>
    %cst_25 = arith.constant 1.000000e+30 : f32
    %77 = vector.broadcast %cst_25 : f32 to vector<8x4x16xf32>
    %78 = arith.select %76, %77, %55 : vector<8x4x16xi1>, vector<8x4x16xf32>
    %cst_26 = arith.constant dense<0x7F800000> : vector<8x4xf32>
    %79 = vector.multi_reduction <minimumf>, %78, %cst_26 [2] : vector<8x4x16xf32> to vector<8x4xf32>
    %80 = vector.shape_cast %79 : vector<8x4xf32> to vector<8x4x1xf32>
    %81 = vector.broadcast %80 : vector<8x4x1xf32> to vector<8x4x16xf32>
    %82 = arith.cmpf ole, %78, %81 : vector<8x4x16xf32>
    %c16_i32_27 = arith.constant 16 : i32
    %83 = vector.broadcast %c16_i32_27 : i32 to vector<8x4x16xi32>
    %84 = arith.select %82, %56, %83 : vector<8x4x16xi1>, vector<8x4x16xi32>
    %cst_28 = arith.constant dense<2147483647> : vector<8x4xi32>
    %85 = vector.multi_reduction <minsi>, %84, %cst_28 [2] : vector<8x4x16xi32> to vector<8x4xi32>
    %86 = vector.shape_cast %85 : vector<8x4xi32> to vector<8x4x1xi32>
    %87 = vector.broadcast %86 : vector<8x4x1xi32> to vector<8x4x16xi32>
    %88 = arith.cmpi eq, %56, %87 : vector<8x4x16xi32>
    %89 = arith.extui %88 : vector<8x4x16xi1> to vector<8x4x16xi32>
    %90 = arith.sitofp %89 : vector<8x4x16xi32> to vector<8x4x16xf32>
    %91 = arith.addf %74, %90 : vector<8x4x16xf32>
    %c2_i32 = arith.constant 2 : i32
    %cst_29 = arith.constant 5.000000e-01 : f32
    %92 = vector.broadcast %cst_29 : f32 to vector<8x4x16xf32>
    %93 = arith.cmpf ogt, %91, %92 : vector<8x4x16xf32>
    %cst_30 = arith.constant 1.000000e+30 : f32
    %94 = vector.broadcast %cst_30 : f32 to vector<8x4x16xf32>
    %95 = arith.select %93, %94, %55 : vector<8x4x16xi1>, vector<8x4x16xf32>
    %cst_31 = arith.constant dense<0x7F800000> : vector<8x4xf32>
    %96 = vector.multi_reduction <minimumf>, %95, %cst_31 [2] : vector<8x4x16xf32> to vector<8x4xf32>
    %97 = vector.shape_cast %96 : vector<8x4xf32> to vector<8x4x1xf32>
    %98 = vector.broadcast %97 : vector<8x4x1xf32> to vector<8x4x16xf32>
    %99 = arith.cmpf ole, %95, %98 : vector<8x4x16xf32>
    %c16_i32_32 = arith.constant 16 : i32
    %100 = vector.broadcast %c16_i32_32 : i32 to vector<8x4x16xi32>
    %101 = arith.select %99, %56, %100 : vector<8x4x16xi1>, vector<8x4x16xi32>
    %cst_33 = arith.constant dense<2147483647> : vector<8x4xi32>
    %102 = vector.multi_reduction <minsi>, %101, %cst_33 [2] : vector<8x4x16xi32> to vector<8x4xi32>
    %103 = vector.shape_cast %102 : vector<8x4xi32> to vector<8x4x1xi32>
    %104 = vector.broadcast %103 : vector<8x4x1xi32> to vector<8x4x16xi32>
    %105 = arith.cmpi eq, %56, %104 : vector<8x4x16xi32>
    %106 = arith.extui %105 : vector<8x4x16xi1> to vector<8x4x16xi32>
    %107 = arith.sitofp %106 : vector<8x4x16xi32> to vector<8x4x16xf32>
    %108 = arith.addf %91, %107 : vector<8x4x16xf32>
    "tpu.trace_start"() <{level = 10 : i32, message = "bkn,bnf->bkf"}> : () -> ()
    %cst_34 = arith.constant dense<0.000000e+00> : vector<8x4x32xf32>
    %109 = tpu.matmul %108, %10, %cst_34 {dimension_numbers = #tpu.dot_dimension_numbers<[2], [1], [1], [2], [0, 0, 0, 1, 1, 2], [0], [0]>} : vector<8x4x16xf32>, vector<8x16x32xf32>, vector<8x4x32xf32> -> vector<8x4x32xf32>
    "tpu.trace_stop"() : () -> ()
    %cst_35 = arith.constant 0.333333343 : f32
    %110 = vector.broadcast %cst_35 : f32 to vector<8x4x32xf32>
    %111 = arith.mulf %109, %110 : vector<8x4x32xf32>
    %c0_36 = arith.constant 0 : index
    %c0_37 = arith.constant 0 : index
    %c0_38 = arith.constant 0 : index
    %112 = vector.load %arg5[%c0_36, %c0_37, %c0_38] : memref<8x4x32xf32, #tpu.memory_space<vmem>>, vector<8x4x32xf32>
    tpu.vector_store %arg5[%c0_36, %c0_37, %c0_38], %111 {strides = array<i32>} : memref<8x4x32xf32, #tpu.memory_space<vmem>>, vector<8x4x32xf32>,
    %c0_39 = arith.constant 0 : index
    %c0_40 = arith.constant 0 : index
    %c0_41 = arith.constant 0 : index
    %113 = vector.load %arg6[%c0_39, %c0_40, %c0_41] : memref<8x4x3xf32, #tpu.memory_space<vmem>>, vector<8x4x3xf32>
    tpu.vector_store %arg6[%c0_39, %c0_40, %c0_41], %47 {strides = array<i32>} : memref<8x4x3xf32, #tpu.memory_space<vmem>>, vector<8x4x3xf32>,
    return
  }
  func.func @transform_0(%arg0: i32) -> (i32, i32, i32) {
    %c0_i32 = arith.constant 0 : i32
    %c0_i32_0 = arith.constant 0 : i32
    %c0_i32_1 = arith.constant 0 : i32
    return %arg0, %c0_i32, %c0_i32_0 : i32, i32, i32
  }
  func.func @transform_1(%arg0: i32) -> (i32, i32, i32) {
    %c0_i32 = arith.constant 0 : i32
    %c0_i32_0 = arith.constant 0 : i32
    %c0_i32_1 = arith.constant 0 : i32
    return %arg0, %c0_i32, %c0_i32_0 : i32, i32, i32
  }
  func.func @transform_2(%arg0: i32) -> (i32, i32) {
    %c0_i32 = arith.constant 0 : i32
    %c0_i32_0 = arith.constant 0 : i32
    %c0_i32_1 = arith.constant 0 : i32
    return %c0_i32, %c0_i32_0 : i32, i32
  }
  func.func @transform_3(%arg0: i32) -> (i32, i32) {
    %c0_i32 = arith.constant 0 : i32
    %c0_i32_0 = arith.constant 0 : i32
    %c0_i32_1 = arith.constant 0 : i32
    return %c0_i32, %c0_i32_0 : i32, i32
  }
  func.func @transform_4(%arg0: i32) -> (i32, i32, i32) {
    %c0_i32 = arith.constant 0 : i32
    %c0_i32_0 = arith.constant 0 : i32
    %c0_i32_1 = arith.constant 0 : i32
    return %arg0, %c0_i32, %c0_i32_0 : i32, i32, i32
  }
  func.func @transform_5(%arg0: i32) -> (i32, i32, i32) {
    %c0_i32 = arith.constant 0 : i32
    %c0_i32_0 = arith.constant 0 : i32
    %c0_i32_1 = arith.constant 0 : i32
    return %arg0, %c0_i32, %c0_i32_0 : i32, i32, i32
  }
}

</mosaic_0001>

<bundles_post_ra>
// kernel: tpu_custom_call.1
= control target key start
LH: loop header
LB: loop body
LE: loop exit
PB: predicated region body
PF: predicated region fallthrough
CT: control target
= control target key end

     0   :  { %11 = vsyncpa [#allocation3], 0  ;;  %s8068_s0 = inlined_call_operand.vmem [shape: f32[16,16,32], index: 0, kind: input, shape index: {}]   ;;  %s8069_s1 = inlined_call_operand.vmem [shape: f32[16,16,3], index: 1, kind: input, shape index: {}]   ;;  %s8070_s2 = inlined_call_operand.vmem [shape: f32[32,40], index: 2, kind: input, shape index: {}]   ;;  %s8071_s3 = inlined_call_operand.vmem [shape: f32[35,8], index: 3, kind: input, shape index: {}]   ;;  %s8072_s4 = inlined_call_operand.hbm [shape: f32[16,4,32], index: 4, kind: output, shape index: {0}]   ;;  %s8073_s5 = inlined_call_operand.vmem [shape: f32[16,4,3], index: 5, kind: output, shape index: {1}]  }
   0x1   :  { %13 = vsyncpa [#allocation3 + $0x1], 0  ;;  %s5451_s18 = smov 0   ;;  %s5453_s19 = smov 0  }
   0x2   :  { %s5455_s20 = smov 0   ;;  %s5457_s21 = smov 0  }
   0x3 LB: > { %s5472_s22 = sadd.s32 4294967295, %s5412_s21   ;;  %s4997_s23 = sadd.s32 4294967294, %s5412_s21   ;;  %s5412_s21 = sphi %s5457_s21, %s8408_s21   ;;  %s5408_s20 = sphi %s5455_s20, %s8407_s20   ;;  %s5404_s19 = sphi %s5453_s19, %s8406_s19   ;;  %s5400_s18 = sphi %s5451_s18, %s8405_s18  }
   0x4   : > { %s5476_s24 = sadd.s32 1, %s5412_s21   ;;  %s120_s25 = sadd.s32 1, %s5408_s20 }
   0x5   : > { %s117_s26 = ssub.s32 %s5412_s21, %s5476_s24  ;;  %p130_p0 = scmp.ne.s32.totalorder %s5408_s20, %s5404_s19 }
   0x6   : > { %p118_p1 = scmp.eq.s32.totalorder %s117_s26, 0  ;;  %p131_p2 = scmp.eq.s32.totalorder %s5472_s22, 1 }
   0x7   : > { %p136_p3 = scmp.ne.s32.totalorder %s5404_s19, %s5400_s18  ;;  %p137_p4 = scmp.eq.s32.totalorder %s4997_s23, 1 }
   0x8   : > { %s5487_s27 = scalar_select %p118_p1, %s5408_s20, %s120_s25  }
   0x9   : > { %p5489_p5 = por %p131_p2, %p130_p0  ;;  %p5493_p6 = por %p137_p4, %p136_p3 }
   0xa   : > { %p5000_p7 = scmp.ge.s32.totalorder %s5412_s21, 1  ;;  %p207_p8 = scmp.lt.s32.totalorder %s5412_s21, 3 }
   0xc   : > { %p208_p9 = pnand %p5000_p7, %p207_p8 }
   0xe   : > { %211 = sbr.rel (%p208_p9) target bundleno = 3813 (0xee5), region = 36 }
  0x13   : > { %v303_v0 = vld [vmem:[%s8070_s2 + $0x18] sm:$0xff]  ;;  %v302_v1 = vld [vmem:[%s8070_s2 + $0x10] sm:$0xff]  ;;  %s5002_s9 = sshll.u32 %s5472_s22, 3  ;;  %v301_v2 = vld [vmem:[%s8070_s2 + $0x8] sm:$0xff]  ;;  %vm304_vm0 = vcmask 261120   ;;  %vm1821_vm1 = vcmask 23552   ;;  %v2119_v41 = vlaneseq }
  0x14   : > { %365 = vmatpush.msra.mxu0 %v303_v0  ;;  %5100 = vmatpush.msra.mxu1 %v303_v0  ;;  %p248_p10 = scmp.lt.s32.totalorder %s5002_s9, 15  ;;  %v300_v3 = vld [vmem:[%s8070_s2] sm:$0xff]  ;;  %s5414_s30 = smov 31   ;;  %vm418_vm2 = vcmask 7168  }
  0x15   : > { %5101 = vmatpush.msra.mxu3 %v303_v0  ;;  %v5573_v51 = vshrl.u32 %v2119_v41, 7  ;;  %s5417_s23 = smov 4   ;;  %s5099_s11 = sshll.u32 %s5472_s22, 5 }
  0x16   : > { %366 = vmatpush.msra.mxu0 %v302_v1  ;;  %5102 = vmatpush.msra.mxu1 %v302_v1  ;;  %s8410_s9 = smov (!%p248_p10, %s5002_s9), 15 }
  0x17   : > { %5103 = vmatpush.msra.mxu3 %v302_v1  ;;  %s5097_s14 = sshll.u32 %s8410_s9, 4  ;;  %5154 = vset.pattern.permute.xlu1 %v5573_v51  ;;  %s5009_s25 = sshll.u32 %s8410_s9, 2 }
  0x18   : > { %367 = vmatpush.msra.mxu0 %v301_v2  ;;  %5104 = vmatpush.msra.mxu1 %v301_v2  ;;  %s5518_s17 = scalar_lea.vmem %s8068_s0, %s5097_s14  ;;  %s5541_s26 = scalar_lea.vmem %s8069_s1, %s5097_s14 }
  0x19   : > { %5105 = vmatpush.msra.mxu3 %v301_v2  ;;  %v268_v4 = vld [vmem:[%s5518_s17] sm:$0xff]  ;;  %v279_v5 = vld [vmem:[%s5518_s17 + $0x58] sm:$0xff]  ;;  %v281_v6 = vld [vmem:[%s5518_s17 + $0x68] sm:$0xff]  ;;  %s266_s7 = scalar_lea.vmem %s8073_s5, %s5009_s25  ;;  %s5419_s9 = smov 120  }
  0x1a   : > { %368 = vmatpush.msra.mxu0 %v300_v3  ;;  %5106 = vmatpush.msra.mxu1 %v300_v3  ;;  %v269_v7 = vld [vmem:[%s5518_s17 + $0x8] sm:$0xff]  ;;  %v280_v8 = vld [vmem:[%s5518_s17 + $0x60] sm:$0xff]  ;;  %v282_v9 = vld [vmem:[%s5518_s17 + $0x70] sm:$0xff]  ;;  %s4890_s14 = scalar_lea.hbm %s8072_s4, %s5099_s11 }
  0x1b   : > { %5107 = vmatpush.msra.mxu3 %v300_v3  ;;  %5010 = vmatmul.msk.f32.vlgmr.msra.gmra.mxu0 %vm304_vm0, %v268_v4  ;;  %v270_v10 = vld [vmem:[%s5518_s17 + $0x10] sm:$0xff]  ;;  %v283_v11 = vld [vmem:[%s5518_s17 + $0x78] sm:$0xff]  ;;  %v272_v13 = vld [vmem:[%s5518_s17 + $0x20] sm:$0xff]  ;;  %s4893_s16 = sshll.u32 %s4890_s14, 4  ;;  %s4894_s16 = int_to_ptr.hbm [resolvable:$true] %s4893_s16 }
  0x1c   : > { %5021 = vmatmul.msk.f32.vlgmr.msra.gmra.mxu1 %vm304_vm0, %v279_v5  ;;  %5023 = vmatmul.msk.f32.vlgmr.msra.gmra.mxu3 %vm304_vm0, %v281_v6  ;;  %v271_v12 = vld [vmem:[%s5518_s17 + $0x18] sm:$0xff]  ;;  %v284_v14 = vld [vmem:[%s5541_s26] sm:$0xff]  ;;  %v286_v16 = vld [vmem:[%s5541_s26 + $0x10] sm:$0xff]  ;;  %v5598_v6 = vand.u32 127, %v2119_v41  ;;  %s5364_s22 = sshra.s32 %s4894_s16, 4  ;;  %s5365_s22 = int_to_ptr.hbm [resolvable:$true] %s5364_s22 }
  0x1d   : > { %v1805_v15 = vmul.f32 %v284_v14, %v284_v14  ;;  %v285_v17 = vld [vmem:[%s5541_s26 + $0x8] sm:$0xff]  ;;  %v1807_v18 = vmul.f32 %v286_v16, %v286_v16  ;;  %v287_v24 = vld [vmem:[%s5541_s26 + $0x18] sm:$0xff]  ;;  %v288_v27 = vld [vmem:[%s5541_s26 + $0x20] sm:$0xff]  ;;  %s5366_s25 = scalar_lea.hbm %s5365_s22, 32  ;;  %p5371_p0 = scmp.lt.s32.totalorder %s5365_s22, %s8072_s4 }
  0x1e   : > { %v1806_v19 = vmul.f32 %v285_v17, %v285_v17  ;;  %1638 = vmatpush.msra.mxu2 %v285_v17  ;;  %v273_v23 = vld [vmem:[%s5518_s17 + $0x28] sm:$0xff]  ;;  %v1808_v25 = vmul.f32 %v287_v24, %v287_v24  ;;  %1661 = vmatpush.msrb.mxu3 %v287_v24  ;;  %v1809_v29 = vmul.f32 %v288_v27, %v288_v27  ;;  %v274_v33 = vld [vmem:[%s5518_s17 + $0x30] sm:$0xff]  ;;  %v292_v36 = vld [vmem:[%s5541_s26 + $0x40] sm:$0xff]  ;;  %p5367_p11 = scmp.ne.s32.totalorder %s5365_s22, %s5366_s25 }
  0x1f   : > { %v1822_v20 = vsel %vm1821_vm1, %v1805_v15, 0.0  ;;  %v1828_v21 = vsel %vm1821_vm1, %v1807_v18, 0.0  ;;  %v289_v26 = vld [vmem:[%s5541_s26 + $0x28] sm:$0xff]  ;;  %v290_v34 = vld [vmem:[%s5541_s26 + $0x30] sm:$0xff]  ;;  %v291_v37 = vld [vmem:[%s5541_s26 + $0x38] sm:$0xff]  ;;  %v1813_v38 = vmul.f32 %v292_v36, %v292_v36  ;;  %8162 = vst [vmem:[#allocation5_spill] sm:$0xff] %v5598_v6 }
  0x20   : > { %1823 = vadd.xlane.f32.xlu0 %v1822_v20  ;;  %v1825_v22 = vsel %vm1821_vm1, %v1806_v19, 0.0  ;;  %1639 = vmatpush.msra.mxu2 %v284_v14  ;;  %v1810_v28 = vmul.f32 %v289_v26, %v289_v26  ;;  %v1831_v30 = vsel %vm1821_vm1, %v1808_v25, 0.0  ;;  %v1834_v32 = vsel %vm1821_vm1, %v1809_v29, 0.0  ;;  %v293_v40 = vld [vmem:[%s5541_s26 + $0x48] sm:$0xff]  ;;  %v295_v43 = vld [vmem:[%s5541_s26 + $0x58] sm:$0xff]  ;;  %v294_v44 = vld [vmem:[%s5541_s26 + $0x50] sm:$0xff]  ;;  %p5368_p12 = pnand %p5367_p11, %p5489_p5 }
  0x21   : > { %1829 = vadd.xlane.f32.xlu2 %v1828_v21  ;;  %1826 = vadd.xlane.f32.xlu1 %v1825_v22  ;;  %v1811_v35 = vmul.f32 %v290_v34, %v290_v34  ;;  %v1812_v39 = vmul.f32 %v291_v37, %v291_v37  ;;  %v1846_v45 = vsel %vm1821_vm1, %v1813_v38, 0.0  ;;  %v1814_v47 = vmul.f32 %v293_v40, %v293_v40  ;;  %v5571_v48 = vld [vmem:[%s5518_s17 + $0x38] sm:$0xff]  ;;  %v296_v55 = vld [vmem:[%s5541_s26 + $0x60] sm:$0xff]  ;;  %v298_v56 = vld [vmem:[%s5541_s26 + $0x70] sm:$0xff] }
  0x22   : > { %1684 = vmatpush.msrb.mxu2 %v289_v26  ;;  %1662 = vmatpush.msrb.mxu3 %v286_v16  ;;  %v1837_v31 = vsel %vm1821_vm1, %v1810_v28, 0.0  ;;  %v1816_v49 = vmul.f32 %v295_v43, %v295_v43  ;;  %v1815_v50 = vmul.f32 %v294_v44, %v294_v44  ;;  %v297_v57 = vld [vmem:[%s5541_s26 + $0x68] sm:$0xff]  ;;  %v1817_v58 = vmul.f32 %v296_v55, %v296_v55  ;;  %v276_v59 = vld [vmem:[%s5518_s17 + $0x40] sm:$0xff]  ;;  %v299_v1 = vld [vmem:[%s5541_s26 + $0x78] sm:$0xff]  ;;  %p5369_p13 = pneg %p5368_p12 }
  0x23   : > { %5011 = vmatmul.msk.f32.gmra.mxu0 %vm304_vm0, %v269_v7  ;;  %v1840_v42 = vsel %vm1821_vm1, %v1811_v35, 0.0  ;;  %v1843_v46 = vsel %vm1821_vm1, %v1812_v39, 0.0  ;;  %v1849_v52 = vsel %vm1821_vm1, %v1814_v47, 0.0  ;;  %v1819_v60 = vmul.f32 %v298_v56, %v298_v56  ;;  %v5591_v3 = vld [vmem:[%s5518_s17 + $0x48] sm:$0xff]  ;;  %v278_v5 = vld [vmem:[%s5518_s17 + $0x50] sm:$0xff] }
  0x24   : > { %5022 = vmatmul.msk.f32.gmra.mxu1 %vm304_vm0, %v280_v8  ;;  %5024 = vmatmul.msk.f32.gmra.mxu3 %vm304_vm0, %v282_v9  ;;  %v1855_v53 = vsel %vm1821_vm1, %v1816_v49, 0.0  ;;  %v1852_v54 = vsel %vm1821_vm1, %v1815_v50, 0.0  ;;  %v1818_v61 = vmul.f32 %v297_v57, %v297_v57  ;;  %v1858_v62 = vsel %vm1821_vm1, %v1817_v58, 0.0 }
  0x25   : > { %1685 = vmatpush.msrb.mxu2 %v288_v27  ;;  %1707 = vmatpush.msra.mxu3 %v291_v37  ;;  %v1864_v63 = vsel %vm1821_vm1, %v1819_v60, 0.0  ;;  %v1820_v2 = vmul.f32 %v299_v1, %v299_v1  ;;  %v5601_v7 = vadd.s32 8, %v5573_v51 }
  0x26   : > { %v1861_v0 = vsel %vm1821_vm1, %v1818_v61, 0.0 }
  0x27   : > { %1708 = vmatpush.msra.mxu3 %v290_v34  ;;  %v1867_v4 = vsel %vm1821_vm1, %v1820_v2, 0.0  ;;  %5155 = vset.pattern.permute.xlu2 %v5601_v7 }
  0x28   : > { %1832 = vadd.xlane.f32.xlu0 %v1831_v30 }
  0x29   : > { %1838 = vadd.xlane.f32.xlu2 %v1837_v31  ;;  %1835 = vadd.xlane.f32.xlu1 %v1834_v32 }
  0x2b   : > { %5012 = vmatmul.msk.f32.gmra.mxu0 %vm304_vm0, %v270_v10 }
  0x2c   : > { %5025 = vmatmul.msk.f32.gmra.mxu3 %vm304_vm0, %v283_v11 }
  0x30   : > { %1841 = vadd.xlane.f32.xlu0 %v1840_v42 }
  0x31   : > { %1847 = vadd.xlane.f32.xlu2 %v1846_v45  ;;  %1844 = vadd.xlane.f32.xlu1 %v1843_v46 }
  0x33   : > { %5013 = vmatmul.msk.f32.gmra.mxu0 %vm304_vm0, %v271_v12 }
  0x38   : > { %1850 = vadd.xlane.f32.xlu0 %v1849_v52 }
  0x39   : > { %1856 = vadd.xlane.f32.xlu2 %v1855_v53  ;;  %1853 = vadd.xlane.f32.xlu1 %v1852_v54 }
  0x3b   : > { %5014 = vmatmul.msk.f32.gmra.mxu0 %vm304_vm0, %v272_v13 }
  0x40   : > { %1859 = vadd.xlane.f32.xlu0 %v1858_v62 }
  0x41   : > { %1865 = vadd.xlane.f32.xlu2 %v1864_v63  ;;  %1862 = vadd.xlane.f32.xlu1 %v1861_v0 }
  0x43   : > { %5015 = vmatmul.msk.f32.gmra.mxu0 %vm304_vm0, %v273_v23 }
  0x48   : > { %1868 = vadd.xlane.f32.xlu0 %v1867_v4 }
  0x4b   : > { %5016 = vmatmul.msk.f32.gmra.mxu0 %vm304_vm0, %v274_v33 }
  0x53   : > { %5017 = vmatmul.msk.f32.gmra.mxu0 %vm304_vm0, %v5571_v48 }
  0x59   : > { %3285 = vperm.xlu2 %5155, %v5598_v6  }
  0x5a   : > { %3279 = vperm.xlu1 %5154, %v5598_v6  }
  0x5b   : > { %5018 = vmatmul.msk.f32.gmra.mxu0 %vm304_vm0, %v276_v59 }
  0x63   : > { %5019 = vmatmul.msk.f32.gmra.mxu0 %vm304_vm0, %v5591_v3 }
  0x6b   : > { %5020 = vmatmul.msk.f32.gmra.mxu0 %vm304_vm0, %v278_v5 }
  0x98   : > { %v5606_v8 = vpop.f32.mrf.mxu0 }
  0x99   : > { %8163 = vst [vmem:[#allocation6_spill] sm:$0xff] %v5606_v8  ;;  %v5608_v9 = vpop.f32.mrf.mxu1  ;;  %755 = vrot.lane.b32.xlu0 %v5606_v8, %s5414_s30  ;;  %v419_v13 = vsel %vm418_vm2, %v5606_v8, -inf }
  0x9a   : > { %8164 = vst [vmem:[#allocation7_spill] sm:$0xff] %v5608_v9  ;;  %777 = vrot.lane.b32.xlu2 %v5608_v9, %s5414_s30 }
  0x9f   : > { %v5614_v10 = vpop.f32.mrf.mxu3 }
  0xa0   : > { %8165 = vst [vmem:[#allocation8_spill] sm:$0xff] %v5614_v10  ;;  %v474_v11 = vsel %vm418_vm2, %v5614_v10, -inf  ;;  %v5618_v12 = vpop.f32.mrf.mxu0  ;;  %781 = vrot.lane.b32.xlu1 %v5614_v10, %s5414_s30 }
  0xa1   : > { %8166 = vst [vmem:[#allocation9_spill] sm:$0xff] %v5618_v12  ;;  %v420_v14 = vsel %vm418_vm2, %v5618_v12, -inf  ;;  %v5626_v15 = vpop.f32.mrf.mxu1  ;;  %757 = vrot.lane.b32.xlu0 %v5618_v12, %s5414_s30 }
  0xa2   : > { %8167 = vst [vmem:[#allocation10_spill] sm:$0xff] %v5626_v15  ;;  %v421_v16 = vmax.f32 %v419_v13, %v420_v14  ;;  %v473_v17 = vsel %vm418_vm2, %v5626_v15, -inf  ;;  %v8074_v14 = vmov 0  }
  0xa3   : > { %v475_v18 = vmax.f32 %v473_v17, %v474_v11  ;;  %5158 = vset.pattern.permute.xlu0 %v8074_v14  ;;  %5156 = vset.pattern.permute.xlu1 %v8074_v14 }
  0xa4   : > { %v422_v19 = vrot.slane %v421_v16, 4  ;;  %5157 = vset.pattern.permute.xlu2 %v8074_v14 }
  0xa5   : > { %v476_v20 = vrot.slane %v475_v18, 4 }
  0xa6   : > { %v423_v21 = vmax.f32 %v421_v16, %v422_v19 }
  0xa7   : > { %v477_v22 = vmax.f32 %v475_v18, %v476_v20  ;;  %v5632_v23 = vpop.f32.mrf.mxu3 }
  0xa8   : > { %8168 = vst [vmem:[#allocation11_spill] sm:$0xff] %v5632_v23  ;;  %v424_v24 = vrot.slane %v423_v21, 2  ;;  %v5634_v25 = vpop.f32.mrf.mxu0  ;;  %783 = vrot.lane.b32.xlu2 %v5632_v23, %s5414_s30  ;;  %v482_v32 = vsel %vm418_vm2, %v5632_v23, -inf }
  0xa9   : > { %8169 = vst [vmem:[#allocation12_spill] sm:$0xff] %v5634_v25  ;;  %v478_v26 = vrot.slane %v477_v22, 2  ;;  %759 = vrot.lane.b32.xlu1 %v5634_v25, %s5414_s30  ;;  %779 = vrot.lane.b32.xlu0 %v5626_v15, %s5414_s30  ;;  %v428_v36 = vsel %vm418_vm2, %v5634_v25, -inf }
  0xaa   : > { %v425_v27 = vmax.f32 %v423_v21, %v424_v24 }
  0xab   : > { %v479_v28 = vmax.f32 %v477_v22, %v478_v26 }
  0xac   : > { %v426_v29 = vrot.slane %v425_v27, 1 }
  0xad   : > { %v480_v30 = vrot.slane %v479_v28, 1 }
  0xae   : > { %v427_v31 = vmax.f32 %v425_v27, %v426_v29 }
  0xaf   : > { %v481_v33 = vmax.f32 %v479_v28, %v480_v30  ;;  %v5644_v34 = vpop.f32.mrf.mxu3 }
  0xb0   : > { %8170 = vst [vmem:[#allocation13_spill] sm:$0xff] %v5644_v34  ;;  %v492_v35 = vsub.f32 %v5618_v12, %v427_v31  ;;  %v483_v37 = vsel %vm418_vm2, %v5644_v34, -inf  ;;  %v5651_v38 = vpop.f32.mrf.mxu0  ;;  %v491_v39 = vsub.f32 %v5606_v8, %v427_v31 }
  0xb1   : > { %8171 = vst [vmem:[#allocation14_spill] sm:$0xff] %v5651_v38  ;;  %v503_v40 = vsub.f32 %v5626_v15, %v481_v33  ;;  %v484_v41 = vmax.f32 %v482_v32, %v483_v37  ;;  %v429_v42 = vsel %vm418_vm2, %v5651_v38, -inf  ;;  %761 = vrot.lane.b32.xlu1 %v5651_v38, %s5414_s30  ;;  %785 = vrot.lane.b32.xlu0 %v5644_v34, %s5414_s30 }
  0xb2   : > { %v504_v43 = vsub.f32 %v5614_v10, %v481_v33  ;;  %v509_v44 = vmul.f32 1.442695, %v492_v35  ;;  %v430_v45 = vmax.f32 %v428_v36, %v429_v42  ;;  %v507_v46 = vmul.f32 1.442695, %v491_v39 }
  0xb3   : > { %v531_v47 = vmul.f32 1.442695, %v503_v40  ;;  %v485_v49 = vrot.slane %v484_v41, 4 }
  0xb4   : > { %v533_v50 = vmul.f32 1.442695, %v504_v43  ;;  %5240 = vpow2.f32 %v509_v44  ;;  %v431_v52 = vrot.slane %v430_v45, 4 }
  0xb5   : > { %5242 = vpow2.f32 %v531_v47  ;;  %v486_v53 = vmax.f32 %v484_v41, %v485_v49 }
  0xb6   : > { %v432_v54 = vmax.f32 %v430_v45, %v431_v52  ;;  %5244 = vpow2.f32 %v533_v50 }
  0xb7   : > { %v487_v55 = vrot.slane %v486_v53, 2  ;;  %5246 = vpow2.f32 %v507_v46 }
  0xb8   : > { %v433_v56 = vrot.slane %v432_v54, 2  ;;  %v5662_v57 = vpop.f32.mrf.mxu0 }
  0xb9   : > { %8172 = vst [vmem:[#allocation15_spill] sm:$0xff] %v5662_v57  ;;  %v488_v58 = vmax.f32 %v486_v53, %v487_v55  ;;  %763 = vrot.lane.b32.xlu2 %v5662_v57, %s5414_s30  ;;  %v437_v22 = vsel %vm418_vm2, %v5662_v57, -inf }
  0xba   : > { %v5666_v59 = vpop.eup %5240  ;;  %v434_v60 = vmax.f32 %v432_v54, %v433_v56 }
  0xbb   : > { %v5668_v61 = vpop.eup %5242  ;;  %v489_v62 = vrot.slane %v488_v58, 1  ;;  %v540_v0 = vsel %vm418_vm2, %v5666_v59, 0.0 }
  0xbc   : > { %v5670_v63 = vpop.eup %5244  ;;  %v593_v1 = vsel %vm418_vm2, %v5668_v61, 0.0  ;;  %v435_v2 = vrot.slane %v434_v60, 1 }
  0xbd   : > { %v5676_v4 = vpop.eup %5246  ;;  %v490_v5 = vmax.f32 %v488_v58, %v489_v62  ;;  %v594_v11 = vsel %vm418_vm2, %v5670_v63, 0.0 }
  0xbe   : > { %v436_v13 = vmax.f32 %v434_v60, %v435_v2  ;;  %v595_v16 = vadd.f32 %v594_v11, %v593_v1  ;;  %v539_v17 = vsel %vm418_vm2, %v5676_v4, 0.0 }
  0xbf   : > { %v505_v18 = vsub.f32 %v5632_v23, %v490_v5  ;;  %v506_v19 = vsub.f32 %v5644_v34, %v490_v5  ;;  %v541_v20 = vadd.f32 %v540_v0, %v539_v17 }
  0xc0   : > { %v494_v21 = vsub.f32 %v5651_v38, %v436_v13  ;;  %v5690_v24 = vpop.f32.mrf.mxu0  ;;  %v596_v26 = vrot.slane %v595_v16, 4  ;;  %v493_v27 = vsub.f32 %v5634_v25, %v436_v13 }
  0xc1   : > { %8173 = vst [vmem:[#allocation16_spill] sm:$0xff] %v5690_v24  ;;  %v535_v28 = vmul.f32 1.442695, %v505_v18  ;;  %v537_v29 = vmul.f32 1.442695, %v506_v19  ;;  %v438_v30 = vsel %vm418_vm2, %v5690_v24, -inf  ;;  %765 = vrot.lane.b32.xlu2 %v5690_v24, %s5414_s30 }
  0xc2   : > { %v542_v31 = vrot.slane %v541_v20, 4  ;;  %v513_v32 = vmul.f32 1.442695, %v494_v21  ;;  %v439_v33 = vmax.f32 %v437_v22, %v438_v30  ;;  %v597_v35 = vadd.f32 %v596_v26, %v595_v16 }
  0xc3   : > { %v511_v36 = vmul.f32 1.442695, %v493_v27  ;;  %5248 = vpow2.f32 %v535_v28 }
  0xc4   : > { %v543_v37 = vadd.f32 %v542_v31, %v541_v20  ;;  %5250 = vpow2.f32 %v537_v29  ;;  %v440_v39 = vrot.slane %v439_v33, 4  ;;  %v598_v40 = vrot.slane %v597_v35, 2 }
  0xc5   : > { %5252 = vpow2.f32 %v513_v32 }
  0xc6   : > { %v544_v41 = vrot.slane %v543_v37, 2  ;;  %v441_v42 = vmax.f32 %v439_v33, %v440_v39  ;;  %v599_v43 = vadd.f32 %v598_v40, %v597_v35  ;;  %5254 = vpow2.f32 %v511_v36 }
  0xc8   : > { %v545_v44 = vadd.f32 %v544_v41, %v543_v37  ;;  %v442_v45 = vrot.slane %v441_v42, 2  ;;  %v5697_v46 = vpop.f32.mrf.mxu0  ;;  %v600_v47 = vrot.slane %v599_v43, 1 }
  0xc9   : > { %8174 = vst [vmem:[#allocation17_spill] sm:$0xff] %v5697_v46  ;;  %v5699_v49 = vpop.eup %5248  ;;  %767 = vrot.lane.b32.xlu0 %v5697_v46, %s5414_s30  ;;  %v446_v20 = vsel %vm418_vm2, %v5697_v46, -inf }
  0xca   : > { %v546_v50 = vrot.slane %v545_v44, 1  ;;  %v5703_v52 = vpop.eup %5250  ;;  %v602_v53 = vsel %vm418_vm2, %v5699_v49, 0.0  ;;  %v443_v54 = vmax.f32 %v441_v42, %v442_v45  ;;  %v5707_v55 = vadd.f32 %v600_v47, %v599_v43 }
  0xcb   : > { %v5709_v56 = vpop.eup %5252  ;;  %v603_v58 = vsel %vm418_vm2, %v5703_v52, 0.0 }
  0xcc   : > { %v5713_v60 = vadd.f32 %v546_v50, %v545_v44  ;;  %v5715_v62 = vpop.eup %5254  ;;  %v604_v0 = vadd.f32 %v603_v58, %v602_v53  ;;  %v444_v1 = vrot.slane %v443_v54, 1  ;;  %5256 = vrcp.f32 %v5707_v55 }
  0xcd   : > { %v549_v2 = vsel %vm418_vm2, %v5709_v56, 0.0  ;;  %v548_v13 = vsel %vm418_vm2, %v5715_v62, 0.0  ;;  %v716_v33 = vand.u32 2147483647, %v5707_v55  ;;  %v718_v39 = vand.u32 2147483648, %v5707_v55 }
  0xce   : > { %5258 = vrcp.f32 %v5713_v60  ;;  %v605_v5 = vrot.slane %v604_v0, 4  ;;  %v445_v11 = vmax.f32 %v443_v54, %v444_v1  ;;  %v550_v19 = vadd.f32 %v549_v2, %v548_v13 }
  0xcf   : > { %v620_v42 = vand.u32 2147483647, %v5713_v60  ;;  %v622_v43 = vand.u32 2147483648, %v5713_v60  ;;  %vm712_vm5 = vweird.f32 %v5707_v55  ;;  %vm616_vm6 = vweird.f32 %v5713_v60 }
  0xd0   : > { %v606_v16 = vadd.f32 %v605_v5, %v604_v0  ;;  %v496_v17 = vsub.f32 %v5690_v24, %v445_v11  ;;  %v5724_v18 = vpop.f32.mrf.mxu0  ;;  %v495_v22 = vsub.f32 %v5662_v57, %v445_v11  ;;  %v551_v30 = vrot.slane %v550_v19, 4 }
  0xd1   : > { %8175 = vst [vmem:[#allocation18_spill] sm:$0xff] %v5724_v18  ;;  %v447_v21 = vsel %vm418_vm2, %v5724_v18, -inf  ;;  %769 = vrot.lane.b32.xlu1 %v5724_v18, %s5414_s30  ;;  %vm717_vm8 = vcmp.eq.f32.partialorder %v716_v33, 8.507059e+37  ;;  %vm621_vm10 = vcmp.eq.f32.partialorder %v620_v42, 8.507059e+37 }
  0xd2   : > { %v5257_v26 = vpop.eup %5256  ;;  %v607_v27 = vrot.slane %v606_v16, 2  ;;  %v517_v28 = vmul.f32 1.442695, %v496_v17  ;;  %v448_v29 = vmax.f32 %v446_v20, %v447_v21  ;;  %v515_v35 = vmul.f32 1.442695, %v495_v22 }
  0xd3   : > { %v708_v32 = vmul.f32 %v5257_v26, %v5707_v55  ;;  %v552_v44 = vadd.f32 %v551_v30, %v550_v19  ;;  %vm713_vm3 = vweird.f32 %v5257_v26  ;;  %v623_v20 = vor.u32 1.1754944e-38, %v622_v43 }
  0xd4   : > { %v5259_v31 = vpop.eup %5258  ;;  %v608_v36 = vadd.f32 %v607_v27, %v606_v16  ;;  %v449_v37 = vrot.slane %v448_v29, 4  ;;  %5260 = vpow2.f32 %v517_v28  ;;  %vm714_vm7 = vmor %vm712_vm5, %vm713_vm3  ;;  %v719_v16 = vor.u32 1.1754944e-38, %v718_v39 }
  0xd5   : > { %v612_v40 = vmul.f32 %v5259_v31, %v5713_v60  ;;  %v709_v41 = vsub.f32 1.0, %v708_v32  ;;  %v553_v54 = vrot.slane %v552_v44, 2  ;;  %5262 = vpow2.f32 %v515_v35 }
  0xd6   : > { %v450_v45 = vmax.f32 %v448_v29, %v449_v37  ;;  %v609_v50 = vrot.slane %v608_v36, 1  ;;  %vm617_vm4 = vweird.f32 %v5259_v31 }
  0xd7   : > { %v613_v47 = vsub.f32 1.0, %v612_v40  ;;  %v710_v53 = vmul.f32 %v5257_v26, %v709_v41  ;;  %v554_v11 = vadd.f32 %v553_v54, %v552_v44  ;;  %vm618_vm9 = vmor %vm616_vm6, %vm617_vm4 }
  0xd8   : > { %v451_v58 = vrot.slane %v450_v45, 2  ;;  %v5739_v0 = vpop.f32.mrf.mxu0  ;;  %v5741_v2 = vadd.f32 %v609_v50, %v608_v36 }
  0xd9   : > { %8176 = vst [vmem:[#allocation19_spill] sm:$0xff] %v5739_v0  ;;  %v614_v1 = vmul.f32 %v5259_v31, %v613_v47  ;;  %771 = vrot.lane.b32.xlu2 %v5739_v0, %s5414_s30  ;;  %v711_v5 = vadd.f32 %v5257_v26, %v710_v53  ;;  %v555_v21 = vrot.slane %v554_v11, 1 }
  0xda   : > { %v452_v13 = vmax.f32 %v450_v45, %v451_v58  ;;  %5264 = vrcp.f32 %v5741_v2  ;;  %v5748_v22 = vpop.eup %5260  ;;  %v732_v47 = vand.u32 2147483647, %v5741_v2  ;;  %vm728_vm12 = vweird.f32 %v5741_v2 }
  0xdb   : > { %v615_v17 = vadd.f32 %v5259_v31, %v614_v1  ;;  %v715_v19 = vsel %vm714_vm7, %v5257_v26, %v711_v5  ;;  %v5750_v55 = vpop.eup %5262  ;;  %v5753_v32 = vadd.f32 %v555_v21, %v554_v11  ;;  %v558_v33 = vsel %vm418_vm2, %v5748_v22, 0.0 }
  0xdc   : > { %v453_v27 = vrot.slane %v452_v13, 1  ;;  %v720_v28 = vsel %vm717_vm8, %v719_v16, %v715_v19  ;;  %v734_v5 = vand.u32 2147483648, %v5741_v2  ;;  %vm5780_vm13 = vcmp.eq.f32.partialorder %v732_v47, 8.507059e+37 }
  0xdd   : > { %v619_v29 = vsel %vm618_vm9, %v5259_v31, %v615_v17  ;;  %v722_v60 = vmul.f32 %v5670_v63, %v720_v28  ;;  %5266 = vrcp.f32 %v5753_v32  ;;  %v557_v63 = vsel %vm418_vm2, %v5750_v55, 0.0 }
  0xde   : > { %v624_v30 = vsel %vm621_vm10, %v623_v20, %v619_v29  ;;  %v454_v35 = vmax.f32 %v452_v13, %v453_v27  ;;  %v559_v44 = vadd.f32 %v558_v33, %v557_v63  ;;  %v465_v13 = vsel %vm418_vm2, %v5608_v9, -inf }
  0xdf   : > { %v625_v26 = vmul.f32 %v5676_v4, %v624_v30  ;;  %886 = vperm.xlu0 %5158, %v722_v60   ;;  %v626_v36 = vmul.f32 %v5666_v59, %v624_v30  ;;  %v455_v4 = vsel %vm418_vm2, %v5739_v0, -inf  ;;  %v721_v19 = vmul.f32 %v5668_v61, %v720_v28 }
  0xe0   : > { %v5265_v31 = vpop.eup %5264  ;;  %v498_v37 = vsub.f32 %v5724_v18, %v454_v35  ;;  %v5761_v39 = vpop.f32.mrf.mxu0  ;;  %v497_v40 = vsub.f32 %v5697_v46, %v454_v35  ;;  %v560_v54 = vrot.slane %v559_v44, 4  ;;  %v636_v30 = vand.u32 2147483647, %v5753_v32 }
  0xe1   : > { %821 = vperm.xlu1 %5156, %v625_v26   ;;  %8177 = vst [vmem:[#allocation20_spill] sm:$0xff] %v5761_v39  ;;  %v456_v41 = vsel %vm418_vm2, %v5761_v39, -inf  ;;  %826 = vperm.xlu2 %5157, %v626_v36   ;;  %v724_v59 = vmul.f32 %v5265_v31, %v5741_v2  ;;  %vm729_vm11 = vweird.f32 %v5265_v31  ;;  %v638_v2 = vand.u32 2147483648, %v5753_v32  ;;  %v5815_v35 = vpop.xlane.xlu2 %1829 }
  0xe2   : > { %v521_v42 = vmul.f32 1.442695, %v498_v37  ;;  %v457_v43 = vmax.f32 %v455_v4, %v456_v41  ;;  %v519_v50 = vmul.f32 1.442695, %v497_v40  ;;  %v561_v17 = vadd.f32 %v560_v54, %v559_v44  ;;  %vm5788_vm14 = vmor %vm728_vm12, %vm729_vm11 }
  0xe3   : > { %v725_v45 = vsub.f32 1.0, %v724_v59  ;;  %v5267_v58 = vpop.eup %5266  ;;  %v735_v33 = vor.u32 1.1754944e-38, %v734_v5  ;;  %vm632_vm3 = vweird.f32 %v5753_v32  ;;  %vm637_vm5 = vcmp.eq.f32.partialorder %v636_v30, 8.507059e+37 }
  0xe4   : > { %5268 = vpow2.f32 %v521_v42  ;;  %v458_v53 = vrot.slane %v457_v43, 4  ;;  %v628_v16 = vmul.f32 %v5267_v58, %v5753_v32  ;;  %v562_v26 = vrot.slane %v561_v17, 2 }
  0xe5   : > { %v726_v1 = vmul.f32 %v5265_v31, %v725_v45  ;;  %5270 = vpow2.f32 %v519_v50  ;;  %vm633_vm15 = vweird.f32 %v5267_v58  ;;  %v639_v47 = vor.u32 1.1754944e-38, %v638_v2 }
  0xe6   : > { %v459_v11 = vmax.f32 %v457_v43, %v458_v53  ;;  %v629_v60 = vsub.f32 1.0, %v628_v16  ;;  %v563_v42 = vadd.f32 %v562_v26, %v561_v17  ;;  %vm634_vm4 = vmor %vm632_vm3, %vm633_vm15 }
  0xe7   : > { %773 = vrot.lane.b32.xlu0 %v5761_v39, %s5414_s30  ;;  %v727_v20 = vadd.f32 %v5265_v31, %v726_v1 }
  0xe8   : > { %v460_v27 = vrot.slane %v459_v11, 2  ;;  %v5784_v29 = vpop.f32.mrf.mxu0  ;;  %v630_v40 = vmul.f32 %v5267_v58, %v629_v60  ;;  %v564_v50 = vrot.slane %v563_v42, 1 }
  0xe9   : > { %8180 = vst [vmem:[#allocation21_spill] sm:$0xff] %v5784_v29  ;;  %v464_v61 = vsel %vm418_vm2, %v5784_v29, -inf  ;;  %881 = vperm.xlu2 %5157, %v721_v19   ;;  %775 = vrot.lane.b32.xlu1 %v5784_v29, %s5414_s30  ;;  %v731_v28 = vsel %vm5788_vm14, %v5265_v31, %v727_v20 }
  0xea   : > { %v5799_v36 = vpop.eup %5268  ;;  %v461_v37 = vmax.f32 %v459_v11, %v460_v27  ;;  %v466_v63 = vmax.f32 %v464_v61, %v465_v13  ;;  %v736_v59 = vsel %vm5780_vm13, %v735_v33, %v731_v28  ;;  %v631_v44 = vadd.f32 %v5267_v58, %v630_v40 }
  0xeb   : > { %v5801_v4 = vpop.eup %5270  ;;  %v567_v41 = vsel %vm418_vm2, %v5799_v36, 0.0  ;;  %v738_v32 = vmul.f32 %v5703_v52, %v736_v59  ;;  %v737_v13 = vmul.f32 %v5699_v49, %v736_v59  ;;  %v565_v16 = vadd.f32 %v564_v50, %v563_v42 }
  0xec   : > { %v462_v43 = vrot.slane %v461_v37, 1  ;;  %v467_v31 = vrot.slane %v466_v63, 4  ;;  %v566_v45 = vsel %vm418_vm2, %v5801_v4, 0.0  ;;  %v635_v5 = vsel %vm634_vm4, %v5267_v58, %v631_v44 }
  0xed   : > { %v568_v53 = vadd.f32 %v567_v41, %v566_v45  ;;  %v640_v11 = vsel %vm637_vm5, %v639_v47, %v635_v5  ;;  %5272 = vrcp.f32 %v565_v16  ;;  %v652_v45 = vand.u32 2147483647, %v565_v16 }
  0xee   : > { %v463_v54 = vmax.f32 %v461_v37, %v462_v43  ;;  %v468_v1 = vmax.f32 %v466_v63, %v467_v31  ;;  %v641_v27 = vmul.f32 %v5715_v62, %v640_v11  ;;  %v642_v28 = vmul.f32 %v5709_v56, %v640_v11 }
  0xef   : > { %v569_v17 = vrot.slane %v568_v53, 4  ;;  %v654_v56 = vand.u32 2147483648, %v565_v16  ;;  %vm648_vm7 = vweird.f32 %v565_v16  ;;  %vm653_vm9 = vcmp.eq.f32.partialorder %v652_v45, 8.507059e+37 }
  0xf0   : > { %v499_v19 = vsub.f32 %v5739_v0, %v463_v54  ;;  %v500_v20 = vsub.f32 %v5761_v39, %v463_v54  ;;  %v469_v21 = vrot.slane %v468_v1, 2  ;;  %831 = vperm.xlu0 %5158, %v641_v27  }
  0xf1   : > { %896 = vperm.xlu2 %5157, %v738_v32   ;;  %891 = vperm.xlu1 %5156, %v737_v13   ;;  %v570_v52 = vadd.f32 %v569_v17, %v568_v53  ;;  %v5828_v53 = vpop.xlane.xlu1 %1826  ;;  %v5832_v32 = vpop.xlane.xlu2 %1838  ;;  %v655_v17 = vor.u32 1.1754944e-38, %v654_v56 }
  0xf2   : > { %v523_v60 = vmul.f32 1.442695, %v499_v19  ;;  %v525_v30 = vmul.f32 1.442695, %v500_v20  ;;  %v470_v58 = vmax.f32 %v468_v1, %v469_v21  ;;  %v5830_v1 = vpop.xlane.xlu0 %1823  ;;  %8183 = vst [vmem:[#allocation22_spill] sm:$0xff] %v5832_v32 }
  0xf3   : > { %v571_v26 = vrot.slane %v570_v52, 2  ;;  %v5273_v2 = vpop.eup %5272 }
  0xf4   : > { %5274 = vpow2.f32 %v523_v60  ;;  %v471_v49 = vrot.slane %v470_v58, 1  ;;  %v644_v63 = vmul.f32 %v5273_v2, %v565_v16  ;;  %vm649_vm6 = vweird.f32 %v5273_v2 }
  0xf5   : > { %5276 = vpow2.f32 %v525_v30  ;;  %v572_v33 = vadd.f32 %v571_v26, %v570_v52  ;;  %vm650_vm8 = vmor %vm648_vm7, %vm649_vm6 }
  0xf6   : > { %v472_v61 = vmax.f32 %v470_v58, %v471_v49  ;;  %v645_v43 = vsub.f32 1.0, %v644_v63 }
  0xf7   : > { %v573_v40 = vrot.slane %v572_v33, 1 }
  0xf8   : > { %v501_v62 = vsub.f32 %v5784_v29, %v472_v61  ;;  %v502_v37 = vsub.f32 %v5608_v9, %v472_v61  ;;  %v646_v54 = vmul.f32 %v5273_v2, %v645_v43 }
  0xf9   : > { %836 = vperm.xlu1 %5156, %v642_v28   ;;  %v574_v47 = vadd.f32 %v573_v40, %v572_v33  ;;  %v5844_v33 = vpop.xlane.xlu1 %1835  ;;  %v5848_v63 = vpop.xlane.xlu2 %1847 }
  0xfa   : > { %v5820_v41 = vpop.eup %5274  ;;  %v527_v59 = vmul.f32 1.442695, %v501_v62  ;;  %v529_v42 = vmul.f32 1.442695, %v502_v37  ;;  %v647_v11 = vadd.f32 %v5273_v2, %v646_v54  ;;  %8184 = vst [vmem:[#allocation23_spill] sm:$0xff] %v5844_v33 }
  0xfb   : > { %v5822_v31 = vpop.eup %5276  ;;  %v575_v44 = vsel %vm418_vm2, %v5820_v41, 0.0  ;;  %8186 = vst [vmem:[#allocation25_spill] sm:$0xff] %v5848_v63  ;;  %v668_v40 = vand.u32 2147483647, %v574_v47  ;;  %v5323_v63 = vld [vmem:[%s5518_s17 + $0x10] sm:$0xff] }
  0xfc   : > { %v576_v50 = vsel %vm418_vm2, %v5822_v31, 0.0  ;;  %5278 = vpow2.f32 %v527_v59  ;;  %v651_v19 = vsel %vm650_vm8, %v5273_v2, %v647_v11  ;;  %v670_v59 = vand.u32 2147483648, %v574_v47 }
  0xfd   : > { %v577_v5 = vadd.f32 %v576_v50, %v575_v44  ;;  %5280 = vpow2.f32 %v529_v42  ;;  %v656_v21 = vsel %vm653_vm9, %v655_v17, %v651_v19  ;;  %vm669_vm12 = vcmp.eq.f32.partialorder %v668_v40, 8.507059e+37 }
  0xfe   : > { %5282 = vrcp.f32 %v574_v47  ;;  %v657_v60 = vmul.f32 %v5750_v55, %v656_v21  ;;  %v658_v30 = vmul.f32 %v5748_v22, %v656_v21  ;;  %v5846_v55 = vpop.xlane.xlu0 %1832  ;;  %v671_v50 = vor.u32 1.1754944e-38, %v670_v59 }
  0xff   : > { %v578_v13 = vrot.slane %v577_v5, 4  ;;  %8185 = vst [vmem:[#allocation24_spill] sm:$0xff] %v5846_v55  ;;  %vm915_vm8 = vcmask 285696   ;;  %vm1017_vm9 = vcmask 1042432  }
 0x100   : > { %841 = vperm.xlu2 %5157, %v657_v60  }
 0x101   : > { %v579_v20 = vadd.f32 %v578_v13, %v577_v5  ;;  %846 = vperm.xlu1 %5156, %v658_v30   ;;  %v5856_v30 = vpop.xlane.xlu2 %1856 }
 0x102   : > { %v5834_v27 = vpop.eup %5278  ;;  %8189 = vst [vmem:[#allocation28_spill] sm:$0xff] %v5856_v30  ;;  %v5322_v30 = vld [vmem:[%s5518_s17] sm:$0xff] }
 0x103   : > { %v5838_v58 = vpop.eup %5280  ;;  %v580_v52 = vrot.slane %v579_v20, 2  ;;  %v584_v16 = vsel %vm418_vm2, %v5834_v27, 0.0 }
 0x104   : > { %v5283_v49 = vpop.eup %5282  ;;  %v585_v26 = vsel %vm418_vm2, %v5838_v58, 0.0  ;;  %vm664_vm2 = vweird.f32 %v574_v47 }
 0x105   : > { %v581_v61 = vadd.f32 %v580_v52, %v579_v20  ;;  %v586_v2 = vadd.f32 %v585_v26, %v584_v16  ;;  %v660_v28 = vmul.f32 %v5283_v49, %v574_v47  ;;  %vm665_vm10 = vweird.f32 %v5283_v49  ;;  %v5852_v20 = vpop.xlane.xlu1 %1844 }
 0x106   : > { %vm666_vm11 = vmor %vm664_vm2, %vm665_vm10  ;;  %8187 = vst [vmem:[#allocation26_spill] sm:$0xff] %v5852_v20  ;;  %v5854_v60 = vpop.xlane.xlu0 %1841  ;;  %vm1003_vm10 = vcmask 1042434   ;;  %vm1005_vm2 = vcmask 1043459  }
 0x107   : > { %v587_v22 = vrot.slane %v586_v2, 4  ;;  %v661_v62 = vsub.f32 1.0, %v660_v28  ;;  %v582_v37 = vrot.slane %v581_v61, 1  ;;  %8188 = vst [vmem:[#allocation27_spill] sm:$0xff] %v5854_v60 }
 0x109   : > { %v588_v42 = vadd.f32 %v587_v22, %v586_v2  ;;  %v662_v43 = vmul.f32 %v5283_v49, %v661_v62  ;;  %v583_v44 = vadd.f32 %v582_v37, %v581_v61  ;;  %v5862_v59 = vpop.xlane.xlu2 %1865 }
 0x10a   : > { %8192 = vst [vmem:[#allocation31_spill] sm:$0xff] %v5862_v59  ;;  %v5321_v59 = vld [vmem:[%s5518_s17 + $0x28] sm:$0xff] }
 0x10b   : > { %v589_v45 = vrot.slane %v588_v42, 2  ;;  %v663_v56 = vadd.f32 %v5283_v49, %v662_v43  ;;  %5284 = vrcp.f32 %v583_v44  ;;  %v684_v61 = vand.u32 2147483647, %v583_v44 }
 0x10c   : > { %vm680_vm14 = vweird.f32 %v583_v44 }
 0x10d   : > { %v590_v54 = vadd.f32 %v589_v45, %v588_v42  ;;  %v667_v5 = vsel %vm666_vm11, %v5283_v49, %v663_v56  ;;  %v686_v49 = vand.u32 2147483648, %v583_v44  ;;  %v5858_v28 = vpop.xlane.xlu1 %1853  ;;  %vm685_vm3 = vcmp.eq.f32.partialorder %v684_v61, 8.507059e+37 }
 0x10e   : > { %v672_v11 = vsel %vm669_vm12, %v671_v50, %v667_v5  ;;  %8190 = vst [vmem:[#allocation29_spill] sm:$0xff] %v5858_v28  ;;  %v5860_v37 = vpop.xlane.xlu0 %1850  ;;  %vm1007_vm11 = vcmask 1044484   ;;  %vm1009_vm12 = vcmask 1045509  }
 0x10f   : > { %v591_v13 = vrot.slane %v590_v54, 1  ;;  %v673_v17 = vmul.f32 %v5801_v4, %v672_v11  ;;  %v674_v19 = vmul.f32 %v5799_v36, %v672_v11  ;;  %v687_v2 = vor.u32 1.1754944e-38, %v686_v49  ;;  %8191 = vst [vmem:[#allocation30_spill] sm:$0xff] %v5860_v37 }
 0x111   : > { %v5285_v21 = vpop.eup %5284  ;;  %851 = vperm.xlu2 %5157, %v673_v17   ;;  %856 = vperm.xlu0 %5158, %v674_v19   ;;  %v592_v47 = vadd.f32 %v591_v13, %v590_v54 }
 0x112   : > { %v676_v52 = vmul.f32 %v5285_v21, %v583_v44  ;;  %vm681_vm13 = vweird.f32 %v5285_v21 }
 0x113   : > { %5286 = vrcp.f32 %v592_v47  ;;  %vm682_vm15 = vmor %vm680_vm14, %vm681_vm13  ;;  %v702_v44 = vand.u32 2147483648, %v592_v47  ;;  %v700_v50 = vand.u32 2147483647, %v592_v47  ;;  %vm696_vm5 = vweird.f32 %v592_v47 }
 0x114   : > { %v677_v16 = vsub.f32 1.0, %v676_v52  ;;  %vm1011_vm13 = vcmask 1046534   ;;  %vm1013_vm14 = vcmask 1047559  }
 0x115   : > { %v703_v5 = vor.u32 1.1754944e-38, %v702_v44  ;;  %vm701_vm7 = vcmp.eq.f32.partialorder %v700_v50, 8.507059e+37  ;;  %v5866_v13 = vpop.xlane.xlu1 %1862 }
 0x116   : > { %v678_v26 = vmul.f32 %v5285_v21, %v677_v16  ;;  %8193 = vst [vmem:[#allocation32_spill] sm:$0xff] %v5866_v13  ;;  %v5868_v19 = vpop.xlane.xlu0 %1859 }
 0x117   : > { %8194 = vst [vmem:[#allocation33_spill] sm:$0xff] %v5868_v19 }
 0x118   : > { %v679_v4 = vadd.f32 %v5285_v21, %v678_v26 }
 0x119   : > { %v5287_v36 = vpop.eup %5286 }
 0x11a   : > { %v683_v22 = vsel %vm682_vm15, %v5285_v21, %v679_v4  ;;  %v692_v62 = vmul.f32 %v5287_v36, %v592_v47  ;;  %vm697_vm4 = vweird.f32 %v5287_v36  ;;  %v5872_v21 = vpop.permute.xlu2 %3285  ;;  %vm1427_vm15 = vcmask 125952  }
 0x11b   : > { %v688_v40 = vsel %vm685_vm3, %v687_v2, %v683_v22  ;;  %vm698_vm6 = vmor %vm696_vm5, %vm697_vm4  ;;  %8195 = vst [vmem:[#allocation34_spill] sm:$0xff] %v5872_v21  ;;  %v5320_v21 = vld [vmem:[%s5518_s17 + $0x18] sm:$0xff] }
 0x11c   : > { %v690_v42 = vmul.f32 %v5822_v31, %v688_v40  ;;  %v689_v43 = vmul.f32 %v5820_v41, %v688_v40  ;;  %v693_v45 = vsub.f32 1.0, %v692_v62 }
 0x11d   : > { %v5874_v52 = vpop.permute.xlu1 %3279 }
 0x11e   : > { %866 = vperm.xlu2 %5157, %v690_v42   ;;  %861 = vperm.xlu1 %5156, %v689_v43   ;;  %v694_v56 = vmul.f32 %v5287_v36, %v693_v45  ;;  %8196 = vst [vmem:[#allocation35_spill] sm:$0xff] %v5874_v52  ;;  %v5876_v47 = vpop.xlane.xlu0 %1868 }
 0x11f   : > { %8197 = vst [vmem:[#allocation36_spill] sm:$0xff] %v5876_v47 }
 0x120   : > { %v695_v54 = vadd.f32 %v5287_v36, %v694_v56 }
 0x122   : > { %v699_v11 = vsel %vm698_vm6, %v5287_v36, %v695_v54  ;;  %v5878_v16 = vpop.permute.xlu2 %777 }
 0x123   : > { %v704_v17 = vsel %vm701_vm7, %v703_v5, %v699_v11  ;;  %vm1620_vm7 = vcmask 130048  }
 0x124   : > { %v706_v41 = vmul.f32 %v5838_v58, %v704_v17  ;;  %v705_v31 = vmul.f32 %v5834_v27, %v704_v17 }
 0x125   : > { %v782_v49 = vpop.permute.xlu1 %781 }
 0x126   : > { %876 = vperm.xlu1 %5156, %v706_v41   ;;  %871 = vperm.xlu0 %5158, %v705_v31   ;;  %v756_v26 = vpop.permute.xlu0 %755 }
 0x127   : > { %v803_v37 = vsel %vm304_vm0, %v5322_v30, %v756_v26 }
 0x12a   : > { %v784_v61 = vpop.permute.xlu2 %783 }
 0x12d   : > { %v760_v4 = vpop.permute.xlu1 %759 }
 0x12e   : > { %v758_v36 = vpop.permute.xlu0 %757  ;;  %v805_v20 = vsel %vm304_vm0, %v5323_v63, %v760_v4 }
 0x132   : > { %v764_v2 = vpop.permute.xlu2 %763 }
 0x135   : > { %v762_v58 = vpop.permute.xlu1 %761 }
 0x136   : > { %v780_v22 = vpop.permute.xlu0 %779  ;;  %v806_v6 = vsel %vm304_vm0, %v5320_v21, %v762_v58  ;;  %v5324_v21 = vld [vmem:[%s5518_s17 + $0x20] sm:$0xff] }
 0x137   : > { %v807_v58 = vsel %vm304_vm0, %v5324_v21, %v764_v2  ;;  %v5330_v21 = vld [vmem:[%s5518_s17 + $0x78] sm:$0xff] }
 0x13a   : > { %v766_v62 = vpop.permute.xlu2 %765 }
 0x13b   : > { %v808_v13 = vsel %vm304_vm0, %v5321_v59, %v766_v62  ;;  %v5325_v62 = vld [vmem:[%s5518_s17 + $0x8] sm:$0xff] }
 0x13e   : > { %v5880_v40 = vpop.permute.xlu0 %785 }
 0x142   : > { %v5882_v42 = vpop.permute.xlu2 %771 }
 0x143   : > { %v770_v27 = vpop.permute.xlu1 %769 }
 0x144   : > { %v810_v60 = vsel %vm304_vm0, %v5571_v48, %v770_v27 }
 0x146   : > { %v768_v45 = vpop.permute.xlu0 %767 }
 0x14a   : > { %v827_v44 = vpop.permute.xlu2 %826 }
 0x151   : > { %v887_v50 = vpop.permute.xlu0 %886 }
 0x152   : > { %v882_v54 = vpop.permute.xlu2 %881 }
 0x153   : > { %v822_v43 = vpop.permute.xlu1 %821 }
 0x154   : > { %v899_v32 = vmul.f32 %v822_v43, %v803_v37  ;;  %v991_v37 = vld [vmem:[%s8071_s3 + $0x18] sm:$0xff] }
 0x159   : > { %v5886_v11 = vpop.permute.xlu0 %773 }
 0x15a   : > { %v897_v17 = vpop.permute.xlu2 %896 }
 0x15b   : > { %v5884_v56 = vpop.permute.xlu1 %775 }
 0x162   : > { %v832_v31 = vpop.permute.xlu0 %831  ;;  %v842_v14 = vpop.permute.xlu2 %841 }
 0x163   : > { %v892_v5 = vpop.permute.xlu1 %891  ;;  %v901_v55 = vmul.f32 %v832_v31, %v805_v20  ;;  %v903_v63 = vmul.f32 %v842_v14, %v807_v58  ;;  %v5328_v14 = vld [vmem:[%s5518_s17 + $0x68] sm:$0xff] }
 0x165   : > { %v934_v27 = vsel %vm915_vm8, %v903_v63, 0.0 }
 0x16b   : > { %v837_v41 = vpop.permute.xlu1 %836  ;;  %v852_v19 = vpop.permute.xlu2 %851 }
 0x16c   : > { %v902_v28 = vmul.f32 %v837_v41, %v806_v6  ;;  %v804_v6 = vsel %vm304_vm0, %v5325_v62, %v758_v36  ;;  %v5326_v41 = vld [vmem:[%s5518_s17 + $0x30] sm:$0xff]  ;;  %v989_v62 = vld [vmem:[%s8071_s3 + $0x8] sm:$0xff] }
 0x16d   : > { %v809_v30 = vsel %vm304_vm0, %v5326_v41, %v768_v45  ;;  %v900_v26 = vmul.f32 %v827_v44, %v804_v6  ;;  %v990_v45 = vld [vmem:[%s8071_s3 + $0x10] sm:$0xff] }
 0x16e   : > { %v905_v48 = vmul.f32 %v852_v19, %v809_v30  ;;  %v916_v19 = vsel %vm915_vm8, %v899_v32, 0.0 }
 0x170   : > { %v943_v44 = vsel %vm915_vm8, %v905_v48, 0.0 }
 0x173   : > { %v847_v52 = vpop.permute.xlu1 %846 }
 0x174   : > { %v904_v33 = vmul.f32 %v847_v52, %v808_v13  ;;  %v926_v13 = vsel %vm915_vm8, %v902_v28, 0.0  ;;  %v5327_v52 = vld [vmem:[%s5518_s17 + $0x70] sm:$0xff]  ;;  %v925_v28 = vsel %vm915_vm8, %v901_v55, 0.0 }
 0x175   : > { %v817_v4 = vsel %vm304_vm0, %v5327_v52, %v784_v61  ;;  %v927_v43 = vadd.f32 %v926_v13, %v925_v28 }
 0x176   : > { %v935_v20 = vsel %vm915_vm8, %v904_v33, 0.0  ;;  %v5329_v33 = vld [vmem:[%s5518_s17 + $0x60] sm:$0xff]  ;;  %v913_v32 = vmul.f32 %v892_v5, %v817_v4  ;;  %v812_v5 = vsel %vm304_vm0, %v5591_v3, %v5886_v11 }
 0x177   : > { %v815_v36 = vsel %vm304_vm0, %v5329_v33, %v780_v22  ;;  %v936_v55 = vadd.f32 %v935_v20, %v934_v27  ;;  %v818_v22 = vsel %vm304_vm0, %v5330_v21, %v5880_v40  ;;  %v928_v30 = vrot.slane %v927_v43, 4  ;;  %v988_v40 = vld [vmem:[%s8071_s3] sm:$0xff] }
 0x178   : > { %v867_v31 = vpop.permute.xlu2 %866  ;;  %v914_v6 = vmul.f32 %v897_v17, %v818_v22  ;;  %v979_v17 = vsel %vm915_vm8, %v913_v32, 0.0 }
 0x179   : > { %v908_v63 = vmul.f32 %v867_v31, %v812_v5  ;;  %v937_v48 = vrot.slane %v936_v55, 4  ;;  %v5334_v31 = vld [vmem:[%s5518_s17 + $0x58] sm:$0xff] }
 0x17a   : > { %v980_v20 = vsel %vm915_vm8, %v914_v6, 0.0  ;;  %v814_v21 = vsel %vm304_vm0, %v5334_v31, %v5878_v16 }
 0x17b   : > { %v938_v28 = vadd.f32 %v937_v48, %v936_v55 }
 0x17d   : > { %v939_v32 = vrot.slane %v938_v28, 2 }
 0x183   : > { %v857_v47 = vpop.permute.xlu0 %856 }
 0x184   : > { %v906_v59 = vmul.f32 %v857_v47, %v810_v60  ;;  %v992_v60 = vld [vmem:[%s8071_s3 + $0x20] sm:$0x7]  ;;  %v816_v47 = vsel %vm304_vm0, %v5328_v14, %v782_v49  ;;  %v917_v49 = vsel %vm915_vm8, %v900_v26, 0.0  ;;  %v929_v14 = vadd.f32 %v928_v30, %v927_v43 }
 0x185   : > { %5026 = vmatpush.msk.msrb.mxu1 %vm1017_vm9, %v992_v60  ;;  %v912_v2 = vmul.f32 %v887_v50, %v816_v47  ;;  %v911_v50 = vmul.f32 %v882_v54, %v815_v36  ;;  %v918_v58 = vadd.f32 %v917_v49, %v916_v19  ;;  %v5331_v54 = vld [vmem:[%s5518_s17 + $0x40] sm:$0xff]  ;;  %v5949_v19 = vld [vmem:[%s5541_s26 + $0x48] sm:$0xff] }
 0x186   : > { %v944_v61 = vsel %vm915_vm8, %v906_v59, 0.0  ;;  %v811_v26 = vsel %vm304_vm0, %v5331_v54, %v5882_v42  ;;  %v953_v42 = vsel %vm915_vm8, %v908_v63, 0.0  ;;  %v930_v49 = vrot.slane %v929_v14, 2 }
 0x187   : > { %1033 = vmatpush.msrb.mxu1 %v991_v37  ;;  %v945_v59 = vadd.f32 %v944_v61, %v943_v44  ;;  %v971_v41 = vsel %vm915_vm8, %v912_v2, 0.0  ;;  %v970_v3 = vsel %vm915_vm8, %v911_v50, 0.0  ;;  %v919_v11 = vrot.slane %v918_v58, 4  ;;  %v5953_v2 = vld [vmem:[%s5541_s26 + $0x40] sm:$0xff]  ;;  %v5335_v50 = vld [vmem:[%s5518_s17 + $0x50] sm:$0xff]  ;;  %s5416_s17 = smov 124  }
 0x188   : > { %v972_v60 = vadd.f32 %v971_v41, %v970_v3  ;;  %v981_v37 = vadd.f32 %v980_v20, %v979_v17  ;;  %v813_v55 = vsel %vm304_vm0, %v5335_v50, %v5884_v56  ;;  %v940_v54 = vadd.f32 %v939_v32, %v938_v28 }
 0x189   : > { %1034 = vmatpush.msrb.mxu1 %v990_v45  ;;  %v946_v52 = vrot.slane %v945_v59, 4  ;;  %v920_v33 = vadd.f32 %v919_v11, %v918_v58  ;;  %vm1001_vm0 = vcmask 1041409  }
 0x18a   : > { %v973_v27 = vrot.slane %v972_v60, 4  ;;  %v982_v45 = vrot.slane %v981_v37, 4  ;;  %v941_v20 = vrot.slane %v940_v54, 1 }
 0x18b   : > { %1035 = vmatpush.msrb.mxu1 %v989_v62  ;;  %v947_v36 = vadd.f32 %v946_v52, %v945_v59  ;;  %v921_v22 = vrot.slane %v920_v33, 2 }
 0x18c   : > { %v974_v6 = vadd.f32 %v973_v27, %v972_v60  ;;  %v983_v63 = vadd.f32 %v982_v45, %v981_v37 }
 0x18d   : > { %1036 = vmatpush.msrb.mxu1 %v988_v40  ;;  %v948_v58 = vrot.slane %v947_v36, 2  ;;  %v931_v40 = vadd.f32 %v930_v49, %v929_v14  ;;  %v922_v16 = vadd.f32 %v921_v22, %v920_v33 }
 0x18e   : > { %v975_v3 = vrot.slane %v974_v6, 2  ;;  %v984_v56 = vrot.slane %v983_v63, 2 }
 0x18f   : > { %1730 = vmatpush.msra.mxu1 %v5949_v19  ;;  %v949_v48 = vadd.f32 %v948_v58, %v947_v36  ;;  %v932_v52 = vrot.slane %v931_v40, 1  ;;  %v923_v60 = vrot.slane %v922_v16, 1 }
 0x190   : > { %v862_v13 = vpop.permute.xlu1 %861  ;;  %v985_v14 = vadd.f32 %v984_v56, %v983_v63  ;;  %v5973_v63 = vld [vmem:[%s5541_s26 + $0x70] sm:$0xff] }
 0x191   : > { %v907_v4 = vmul.f32 %v862_v13, %v811_v26  ;;  %1731 = vmatpush.msra.mxu1 %v5953_v2  ;;  %v933_v28 = vadd.f32 %v932_v52, %v931_v40  ;;  %v924_v45 = vadd.f32 %v923_v60, %v922_v16 }
 0x193   : > { %v952_v47 = vsel %vm915_vm8, %v907_v4, 0.0 }
 0x194   : > { %v954_v61 = vadd.f32 %v953_v42, %v952_v47  ;;  %v950_v42 = vrot.slane %v949_v48, 1 }
 0x196   : > { %v955_v43 = vrot.slane %v954_v61, 4  ;;  %v951_v33 = vadd.f32 %v950_v42, %v949_v48 }
 0x198   : > { %v956_v44 = vadd.f32 %v955_v43, %v954_v61  ;;  %v877_v59 = vpop.permute.xlu1 %876  ;;  %v872_v62 = vpop.permute.xlu0 %871  ;;  %v976_v61 = vadd.f32 %v975_v3, %v974_v6  ;;  %v942_v43 = vadd.f32 %v941_v20, %v940_v54 }
 0x199   : > { %v910_v41 = vmul.f32 %v877_v59, %v814_v21  ;;  %v909_v30 = vmul.f32 %v872_v62, %v813_v55  ;;  %v986_v21 = vrot.slane %v985_v14, 1 }
 0x19a   : > { %v957_v5 = vrot.slane %v956_v44, 2  ;;  %v977_v49 = vrot.slane %v976_v61, 1 }
 0x19b   : > { %v962_v26 = vsel %vm915_vm8, %v910_v41, 0.0  ;;  %v961_v17 = vsel %vm915_vm8, %v909_v30, 0.0  ;;  %v987_v62 = vadd.f32 %v986_v21, %v985_v14  ;;  %v5969_v30 = vld [vmem:[%s5541_s26 + $0x78] sm:$0xff] }
 0x19c   : > { %v963_v13 = vadd.f32 %v962_v26, %v961_v17  ;;  %v958_v11 = vadd.f32 %v957_v5, %v956_v44  ;;  %v1002_v44 = vsel %vm1001_vm0, %v933_v28, %v924_v45  ;;  %v978_v58 = vadd.f32 %v977_v49, %v976_v61 }
 0x19d   : > { %v1004_v22 = vsel %vm1003_vm10, %v942_v43, %v1002_v44 }
 0x19e   : > { %v964_v4 = vrot.slane %v963_v13, 4  ;;  %v959_v37 = vrot.slane %v958_v11, 1  ;;  %v1006_v55 = vsel %vm1005_vm2, %v951_v33, %v1004_v22 }
 0x1a0   : > { %v965_v47 = vadd.f32 %v964_v4, %v963_v13  ;;  %v960_v32 = vadd.f32 %v959_v37, %v958_v11 }
 0x1a2   : > { %v966_v27 = vrot.slane %v965_v47, 2  ;;  %v1008_v59 = vsel %vm1007_vm11, %v960_v32, %v1006_v55 }
 0x1a4   : > { %v967_v36 = vadd.f32 %v966_v27, %v965_v47 }
 0x1a6   : > { %v968_v31 = vrot.slane %v967_v36, 1 }
 0x1a8   : > { %v969_v50 = vadd.f32 %v968_v31, %v967_v36 }
 0x1aa   : > { %v1010_v6 = vsel %vm1009_vm12, %v969_v50, %v1008_v59 }
 0x1ab   : > { %v1012_v5 = vsel %vm1011_vm13, %v978_v58, %v1010_v6 }
 0x1ac   : > { %v1014_v41 = vsel %vm1013_vm14, %v987_v62, %v1012_v5 }
 0x1ad   : > { %5027 = vmatmul.msk.f32.vlgmr.msrb.gmra.mxu1 %vm915_vm8, %v1014_v41 }
 0x1ae   : > { %1799 = vmatpush.msrb.mxu1 %v5969_v30 }
 0x1b0   : > { %1800 = vmatpush.msrb.mxu1 %v5973_v63 }
 0x22a   : > { %v1038_v40 = vpop.f32.mrf.mxu1 }
 0x22b   : > { %v1042_v54 = vrot.slane %v1038_v40, 4 }
 0x22d   : > { %1047 = vrot.lane.b32.xlu0 %v1042_v54, %s5416_s17 }
 0x29f   : > { %v1048_v26 = vpop.permute.xlu0 %1047 }
 0x2a0   : > { %v1050_v17 = vadd.f32 %v1048_v26, %v1038_v40 }
 0x2a2   : > { %v1059_v16 = vperm.slane %v1050_v17, 0  ;;  %v1053_v48 = vrot.slane %v1050_v17, 2  ;;  %v1052_v13 = vrot.slane %v1050_v17, 1  ;;  %v1054_v56 = vrot.slane %v1050_v17, 3 }
 0x2a3   : > { %v1056_v52 = vrot.slane %v1050_v17, 5  ;;  %v1055_v4 = vrot.slane %v1050_v17, 4  ;;  %v1057_v47 = vrot.slane %v1050_v17, 6  ;;  %v1058_v61 = vrot.slane %v1050_v17, 7 }
 0x2a4   : > { %1067 = vrot.lane.b32.xlu1 %v1059_v16, %s5417_s23  ;;  %v1061_v3 = vperm.slane %v1053_v48, 0  ;;  %v1060_v11 = vperm.slane %v1052_v13, 0  ;;  %v1062_v20 = vperm.slane %v1054_v56, 0 }
 0x2a5   : > { %v1064_v60 = vperm.slane %v1056_v52, 0  ;;  %v1063_v42 = vperm.slane %v1055_v4, 0  ;;  %v1065_v37 = vperm.slane %v1057_v47, 0  ;;  %v1066_v14 = vperm.slane %v1058_v61, 0 }
 0x2a6   : > { %1071 = vrot.lane.b32.xlu0 %v1061_v3, %s5417_s23  ;;  %1069 = vrot.lane.b32.xlu2 %v1060_v11, %s5417_s23 }
 0x2ac   : > { %1073 = vrot.lane.b32.xlu1 %v1062_v20, %s5417_s23 }
 0x2ae   : > { %1077 = vrot.lane.b32.xlu0 %v1064_v60, %s5417_s23  ;;  %1075 = vrot.lane.b32.xlu2 %v1063_v42, %s5417_s23 }
 0x2b4   : > { %1079 = vrot.lane.b32.xlu1 %v1065_v37, %s5417_s23 }
 0x2b6   : > { %1081 = vrot.lane.b32.xlu2 %v1066_v14, %s5417_s23 }
 0x300   : > { %v1070_v28 = vpop.permute.xlu2 %1069 }
 0x301   : > { %v1093_v27 = vadd.f32 %v1070_v28, %v5634_v25  ;;  %v1094_v44 = vadd.f32 %v1070_v28, %v5651_v38  ;;  %v8224_v38 = vld [vmem:[#allocation30_spill] sm:$0xff] }
 0x303   : > { %1127 = vrot.lane.b32.xlu2 %v1093_v27, %s5416_s17 }
 0x308   : > { %v1076_v32 = vpop.permute.xlu2 %1075 }
 0x309   : > { %v1099_v21 = vadd.f32 %v1076_v32, %v5739_v0  ;;  %v1100_v6 = vadd.f32 %v1076_v32, %v5761_v39 }
 0x310   : > { %v1082_v62 = vpop.permute.xlu2 %1081 }
 0x311   : > { %v1105_v41 = vadd.f32 %v1082_v62, %v5632_v23  ;;  %v1106_v17 = vadd.f32 %v1082_v62, %v5644_v34 }
 0x316   : > { %v1068_v43 = vpop.permute.xlu1 %1067 }
 0x317   : > { %v1091_v45 = vadd.f32 %v1068_v43, %v5606_v8  ;;  %v1092_v33 = vadd.f32 %v1068_v43, %v5618_v12 }
 0x318   : > { %v1072_v36 = vpop.permute.xlu0 %1071 }
 0x319   : > { %v1096_v49 = vadd.f32 %v1072_v36, %v5690_v24  ;;  %1125 = vrot.lane.b32.xlu1 %v1092_v33, %s5416_s17  ;;  %1123 = vrot.lane.b32.xlu0 %v1091_v45, %s5416_s17  ;;  %v1095_v31 = vadd.f32 %v1072_v36, %v5662_v57 }
 0x31b   : > { %1133 = vrot.lane.b32.xlu2 %v1096_v49, %s5416_s17 }
 0x31e   : > { %v1074_v22 = vpop.permute.xlu1 %1073 }
 0x31f   : > { %v1097_v55 = vadd.f32 %v1074_v22, %v5697_v46  ;;  %v1098_v58 = vadd.f32 %v1074_v22, %v5724_v18  ;;  %v8221_v46 = vld [vmem:[#allocation25_spill] sm:$0xff] }
 0x320   : > { %v1078_v50 = vpop.permute.xlu0 %1077 }
 0x321   : > { %1131 = vrot.lane.b32.xlu1 %v1095_v31, %s5416_s17  ;;  %1129 = vrot.lane.b32.xlu0 %v1094_v44, %s5416_s17  ;;  %v1102_v59 = vadd.f32 %v1078_v50, %v5608_v9  ;;  %v1101_v5 = vadd.f32 %v1078_v50, %v5784_v29 }
 0x323   : > { %1139 = vrot.lane.b32.xlu2 %v1099_v21, %s5416_s17 }
 0x326   : > { %v1080_v40 = vpop.permute.xlu1 %1079 }
 0x327   : > { %v1103_v54 = vadd.f32 %v1080_v40, %v5626_v15  ;;  %v1104_v26 = vadd.f32 %v1080_v40, %v5614_v10 }
 0x329   : > { %1137 = vrot.lane.b32.xlu1 %v1098_v58, %s5416_s17  ;;  %1135 = vrot.lane.b32.xlu0 %v1097_v55, %s5416_s17 }
 0x32b   : > { %1145 = vrot.lane.b32.xlu2 %v1102_v59, %s5416_s17 }
 0x331   : > { %1143 = vrot.lane.b32.xlu1 %v1101_v5, %s5416_s17  ;;  %1141 = vrot.lane.b32.xlu0 %v1100_v6, %s5416_s17 }
 0x333   : > { %1151 = vrot.lane.b32.xlu2 %v1105_v41, %s5416_s17 }
 0x339   : > { %1149 = vrot.lane.b32.xlu1 %v1104_v26, %s5416_s17  ;;  %1147 = vrot.lane.b32.xlu0 %v1103_v54, %s5416_s17 }
 0x341   : > { %1153 = vrot.lane.b32.xlu0 %v1106_v17, %s5416_s17 }
 0x35d   : > { %v1128_v16 = vpop.permute.xlu2 %1127 }
 0x35e   : > { %1203 = vxpose.xlu2.b32.start [1/2] (short) (narrow) %v1128_v16, 8 }
 0x375   : > { %v1134_v56 = vpop.permute.xlu2 %1133 }
 0x37d   : > { %v1140_v20 = vpop.permute.xlu2 %1139 }
 0x385   : > { %v1146_v47 = vpop.permute.xlu2 %1145 }
 0x38b   : > { %v1126_v48 = vpop.permute.xlu1 %1125  ;;  %v1124_v13 = vpop.permute.xlu0 %1123 }
 0x38c   : > { %1171 = vxpose.xlu1.b32.start [1/2] (short) (narrow) %v1124_v13, 8 }
 0x38d   : > { %v1152_v37 = vpop.permute.xlu2 %1151 }
 0x393   : > { %v1132_v3 = vpop.permute.xlu1 %1131  ;;  %v1130_v11 = vpop.permute.xlu0 %1129 }
 0x394   : > { %1172 = vxpose.xlu1.b32.end [2/2] (short) (narrow) %v1126_v48, 8  ;;  %1235 = vxpose.xlu0.b32.start [1/2] (short) (narrow) %v1132_v3, 8 }
 0x395   : > { %1204 = vxpose.xlu2.b32.end [2/2] (short) (narrow) %v1130_v11, 8 }
 0x39b   : > { %v1138_v52 = vpop.permute.xlu1 %1137  ;;  %v1136_v4 = vpop.permute.xlu0 %1135 }
 0x39c   : > { %1236 = vxpose.xlu0.b32.end [2/2] (short) (narrow) %v1134_v56, 8 }
 0x39d   : > { %1267 = vxpose.xlu2.b32.start [1/2] (short) (narrow) %v1136_v4, 8 }
 0x3a3   : > { %v1144_v60 = vpop.permute.xlu1 %1143  ;;  %v1142_v42 = vpop.permute.xlu0 %1141 }
 0x3a4   : > { %1331 = vxpose.xlu1.b32.start [1/2] (short) (narrow) %v1144_v60, 8  ;;  %1299 = vxpose.xlu0.b32.start [1/2] (short) (narrow) %v1140_v20, 8 }
 0x3a5   : > { %1268 = vxpose.xlu2.b32.end [2/2] (short) (narrow) %v1138_v52, 8 }
 0x3ab   : > { %v1148_v61 = vpop.permute.xlu0 %1147  ;;  %v1150_v14 = vpop.permute.xlu1 %1149 }
 0x3ac   : > { %1300 = vxpose.xlu0.b32.end [2/2] (short) (narrow) %v1142_v42, 8  ;;  %1332 = vxpose.xlu1.b32.end [2/2] (short) (narrow) %v1146_v47, 8 }
 0x3ad   : > { %1363 = vxpose.xlu2.b32.start [1/2] (short) (narrow) %v1148_v61, 8 }
 0x3b3   : > { %v1154_v28 = vpop.permute.xlu0 %1153 }
 0x3b4   : > { %1395 = vxpose.xlu0.b32.start [1/2] (short) (narrow) %v1152_v37, 8 }
 0x3b5   : > { %1364 = vxpose.xlu2.b32.end [2/2] (short) (narrow) %v1150_v14, 8 }
 0x3bc   : > { %1396 = vxpose.xlu0.b32.end [2/2] (short) (narrow) %v1154_v28, 8 }
 0x3ff   : > { %5159 = vset.pattern.permute.xlu1 %v5573_v51 }
 0x417   : > { %5160 = vset.pattern.permute.xlu2 %v5601_v7 }
 0x423   : > { %5161 = vset.pattern.permute.xlu0 %v5573_v51 }
 0x426   : > { %v1219_v27 = vpop.trf.xlu2 }
 0x427   : > { %v1431_v43 = vsel %vm1427_vm15, %v1219_v27, -inf }
 0x428   : > { %1432 = vmax.xlane.f32.xlu2 %v1431_v43 }
 0x430   : > { %v1187_v45 = vpop.trf.xlu1 }
 0x431   : > { %v1428_v33 = vsel %vm1427_vm15, %v1187_v45, -inf }
 0x432   : > { %1429 = vmax.xlane.f32.xlu1 %v1428_v33 }
 0x436   : > { %v1283_v36 = vpop.trf.xlu2 }
 0x437   : > { %v1437_v49 = vsel %vm1427_vm15, %v1283_v36, -inf }
 0x438   : > { %v1251_v32 = vpop.trf.xlu0 }
 0x439   : > { %v1434_v44 = vsel %vm1427_vm15, %v1251_v32, -inf }
 0x43a   : > { %1435 = vmax.xlane.f32.xlu0 %v1434_v44  ;;  %1438 = vmax.xlane.f32.xlu1 %v1437_v49 }
 0x446   : > { %v1379_v31 = vpop.trf.xlu2 }
 0x447   : > { %v1446_v21 = vsel %vm1427_vm15, %v1379_v31, -inf }
 0x448   : > { %1447 = vmax.xlane.f32.xlu2 %v1446_v21  ;;  %v1315_v22 = vpop.trf.xlu0  ;;  %v1347_v55 = vpop.trf.xlu1 }
 0x449   : > { %v1440_v50 = vsel %vm1427_vm15, %v1315_v22, -inf  ;;  %v1443_v58 = vsel %vm1427_vm15, %v1347_v55, -inf }
 0x44a   : > { %1441 = vmax.xlane.f32.xlu1 %v1440_v50 }
 0x452   : > { %1444 = vmax.xlane.f32.xlu1 %v1443_v58 }
 0x458   : > { %v1411_v59 = vpop.trf.xlu0 }
 0x459   : > { %v1449_v62 = vsel %vm1427_vm15, %v1411_v59, -inf }
 0x45a   : > { %1450 = vmax.xlane.f32.xlu0 %v1449_v62 }
 0x49b   : > { %v1433_v6 = vpop.xlane.xlu2 %1432 }
 0x49c   : > { %v1453_v5 = vsub.f32 %v1219_v27, %v1433_v6 }
 0x49e   : > { %v1462_v41 = vmul.f32 1.442695, %v1453_v5 }
 0x4a0   : > { %5288 = vpow2.f32 %v1462_v41 }
 0x4a5   : > { %v1430_v40 = vpop.xlane.xlu1 %1429 }
 0x4a6   : > { %v6028_v54 = vpop.eup %5288  ;;  %v1452_v26 = vsub.f32 %v1187_v45, %v1430_v40 }
 0x4a7   : > { %v1479_v17 = vsel %vm1427_vm15, %v6028_v54, 0.0 }
 0x4a8   : > { %v1460_v16 = vmul.f32 1.442695, %v1452_v26  ;;  %1480 = vadd.xlane.f32.xlu2 %v1479_v17 }
 0x4aa   : > { %5290 = vpow2.f32 %v1460_v16 }
 0x4ad   : > { %v1436_v48 = vpop.xlane.xlu0 %1435  ;;  %v1439_v13 = vpop.xlane.xlu1 %1438 }
 0x4ae   : > { %v1454_v3 = vsub.f32 %v1251_v32, %v1436_v48  ;;  %v1455_v11 = vsub.f32 %v1283_v36, %v1439_v13 }
 0x4b0   : > { %v6032_v56 = vpop.eup %5290  ;;  %v1464_v52 = vmul.f32 1.442695, %v1454_v3  ;;  %v1466_v4 = vmul.f32 1.442695, %v1455_v11 }
 0x4b1   : > { %v1476_v20 = vsel %vm1427_vm15, %v6032_v56, 0.0 }
 0x4b2   : > { %5292 = vpow2.f32 %v1464_v52  ;;  %1477 = vadd.xlane.f32.xlu1 %v1476_v20 }
 0x4b3   : > { %5294 = vpow2.f32 %v1466_v4 }
 0x4b8   : > { %v6036_v60 = vpop.eup %5292 }
 0x4b9   : > { %v6038_v42 = vpop.eup %5294  ;;  %v1482_v47 = vsel %vm1427_vm15, %v6036_v60, 0.0 }
 0x4ba   : > { %1483 = vadd.xlane.f32.xlu0 %v1482_v47  ;;  %v1485_v61 = vsel %vm1427_vm15, %v6038_v42, 0.0 }
 0x4bb   : > { %1486 = vadd.xlane.f32.xlu1 %v1485_v61  ;;  %v1448_v37 = vpop.xlane.xlu2 %1447 }
 0x4bc   : > { %v1458_v14 = vsub.f32 %v1379_v31, %v1448_v37 }
 0x4bd   : > { %v1442_v28 = vpop.xlane.xlu1 %1441 }
 0x4be   : > { %v1472_v27 = vmul.f32 1.442695, %v1458_v14  ;;  %v1456_v43 = vsub.f32 %v1315_v22, %v1442_v28 }
 0x4c0   : > { %5296 = vpow2.f32 %v1472_v27  ;;  %v1468_v45 = vmul.f32 1.442695, %v1456_v43  ;;  %v6063_v43 = vld [vmem:[%s5541_s26 + $0x68] sm:$0xff] }
 0x4c2   : > { %5298 = vpow2.f32 %v1468_v45 }
 0x4c5   : > { %v1445_v33 = vpop.xlane.xlu1 %1444 }
 0x4c6   : > { %v6044_v36 = vpop.eup %5296  ;;  %v1457_v49 = vsub.f32 %v1347_v55, %v1445_v33 }
 0x4c7   : > { %v1494_v32 = vsel %vm1427_vm15, %v6044_v36, 0.0 }
 0x4c8   : > { %v6048_v44 = vpop.eup %5298  ;;  %v1470_v21 = vmul.f32 1.442695, %v1457_v49  ;;  %1495 = vadd.xlane.f32.xlu1 %v1494_v32  ;;  %v6067_v49 = vld [vmem:[%s5541_s26 + $0x60] sm:$0xff] }
 0x4c9   : > { %v1488_v31 = vsel %vm1427_vm15, %v6048_v44, 0.0 }
 0x4ca   : > { %5300 = vpow2.f32 %v1470_v21  ;;  %1489 = vadd.xlane.f32.xlu2 %v1488_v31 }
 0x4cd   : > { %v1451_v22 = vpop.xlane.xlu0 %1450 }
 0x4ce   : > { %v1459_v50 = vsub.f32 %v1411_v59, %v1451_v22 }
 0x4d0   : > { %v6052_v58 = vpop.eup %5300  ;;  %v1474_v62 = vmul.f32 1.442695, %v1459_v50 }
 0x4d1   : > { %v1491_v55 = vsel %vm1427_vm15, %v6052_v58, 0.0 }
 0x4d2   : > { %5302 = vpow2.f32 %v1474_v62  ;;  %1492 = vadd.xlane.f32.xlu0 %v1491_v55 }
 0x4d8   : > { %v6056_v6 = vpop.eup %5302 }
 0x4d9   : > { %v1497_v5 = vsel %vm1427_vm15, %v6056_v6, 0.0 }
 0x4da   : > { %1498 = vadd.xlane.f32.xlu2 %v1497_v5 }
 0x51b   : > { %v1481_v41 = vpop.xlane.xlu2 %1480 }
 0x51c   : > { %5304 = vrcp.f32 %v1481_v41  ;;  %v1526_v16 = vand.u32 2147483648, %v1481_v41  ;;  %v1524_v13 = vand.u32 2147483647, %v1481_v41  ;;  %vm1520_vm4 = vweird.f32 %v1481_v41 }
 0x51e   : > { %v1527_v11 = vor.u32 1.1754944e-38, %v1526_v16  ;;  %vm1525_vm6 = vcmp.eq.f32.partialorder %v1524_v13, 8.507059e+37  ;;  %v6073_v13 = vld [vmem:[%s5541_s26 + $0x58] sm:$0xff] }
 0x522   : > { %v5305_v40 = vpop.eup %5304 }
 0x523   : > { %v1516_v26 = vmul.f32 %v5305_v40, %v1481_v41  ;;  %vm1521_vm3 = vweird.f32 %v5305_v40 }
 0x524   : > { %vm1522_vm5 = vmor %vm1520_vm4, %vm1521_vm3 }
 0x525   : > { %v1517_v17 = vsub.f32 1.0, %v1516_v26  ;;  %v1478_v59 = vpop.xlane.xlu1 %1477 }
 0x526   : > { %5306 = vrcp.f32 %v1478_v59  ;;  %v1511_v27 = vand.u32 2147483648, %v1478_v59  ;;  %v1509_v33 = vand.u32 2147483647, %v1478_v59  ;;  %vm1505_vm9 = vweird.f32 %v1478_v59 }
 0x527   : > { %v1518_v48 = vmul.f32 %v5305_v40, %v1517_v17 }
 0x528   : > { %v1512_v21 = vor.u32 1.1754944e-38, %v1511_v27  ;;  %vm1510_vm12 = vcmp.eq.f32.partialorder %v1509_v33, 8.507059e+37 }
 0x529   : > { %v1519_v3 = vadd.f32 %v5305_v40, %v1518_v48 }
 0x52b   : > { %v1523_v52 = vsel %vm1522_vm5, %v5305_v40, %v1519_v3 }
 0x52c   : > { %v5307_v4 = vpop.eup %5306  ;;  %v1528_v20 = vsel %vm1525_vm6, %v1527_v11, %v1523_v52 }
 0x52d   : > { %v1501_v47 = vmul.f32 %v5307_v4, %v1478_v59  ;;  %v1484_v61 = vpop.xlane.xlu0 %1483  ;;  %v1529_v37 = vmul.f32 %v6028_v54, %v1528_v20  ;;  %vm1506_vm8 = vweird.f32 %v5307_v4  ;;  %v6081_v20 = vld [vmem:[%s5541_s26 + $0x50] sm:$0xff] }
 0x52e   : > { %5308 = vrcp.f32 %v1484_v61  ;;  %v1487_v14 = vpop.xlane.xlu1 %1486  ;;  %vm1507_vm11 = vmor %vm1505_vm9, %vm1506_vm8  ;;  %v1541_v17 = vand.u32 2147483648, %v1484_v61  ;;  %v1539_v48 = vand.u32 2147483647, %v1484_v61  ;;  %vm1535_vm3 = vweird.f32 %v1484_v61 }
 0x52f   : > { %v1502_v28 = vsub.f32 1.0, %v1501_v47  ;;  %5310 = vrcp.f32 %v1487_v14  ;;  %5029 = vmatmul.msk.f32.vlgmr.msrb.gmra.mxu3 %vm1620_vm7, %v1529_v37  ;;  %v1556_v16 = vand.u32 2147483648, %v1487_v14  ;;  %v1554_v3 = vand.u32 2147483647, %v1487_v14 }
 0x530   : > { %1776 = vmatpush.msrb.mxu3 %v6063_v43  ;;  %vm1550_vm5 = vweird.f32 %v1487_v14  ;;  %v1542_v47 = vor.u32 1.1754944e-38, %v1541_v17  ;;  %vm1540_vm8 = vcmp.eq.f32.partialorder %v1539_v48, 8.507059e+37  ;;  %v5345_v17 = vld [vmem:[%s5541_s26 + $0x10] sm:$0xff] }
 0x531   : > { %v1503_v45 = vmul.f32 %v5307_v4, %v1502_v28  ;;  %v1557_v27 = vor.u32 1.1754944e-38, %v1556_v16  ;;  %vm1555_vm9 = vcmp.eq.f32.partialorder %v1554_v3, 8.507059e+37 }
 0x532   : > { %1777 = vmatpush.msrb.mxu3 %v6067_v49 }
 0x533   : > { %v1504_v32 = vadd.f32 %v5307_v4, %v1503_v45 }
 0x534   : > { %v5309_v54 = vpop.eup %5308 }
 0x535   : > { %v5311_v31 = vpop.eup %5310  ;;  %v1531_v22 = vmul.f32 %v5309_v54, %v1484_v61  ;;  %v1508_v50 = vsel %vm1507_vm11, %v5307_v4, %v1504_v32  ;;  %vm1536_vm13 = vweird.f32 %v5309_v54 }
 0x536   : > { %v1546_v62 = vmul.f32 %v5311_v31, %v1487_v14  ;;  %v1513_v55 = vsel %vm1510_vm12, %v1512_v21, %v1508_v50  ;;  %vm1551_vm14 = vweird.f32 %v5311_v31  ;;  %vm6076_vm4 = vmor %vm1535_vm3, %vm1536_vm13  ;;  %v5343_v50 = vld [vmem:[%s5541_s26 + $0x18] sm:$0xff] }
 0x537   : > { %v1532_v5 = vsub.f32 1.0, %v1531_v22  ;;  %v1514_v41 = vmul.f32 %v6032_v56, %v1513_v55  ;;  %vm1552_vm6 = vmor %vm1550_vm5, %vm1551_vm14 }
 0x538   : > { %v1547_v40 = vsub.f32 1.0, %v1546_v62 }
 0x539   : > { %v1533_v26 = vmul.f32 %v5309_v54, %v1532_v5  ;;  %5028 = vmatmul.msk.f32.vlgmr.msra.gmra.mxu2 %vm1620_vm7, %v1514_v41 }
 0x53a   : > { %v1548_v59 = vmul.f32 %v5311_v31, %v1547_v40  ;;  %1753 = vmatpush.msra.mxu2 %v6073_v13 }
 0x53b   : > { %v1496_v11 = vpop.xlane.xlu1 %1495  ;;  %v1534_v52 = vadd.f32 %v5309_v54, %v1533_v26  ;;  %v5344_v26 = vld [vmem:[%s5541_s26] sm:$0xff] }
 0x53c   : > { %v1549_v4 = vadd.f32 %v5311_v31, %v1548_v59  ;;  %5312 = vrcp.f32 %v1496_v11  ;;  %1754 = vmatpush.msra.mxu2 %v6081_v20  ;;  %v1601_v5 = vand.u32 2147483648, %v1496_v11  ;;  %v1599_v41 = vand.u32 2147483647, %v1496_v11 }
 0x53d   : > { %v1490_v37 = vpop.xlane.xlu2 %1489  ;;  %v1538_v61 = vsel %vm6076_vm4, %v5309_v54, %v1534_v52  ;;  %v5342_v54 = vld [vmem:[%s5541_s26 + $0x8] sm:$0xff]  ;;  %vm1595_vm12 = vweird.f32 %v1496_v11 }
 0x53e   : > { %v1553_v28 = vsel %vm1552_vm6, %v5311_v31, %v1549_v4  ;;  %5314 = vrcp.f32 %v1490_v37  ;;  %v1543_v14 = vsel %vm1540_vm8, %v1542_v47, %v1538_v61  ;;  %v1571_v48 = vand.u32 2147483648, %v1490_v37 }
 0x53f   : > { %v1544_v45 = vmul.f32 %v6036_v60, %v1543_v14  ;;  %v1558_v33 = vsel %vm1555_vm9, %v1557_v27, %v1553_v28  ;;  %v1602_v3 = vor.u32 1.1754944e-38, %v1601_v5  ;;  %v1569_v52 = vand.u32 2147483647, %v1490_v37 }
 0x540   : > { %v1559_v32 = vmul.f32 %v6038_v42, %v1558_v33  ;;  %vm1600_vm3 = vcmp.eq.f32.partialorder %v1599_v41, 8.507059e+37  ;;  %vm1565_vm4 = vweird.f32 %v1490_v37  ;;  %v1572_v27 = vor.u32 1.1754944e-38, %v1571_v48 }
 0x541   : > { %5030 = vmatmul.msk.f32.vlgmr.msrb.gmra.mxu2 %vm1620_vm7, %v1544_v45  ;;  %vm1570_vm6 = vcmp.eq.f32.partialorder %v1569_v52, 8.507059e+37 }
 0x542   : > { %v5313_v21 = vpop.eup %5312  ;;  %5031 = vmatmul.msk.f32.vlgmr.msra.gmra.mxu3 %vm1620_vm7, %v1559_v32  ;;  %5036 = vmatpush.xpose.msk.msrb.mxu2 %vm1821_vm1, %v5342_v54 }
 0x543   : > { %v1591_v22 = vmul.f32 %v5313_v21, %v1496_v11  ;;  %5039 = vmatpush.xpose.msk.msra.mxu3 %vm1821_vm1, %v5343_v50  ;;  %vm1596_vm11 = vweird.f32 %v5313_v21 }
 0x544   : > { %v5315_v31 = vpop.eup %5314  ;;  %vm1597_vm14 = vmor %vm1595_vm12, %vm1596_vm11 }
 0x545   : > { %v1592_v62 = vsub.f32 1.0, %v1591_v22  ;;  %v1561_v60 = vmul.f32 %v5315_v31, %v1490_v37  ;;  %v1493_v55 = vpop.xlane.xlu0 %1492  ;;  %vm1566_vm13 = vweird.f32 %v5315_v31 }
 0x546   : > { %5316 = vrcp.f32 %v1493_v55  ;;  %5037 = vmatpush.xpose.msk.msrb.mxu2 %vm1821_vm1, %v5344_v26  ;;  %vm1567_vm5 = vmor %vm1565_vm4, %vm1566_vm13  ;;  %v1584_v54 = vand.u32 2147483647, %v1493_v55  ;;  %vm1580_vm9 = vweird.f32 %v1493_v55 }
 0x547   : > { %v1593_v42 = vmul.f32 %v5313_v21, %v1592_v62  ;;  %v1562_v40 = vsub.f32 1.0, %v1561_v60  ;;  %5040 = vmatpush.xpose.msk.msra.mxu3 %vm1821_vm1, %v5345_v17  ;;  %v5348_v17 = vld [vmem:[%s5541_s26 + $0x38] sm:$0xff] }
 0x548   : > { %vm1585_vm12 = vcmp.eq.f32.partialorder %v1584_v54, 8.507059e+37 }
 0x549   : > { %v1594_v59 = vadd.f32 %v5313_v21, %v1593_v42  ;;  %v1563_v16 = vmul.f32 %v5315_v31, %v1562_v40  ;;  %v5347_v40 = vld [vmem:[%s5541_s26 + $0x20] sm:$0xff] }
 0x54b   : > { %v1598_v56 = vsel %vm1597_vm14, %v5313_v21, %v1594_v59  ;;  %v1564_v4 = vadd.f32 %v5315_v31, %v1563_v16  ;;  %v1586_v21 = vand.u32 2147483648, %v1493_v55 }
 0x54c   : > { %v5317_v47 = vpop.eup %5316  ;;  %v1603_v61 = vsel %vm1600_vm3, %v1602_v3, %v1598_v56  ;;  %v5349_v3 = vld [vmem:[%s5541_s26 + $0x30] sm:$0xff] }
 0x54d   : > { %v1568_v28 = vsel %vm1567_vm5, %v5315_v31, %v1564_v4  ;;  %v1576_v11 = vmul.f32 %v5317_v47, %v1493_v55  ;;  %v1499_v14 = vpop.xlane.xlu2 %1498  ;;  %v1604_v45 = vmul.f32 %v6044_v36, %v1603_v61  ;;  %vm1581_vm8 = vweird.f32 %v5317_v47  ;;  %v5346_v36 = vld [vmem:[%s5541_s26 + $0x28] sm:$0xff]  ;;  %s237_s26 = sand.u32 1, %s5404_s19  }
 0x54e   : > { %5318 = vrcp.f32 %v1499_v14  ;;  %v1573_v32 = vsel %vm1570_vm6, %v1572_v27, %v1568_v28  ;;  %vm1582_vm11 = vmor %vm1580_vm9, %vm1581_vm8  ;;  %v1587_v62 = vor.u32 1.1754944e-38, %v1586_v21  ;;  %vm1610_vm13 = vweird.f32 %v1499_v14  ;;  %s5001_s8 = sshll.u32 %s237_s26, 5  ;;  %s4874_s17 = scalar_lea.sflag [#allocation3], %s237_s26 }
 0x54f   : > { %v1577_v33 = vsub.f32 1.0, %v1576_v11  ;;  %5034 = vmatmul.msk.f32.vlgmr.msrb.gmra.mxu3 %vm1620_vm7, %v1604_v45  ;;  %v1574_v22 = vmul.f32 %v6048_v44, %v1573_v32  ;;  %v1616_v60 = vand.u32 2147483648, %v1499_v14  ;;  %v1614_v55 = vand.u32 2147483647, %v1499_v14  ;;  %s239_s10 = scalar_lea.vmem [#allocation2], %s5001_s8 }
 0x550   : > { %5048 = vmatpush.xpose.msk.msrb.mxu3 %vm1821_vm1, %v5949_v19  ;;  %vm4864_vm5 = vcmask 19456   ;;  %s4891_s15 = sshll.u32 %s239_s10, 4  ;;  %s4892_s15 = int_to_ptr.vmem [resolvable:$true] %s4891_s15 }
 0x551   : > { %v1578_v37 = vmul.f32 %v5317_v47, %v1577_v33  ;;  %5032 = vmatmul.msk.f32.vlgmr.msra.gmra.mxu1 %vm1620_vm7, %v1574_v22  ;;  %vm1615_vm4 = vcmp.eq.f32.partialorder %v1614_v55, 8.507059e+37 }
 0x552   : > { %5042 = vmatpush.xpose.msk.msra.mxu1 %vm1821_vm1, %v5346_v36 }
 0x553   : > { %v1579_v31 = vadd.f32 %v5317_v47, %v1578_v37 }
 0x554   : > { %v5319_v50 = vpop.eup %5318  ;;  %5049 = vmatpush.xpose.msk.msrb.mxu3 %vm1821_vm1, %v5953_v2  ;;  %v1617_v2 = vor.u32 1.1754944e-38, %v1616_v60 }
 0x555   : > { %v1583_v44 = vsel %vm1582_vm11, %v5317_v47, %v1579_v31  ;;  %v1606_v19 = vmul.f32 %v5319_v50, %v1499_v14  ;;  %vm1611_vm14 = vweird.f32 %v5319_v50 }
 0x556   : > { %v1588_v5 = vsel %vm1585_vm12, %v1587_v62, %v1583_v44  ;;  %5043 = vmatpush.xpose.msk.msra.mxu1 %vm1821_vm1, %v5347_v40  ;;  %vm1612_vm3 = vmor %vm1610_vm13, %vm1611_vm14 }
 0x557   : > { %v1607_v42 = vsub.f32 1.0, %v1606_v19  ;;  %v1589_v41 = vmul.f32 %v6052_v58, %v1588_v5 }
 0x559   : > { %v1608_v26 = vmul.f32 %v5319_v50, %v1607_v42  ;;  %5033 = vmatmul.msk.f32.vlgmr.msra.gmra.mxu2 %vm1620_vm7, %v1589_v41 }
 0x55a   : > { %5045 = vmatpush.xpose.msk.msra.mxu2 %vm1821_vm1, %v5348_v17 }
 0x55b   : > { %v1609_v59 = vadd.f32 %v5319_v50, %v1608_v26 }
 0x55d   : > { %v1613_v16 = vsel %vm1612_vm3, %v5319_v50, %v1609_v59 }
 0x55e   : > { %v1618_v48 = vsel %vm1615_vm4, %v1617_v2, %v1613_v16  ;;  %5046 = vmatpush.xpose.msk.msra.mxu2 %vm1821_vm1, %v5349_v3 }
 0x55f   : > { %v1619_v58 = vmul.f32 %v6056_v6, %v1618_v48 }
 0x561   : > { %5035 = vmatmul.msk.f32.vlgmr.msrb.gmra.mxu1 %vm1620_vm7, %v1619_v58 }
 0x562   : > { %5051 = vmatpush.xpose.msk.msrb.mxu1 %vm1821_vm1, %v6073_v13 }
 0x566   : > { %5052 = vmatpush.xpose.msk.msrb.mxu1 %vm1821_vm1, %v6081_v20 }
 0x5b2   : > { %v1664_v52 = vpop.f32.mrf.mxu3 }
 0x5b3   : > { %4866 = vst.msk [vmem:[%s266_s7 + $0x4] sm:$0xf] %vm4864_vm5, %v1664_v52  ;;  %5041 = vmatmul.msk.f32.vlgmr.msra.gmra.mxu3 %vm1821_vm1, %v1664_v52 }
 0x5b4   : > { %5057 = vmatpush.xpose.msk.msra.mxu3 %vm1821_vm1, %v5969_v30 }
 0x5b8   : > { %5058 = vmatpush.xpose.msk.msra.mxu3 %vm1821_vm1, %v5973_v63 }
 0x5bc   : > { %v1641_v6 = vpop.f32.mrf.mxu2 }
 0x5bd   : > { %4865 = vst.msk [vmem:[%s266_s7] sm:$0xf] %vm4864_vm5, %v1641_v6  ;;  %5038 = vmatmul.msk.f32.vlgmr.msrb.gmra.mxu2 %vm1821_vm1, %v1641_v6 }
 0x5be   : > { %5054 = vmatpush.xpose.msk.msrb.mxu2 %vm1821_vm1, %v6063_v43 }
 0x5c2   : > { %5055 = vmatpush.xpose.msk.msrb.mxu2 %vm1821_vm1, %v6067_v49 }
 0x5c4   : > { %v1687_v13 = vpop.f32.mrf.mxu2 }
 0x5c5   : > { %4867 = vst.msk [vmem:[%s266_s7 + $0x8] sm:$0xf] %vm4864_vm5, %v1687_v13  ;;  %v1710_v20 = vpop.f32.mrf.mxu3  ;;  %5044 = vmatmul.msk.f32.vlgmr.msra.gmra.mxu1 %vm1821_vm1, %v1687_v13 }
 0x5c6   : > { %4868 = vst.msk [vmem:[%s266_s7 + $0xc] sm:$0xf] %vm4864_vm5, %v1710_v20  ;;  %5047 = vmatmul.msk.f32.vlgmr.msra.gmra.mxu2 %vm1821_vm1, %v1710_v20 }
 0x5ce   : > { %v1733_v30 = vpop.f32.mrf.mxu1 }
 0x5cf   : > { %4869 = vst.msk [vmem:[%s266_s7 + $0x10] sm:$0xf] %vm4864_vm5, %v1733_v30  ;;  %5050 = vmatmul.msk.f32.vlgmr.msrb.gmra.mxu3 %vm1821_vm1, %v1733_v30 }
 0x5d2   : > { %v1779_v63 = vpop.f32.mrf.mxu3 }
 0x5d3   : > { %4871 = vst.msk [vmem:[%s266_s7 + $0x18] sm:$0xf] %vm4864_vm5, %v1779_v63  ;;  %5056 = vmatmul.msk.f32.vlgmr.msrb.gmra.mxu2 %vm1821_vm1, %v1779_v63 }
 0x5dc   : > { %v1756_v43 = vpop.f32.mrf.mxu2 }
 0x5dd   : > { %4870 = vst.msk [vmem:[%s266_s7 + $0x14] sm:$0xf] %vm4864_vm5, %v1756_v43  ;;  %5053 = vmatmul.msk.f32.vlgmr.msrb.gmra.mxu1 %vm1821_vm1, %v1756_v43 }
 0x5de   : > { %v1802_v49 = vpop.f32.mrf.mxu1 }
 0x5df   : > { %4872 = vst.msk [vmem:[%s266_s7 + $0x1c] sm:$0xf] %vm4864_vm5, %v1802_v49  ;;  %5059 = vmatmul.msk.f32.vlgmr.msra.gmra.mxu3 %vm1821_vm1, %v1802_v49  ;;  %vm2988_vm1 = vcmask 130112   ;;  %s5370_s7 = scalar_lea.hbm %s8072_s4, 64 }
 0x5e0   : > { %p5372_p1 = scmp.lt.s32.totalorder %s5370_s7, %s5366_s25 }
 0x5e2   : > { %p5373_p2 = por %p5372_p1, %p5371_p0 }
 0x5e4   : > { %p5374_p3 = pnand %p5373_p2, %p5369_p13 }
 0x636   : > { %v1925_v28 = vpop.f32.mrf.mxu3 }
 0x637   : > { %v2103_v27 = vmul.f32 2.0, %v1925_v28 }
 0x639   : > { %v2170_v14 = vperm.slane %v2103_v27, 0  ;;  %v2209_v33 = vperm.slane %v2103_v27, 3  ;;  %v2183_v22 = vperm.slane %v2103_v27, 1  ;;  %v2196_v54 = vperm.slane %v2103_v27, 2 }
 0x640   : > { %v1896_v56 = vpop.f32.mrf.mxu2 }
 0x641   : > { %v2102_v4 = vmul.f32 2.0, %v1896_v56 }
 0x642   : > { %v1954_v32 = vpop.f32.mrf.mxu1 }
 0x643   : > { %v2131_v47 = vperm.slane %v2102_v4, 1  ;;  %v2118_v61 = vperm.slane %v2102_v4, 0  ;;  %v2144_v11 = vperm.slane %v2102_v4, 2  ;;  %v2157_v45 = vperm.slane %v2102_v4, 3 }
 0x644   : > { %v2104_v21 = vmul.f32 2.0, %v1954_v32 }
 0x645   : > { %2136 = vperm.xlu0 %5161, %v2131_v47   ;;  %2129 = vperm.xlu2 %5160, %v2118_v61  }
 0x646   : > { %2123 = vperm.xlu1 %5159, %v2118_v61   ;;  %v2235_v37 = vperm.slane %v2104_v21, 1  ;;  %v2222_v62 = vperm.slane %v2104_v21, 0  ;;  %v2248_v42 = vperm.slane %v2104_v21, 2  ;;  %v2261_v55 = vperm.slane %v2104_v21, 3 }
 0x647   : > { %v8201_v61 = vmov 0  }
 0x649   : > { %v1983_v31 = vpop.f32.mrf.mxu2 }
 0x64a   : > { %v2105_v36 = vmul.f32 2.0, %v1983_v31 }
 0x64c   : > { %v2274_v50 = vperm.slane %v2105_v36, 0  ;;  %v2300_v44 = vperm.slane %v2105_v36, 2  ;;  %v2287_v40 = vperm.slane %v2105_v36, 1  ;;  %v2313_v48 = vperm.slane %v2105_v36, 3 }
 0x64d   : > { %5164 = vset.pattern.permute.xlu0 %v5601_v7  ;;  %5163 = vset.pattern.permute.xlu2 %v5573_v51 }
 0x64e   : > { %5162 = vset.pattern.permute.xlu1 %v5601_v7 }
 0x652   : > { %v2012_v19 = vpop.f32.mrf.mxu3 }
 0x653   : > { %v2106_v60 = vmul.f32 2.0, %v2012_v19 }
 0x655   : > { %2149 = vperm.xlu2 %5163, %v2144_v11   ;;  %2181 = vperm.xlu0 %5164, %v2170_v14   ;;  %v2339_v5 = vperm.slane %v2106_v60, 1  ;;  %v2365_v41 = vperm.slane %v2106_v60, 3  ;;  %v2326_v58 = vperm.slane %v2106_v60, 0  ;;  %v2352_v13 = vperm.slane %v2106_v60, 2  ;;  %v8205_v60 = vld [vmem:[#allocation24_spill] sm:$0xff] }
 0x656   : > { %2142 = vperm.xlu1 %5162, %v2131_v47   ;;  %v2070_v59 = vpop.f32.mrf.mxu2 }
 0x657   : > { %v6177_v16 = vmul.f32 2.0, %v2070_v59 }
 0x659   : > { %v2430_v3 = vperm.slane %v6177_v16, 0  ;;  %v2469_v52 = vperm.slane %v6177_v16, 3  ;;  %v2456_v59 = vperm.slane %v6177_v16, 2 }
 0x65a   : > { %v2041_v26 = vpop.f32.mrf.mxu1 }
 0x65b   : > { %v6169_v2 = vmul.f32 2.0, %v2041_v26 }
 0x65d   : > { %2162 = vperm.xlu2 %5163, %v2157_v45   ;;  %5167 = vset.pattern.permute.xlu0 %v5573_v51  ;;  %v2404_v17 = vperm.slane %v6169_v2, 2 }
 0x65e   : > { %2155 = vperm.xlu1 %5162, %v2144_v11   ;;  %v2378_v11 = vperm.slane %v6169_v2, 0 }
 0x662   : > { %v2099_v20 = vpop.f32.mrf.mxu3 }
 0x663   : > { %v6189_v30 = vmul.f32 2.0, %v2099_v20  ;;  %v8210_v20 = vld [vmem:[#allocation23_spill] sm:$0xff] }
 0x665   : > { %2214 = vperm.xlu0 %5167, %v2209_v33   ;;  %2175 = vperm.xlu2 %5163, %v2170_v14   ;;  %v2495_v49 = vperm.slane %v6189_v30, 1 }
 0x666   : > { %2168 = vperm.xlu1 %5162, %v2157_v45  }
 0x66d   : > { %5170 = vset.pattern.permute.xlu0 %v5601_v7  ;;  %5166 = vset.pattern.permute.xlu2 %v5601_v7 }
 0x66e   : > { %5165 = vset.pattern.permute.xlu1 %v5573_v51 }
 0x675   : > { %2194 = vperm.xlu2 %5166, %v2183_v22   ;;  %2246 = vperm.xlu0 %5170, %v2235_v37  }
 0x676   : > { %2188 = vperm.xlu1 %5165, %v2183_v22  }
 0x67d   : > { %2207 = vperm.xlu2 %5166, %v2196_v54   ;;  %5173 = vset.pattern.permute.xlu0 %v5573_v51 }
 0x67e   : > { %2201 = vperm.xlu1 %5165, %v2196_v54  }
 0x685   : > { %5169 = vset.pattern.permute.xlu2 %v5573_v51  ;;  %2279 = vperm.xlu0 %5173, %v2274_v50  }
 0x686   : > { %5168 = vset.pattern.permute.xlu1 %v5601_v7 }
 0x68d   : > { %5176 = vset.pattern.permute.xlu0 %v5601_v7  ;;  %2227 = vperm.xlu2 %5169, %v2222_v62  }
 0x68e   : > { %2220 = vperm.xlu1 %5168, %v2209_v33   ;;  %v2391_v33 = vperm.slane %v6169_v2, 1 }
 0x695   : > { %2311 = vperm.xlu0 %5176, %v2300_v44   ;;  %2240 = vperm.xlu2 %5169, %v2235_v37   ;;  %v2417_v37 = vperm.slane %v6169_v2, 3 }
 0x696   : > { %2233 = vperm.xlu1 %5168, %v2222_v62  }
 0x69d   : > { %5179 = vset.pattern.permute.xlu0 %v5573_v51  ;;  %5172 = vset.pattern.permute.xlu2 %v5601_v7 }
 0x69e   : > { %5171 = vset.pattern.permute.xlu1 %v5573_v51 }
 0x69f   : > { %v6186_v6 = vpop.permute.xlu2 %2129 }
 0x6a5   : > { %2344 = vperm.xlu0 %5179, %v2339_v5   ;;  %2259 = vperm.xlu2 %5172, %v2248_v42  }
 0x6a6   : > { %2253 = vperm.xlu1 %5171, %v2248_v42  }
 0x6ad   : > { %5182 = vset.pattern.permute.xlu0 %v5601_v7  ;;  %2272 = vperm.xlu2 %5172, %v2261_v55  }
 0x6ae   : > { %2266 = vperm.xlu1 %5171, %v2261_v55  }
 0x6af   : > { %v6191_v63 = vpop.permute.xlu2 %2149 }
 0x6b5   : > { %2376 = vperm.xlu0 %5182, %v2365_v41   ;;  %5175 = vset.pattern.permute.xlu2 %v5573_v51 }
 0x6b6   : > { %5174 = vset.pattern.permute.xlu1 %v5601_v7 }
 0x6b7   : > { %v6196_v4 = vpop.permute.xlu2 %2162  ;;  %v6230_v36 = vpop.permute.xlu0 %2136 }
 0x6b8   : > { %v2124_v43 = vpop.permute.xlu1 %2123  ;;  %v6335_v23 = vsub.f32 %v5830_v1, %v6196_v4 }
 0x6b9   : > { %v6199_v47 = vsub.f32 %v5830_v1, %v2124_v43 }
 0x6ba   : > { %8217 = vst [vmem:[#allocation47_spill] sm:$0xff] %v6335_v23 }
 0x6bb   : > { %8200 = vst [vmem:[#allocation37_spill] sm:$0xff] %v6199_v47 }
 0x6bd   : > { %5185 = vset.pattern.permute.xlu0 %v5573_v51  ;;  %2292 = vperm.xlu2 %5175, %v2287_v40  }
 0x6be   : > { %2285 = vperm.xlu1 %5174, %v2274_v50  }
 0x6bf   : > { %v2176_v27 = vpop.permute.xlu2 %2175 }
 0x6c0   : > { %v6233_v50 = vsub.f32 %v5815_v35, %v2176_v27 }
 0x6c2   : > { %8204 = vst [vmem:[#allocation40_spill] sm:$0xff] %v6233_v50 }
 0x6c5   : > { %2305 = vperm.xlu2 %5175, %v2300_v44   ;;  %2409 = vperm.xlu0 %5185, %v2404_v17  }
 0x6c6   : > { %2298 = vperm.xlu1 %5174, %v2287_v40   ;;  %v2443_v40 = vperm.slane %v6177_v16, 1  ;;  %v2508_v16 = vperm.slane %v6189_v30, 2 }
 0x6c7   : > { %v6240_v19 = vpop.permute.xlu0 %2181 }
 0x6c8   : > { %v2143_v56 = vpop.permute.xlu1 %2142 }
 0x6c9   : > { %v6213_v32 = vsub.f32 %v5828_v53, %v2143_v56 }
 0x6cb   : > { %8203 = vst [vmem:[#allocation39_spill] sm:$0xff] %v6213_v32 }
 0x6cd   : > { %5178 = vset.pattern.permute.xlu2 %v5601_v7  ;;  %5188 = vset.pattern.permute.xlu0 %v5601_v7 }
 0x6ce   : > { %5177 = vset.pattern.permute.xlu1 %v5573_v51 }
 0x6cf   : > { %v2195_v45 = vpop.permute.xlu2 %2194 }
 0x6d0   : > { %v2156_v28 = vpop.permute.xlu1 %2155 }
 0x6d1   : > { %v6207_v14 = vsub.f32 %v5828_v53, %v2156_v28  ;;  %v2482_v28 = vperm.slane %v6189_v30, 0 }
 0x6d3   : > { %8202 = vst [vmem:[#allocation38_spill] sm:$0xff] %v6207_v14 }
 0x6d5   : > { %2324 = vperm.xlu2 %5178, %v2313_v48   ;;  %2441 = vperm.xlu0 %5188, %v2430_v3  }
 0x6d6   : > { %2318 = vperm.xlu1 %5177, %v2313_v48   ;;  %v8208_v48 = vld [vmem:[#allocation22_spill] sm:$0xff] }
 0x6d7   : > { %v6217_v22 = vpop.permute.xlu2 %2207 }
 0x6d8   : > { %v6215_v21 = vpop.permute.xlu1 %2168  ;;  %v6387_v57 = vsub.f32 %v8205_v60, %v6217_v22 }
 0x6da   : > { %8226 = vst [vmem:[#allocation48_spill] sm:$0xff] %v6387_v57 }
 0x6dd   : > { %2337 = vperm.xlu2 %5178, %v2326_v58   ;;  %5191 = vset.pattern.permute.xlu0 %v5573_v51 }
 0x6de   : > { %2331 = vperm.xlu1 %5177, %v2326_v58  }
 0x6e5   : > { %5181 = vset.pattern.permute.xlu2 %v5573_v51  ;;  %2474 = vperm.xlu0 %5191, %v2469_v52  }
 0x6e6   : > { %5180 = vset.pattern.permute.xlu1 %v5601_v7 }
 0x6e7   : > { %v6225_v31 = vpop.permute.xlu2 %2227 }
 0x6e8   : > { %v6223_v54 = vpop.permute.xlu1 %2188  ;;  %v6405_v22 = vsub.f32 %v8210_v20, %v6225_v31 }
 0x6e9   : > { %v6373_v12 = vsub.f32 %v5815_v35, %v6223_v54  ;;  %v6391_v54 = vsub.f32 %v8205_v60, %v6240_v19 }
 0x6ea   : > { %8229 = vst [vmem:[#allocation51_spill] sm:$0xff] %v6405_v22 }
 0x6eb   : > { %8223 = vst [vmem:[#allocation25_spill] sm:$0xff] %v6373_v12 }
 0x6ec   : > { %8227 = vst [vmem:[#allocation49_spill] sm:$0xff] %v6391_v54 }
 0x6ed   : > { %2357 = vperm.xlu2 %5181, %v2352_v13   ;;  %5194 = vset.pattern.permute.xlu0 %v5601_v7 }
 0x6ee   : > { %2350 = vperm.xlu1 %5180, %v2339_v5   ;;  %v6243_v5 = vsub.f32 %v8205_v60, %v2195_v45 }
 0x6ef   : > { %v6238_v44 = vpop.permute.xlu2 %2240 }
 0x6f0   : > { %v6236_v62 = vpop.permute.xlu1 %2201  ;;  %8206 = vst [vmem:[#allocation24_spill] sm:$0xff] %v6243_v5 }
 0x6f1   : > { %v6409_v19 = vsub.f32 %v5815_v35, %v6236_v62  ;;  %v8235_v62 = vld [vmem:[#allocation29_spill] sm:$0xff] }
 0x6f3   : > { %8230 = vst [vmem:[#allocation52_spill] sm:$0xff] %v6409_v19 }
 0x6f5   : > { %2370 = vperm.xlu2 %5181, %v2365_v41   ;;  %2506 = vperm.xlu0 %5194, %v2495_v49   ;;  %v2215_v41 = vpop.permute.xlu0 %2214 }
 0x6f6   : > { %2363 = vperm.xlu1 %5180, %v2352_v13   ;;  %v6254_v26 = vsub.f32 %v5815_v35, %v2215_v41 }
 0x6f8   : > { %8207 = vst [vmem:[#allocation41_spill] sm:$0xff] %v6254_v26 }
 0x6fd   : > { %5184 = vset.pattern.permute.xlu2 %v5601_v7  ;;  %5197 = vset.pattern.permute.xlu0 %v8201_v61  ;;  %v6294_v41 = vpop.permute.xlu0 %2246 }
 0x6fe   : > { %5183 = vset.pattern.permute.xlu1 %v5573_v51  ;;  %2794 = vperm.xlu0 %5197, %v6199_v47   ;;  %v6423_v31 = vsub.f32 %v8208_v48, %v6294_v41 }
 0x6ff   : > { %v6250_v55 = vpop.permute.xlu2 %2259 }
 0x700   : > { %v6248_v42 = vpop.permute.xlu1 %2220  ;;  %8233 = vst [vmem:[#allocation53_spill] sm:$0xff] %v6423_v31 }
 0x701   : > { %v6429_v35 = vsub.f32 %v8205_v60, %v6248_v42  ;;  %v6447_v60 = vsub.f32 %v8210_v20, %v6238_v44 }
 0x703   : > { %8234 = vst [vmem:[#allocation54_spill] sm:$0xff] %v6429_v35 }
 0x704   : > { %8238 = vst [vmem:[#allocation56_spill] sm:$0xff] %v6447_v60 }
 0x705   : > { %2389 = vperm.xlu2 %5184, %v2378_v11  }
 0x706   : > { %2383 = vperm.xlu1 %5183, %v2378_v11   ;;  %2809 = vperm.xlu0 %5197, %v6207_v14  }
 0x708   : > { %v2234_v2 = vpop.permute.xlu1 %2233 }
 0x70d   : > { %2402 = vperm.xlu2 %5184, %v2391_v33  }
 0x70e   : > { %2396 = vperm.xlu1 %5183, %v2391_v33   ;;  %3888 = vperm.xlu0 %5197, %v6199_v47   ;;  %v8263_v47 = vld [vmem:[#allocation36_spill] sm:$0xff] }
 0x715   : > { %5187 = vset.pattern.permute.xlu2 %v5573_v51 }
 0x716   : > { %5186 = vset.pattern.permute.xlu1 %v5601_v7  ;;  %3897 = vperm.xlu0 %5197, %v6213_v32  }
 0x718   : > { %v2254_v58 = vpop.permute.xlu1 %2253 }
 0x719   : > { %v6263_v43 = vsub.f32 %v8210_v20, %v2254_v58 }
 0x71b   : > { %8211 = vst [vmem:[#allocation23_spill] sm:$0xff] %v6263_v43 }
 0x71d   : > { %2422 = vperm.xlu2 %5187, %v2417_v37  }
 0x71e   : > { %2415 = vperm.xlu1 %5186, %v2404_v17   ;;  %3903 = vperm.xlu0 %5197, %v6207_v14   ;;  %v2273_v17 = vpop.permute.xlu2 %2272 }
 0x71f   : > { %v6272_v27 = vsub.f32 %v8208_v48, %v2273_v17  ;;  %v6307_v17 = vsub.f32 %v5830_v1, %v6230_v36  ;;  %v6320_v36 = vsub.f32 %v5830_v1, %v6191_v63  ;;  %v8218_v63 = vld [vmem:[#allocation27_spill] sm:$0xff] }
 0x720   : > { %v6277_v11 = vpop.permute.xlu1 %2266 }
 0x721   : > { %8212 = vst [vmem:[#allocation42_spill] sm:$0xff] %v6272_v27  ;;  %v6443_v41 = vsub.f32 %v8210_v20, %v6277_v11  ;;  %v6463_v11 = vsub.f32 %v8208_v48, %v6250_v55 }
 0x722   : > { %8213 = vst [vmem:[#allocation43_spill] sm:$0xff] %v6307_v17 }
 0x723   : > { %8215 = vst [vmem:[#allocation45_spill] sm:$0xff] %v6320_v36 }
 0x724   : > { %8237 = vst [vmem:[#allocation55_spill] sm:$0xff] %v6443_v41 }
 0x725   : > { %2435 = vperm.xlu2 %5187, %v2430_v3   ;;  %v6259_v3 = vsub.f32 %v8208_v48, %v2234_v2  ;;  %8241 = vst [vmem:[#allocation59_spill] sm:$0xff] %v6463_v11 }
 0x726   : > { %2428 = vperm.xlu1 %5186, %v2417_v37   ;;  %2818 = vperm.xlu0 %5197, %v6233_v50   ;;  %v2293_v13 = vpop.permute.xlu2 %2292 }
 0x727   : > { %8209 = vst [vmem:[#allocation22_spill] sm:$0xff] %v6259_v3  ;;  %v6338_v29 = vsub.f32 %v8218_v63, %v2293_v13 }
 0x72d   : > { %5190 = vset.pattern.permute.xlu2 %v5601_v7 }
 0x72e   : > { %5189 = vset.pattern.permute.xlu1 %v5573_v51  ;;  %2827 = vperm.xlu0 %5197, %v6243_v5   ;;  %v6268_v56 = vpop.permute.xlu2 %2305 }
 0x730   : > { %v6284_v33 = vpop.permute.xlu1 %2285 }
 0x735   : > { %2454 = vperm.xlu2 %5190, %v2443_v40  }
 0x736   : > { %2448 = vperm.xlu1 %5189, %v2443_v40   ;;  %2836 = vperm.xlu0 %5197, %v6254_v26   ;;  %v6279_v45 = vpop.permute.xlu2 %2324  ;;  %v2521_v40 = vperm.slane %v6189_v30, 3 }
 0x73d   : > { %2467 = vperm.xlu2 %5190, %v2456_v59  }
 0x73e   : > { %2461 = vperm.xlu1 %5189, %v2456_v59   ;;  %2845 = vperm.xlu0 %5197, %v6259_v3   ;;  %v6286_v37 = vpop.permute.xlu2 %2337  ;;  %v6311_v59 = vsub.f32 %v5828_v53, %v6186_v6 }
 0x740   : > { %8214 = vst [vmem:[#allocation44_spill] sm:$0xff] %v6311_v59 }
 0x745   : > { %5193 = vset.pattern.permute.xlu2 %v5573_v51 }
 0x746   : > { %5192 = vset.pattern.permute.xlu1 %v5601_v7  ;;  %2854 = vperm.xlu0 %5197, %v6263_v43  }
 0x74d   : > { %2487 = vperm.xlu2 %5193, %v2482_v28  }
 0x74e   : > { %2480 = vperm.xlu1 %5192, %v2469_v52   ;;  %2863 = vperm.xlu0 %5197, %v6272_v27   ;;  %v6292_v52 = vpop.permute.xlu1 %2298 }
 0x755   : > { %2500 = vperm.xlu2 %5193, %v2495_v49   ;;  %v6296_v49 = vpop.permute.xlu2 %2357 }
 0x756   : > { %2493 = vperm.xlu1 %5192, %v2482_v28   ;;  %3912 = vperm.xlu0 %5197, %v6233_v50   ;;  %v6300_v2 = vpop.permute.xlu1 %2318 }
 0x75d   : > { %5196 = vset.pattern.permute.xlu2 %v5601_v7  ;;  %v6302_v7 = vpop.permute.xlu0 %2279 }
 0x75e   : > { %5195 = vset.pattern.permute.xlu1 %v5573_v51  ;;  %3921 = vperm.xlu0 %5197, %v6243_v5   ;;  %v2371_v51 = vpop.permute.xlu2 %2370  ;;  %v2332_v30 = vpop.permute.xlu1 %2331 }
 0x75f   : > { %v6362_v18 = vsub.f32 %v8221_v46, %v2332_v30  ;;  %v6394_v39 = vsub.f32 %v8221_v46, %v2371_v51  ;;  %v8231_v51 = vld [vmem:[#allocation28_spill] sm:$0xff] }
 0x761   : > { %8228 = vst [vmem:[#allocation50_spill] sm:$0xff] %v6394_v39 }
 0x765   : > { %2519 = vperm.xlu2 %5196, %v2508_v16   ;;  %v2312_v58 = vpop.permute.xlu0 %2311 }
 0x766   : > { %2513 = vperm.xlu1 %5195, %v2508_v16   ;;  %3930 = vperm.xlu0 %5197, %v6254_v26   ;;  %v2390_v28 = vpop.permute.xlu2 %2389  ;;  %v2351_v6 = vpop.permute.xlu1 %2350 }
 0x767   : > { %v6378_v0 = vsub.f32 %v8224_v38, %v2351_v6 }
 0x769   : > { %8225 = vst [vmem:[#allocation30_spill] sm:$0xff] %v6378_v0 }
 0x76d   : > { %2532 = vperm.xlu2 %5196, %v2521_v40   ;;  %v6322_v16 = vpop.permute.xlu0 %2344 }
 0x76e   : > { %2526 = vperm.xlu1 %5195, %v2521_v40   ;;  %3939 = vperm.xlu0 %5197, %v6259_v3   ;;  %v6331_v40 = vsub.f32 %v5828_v53, %v6215_v21  ;;  %v6345_v10 = vpop.permute.xlu1 %2363  ;;  %v8219_v53 = vld [vmem:[#allocation26_spill] sm:$0xff]  ;;  %v6467_v44 = vsub.f32 %v8221_v46, %v6322_v16 }
 0x76f   : > { %v6350_v21 = vsub.f32 %v8219_v53, %v2312_v58  ;;  %8222 = vst [vmem:[#allocation26_spill] sm:$0xff] %v6362_v18 }
 0x770   : > { %8216 = vst [vmem:[#allocation46_spill] sm:$0xff] %v6331_v40 }
 0x771   : > { %8220 = vst [vmem:[#allocation27_spill] sm:$0xff] %v6350_v21 }
 0x772   : > { %8242 = vst [vmem:[#allocation60_spill] sm:$0xff] %v6467_v44 }
 0x775   : > { %5199 = vset.pattern.permute.xlu2 %v8201_v61  ;;  %v6340_v15 = vpop.permute.xlu0 %2376 }
 0x776   : > { %5198 = vset.pattern.permute.xlu1 %v8201_v61  ;;  %2800 = vperm.xlu2 %5199, %v6307_v17   ;;  %v6327_v61 = vpop.permute.xlu2 %2402 }
 0x777   : > { %2797 = vperm.xlu1 %5198, %v6311_v59   ;;  %3948 = vperm.xlu0 %5197, %v6263_v43   ;;  %v6412_v43 = vsub.f32 %v8231_v51, %v2390_v28 }
 0x778   : > { %v6355_v4 = vpop.permute.xlu1 %2383 }
 0x779   : > { %8232 = vst [vmem:[#allocation28_spill] sm:$0xff] %v6412_v43 }
 0x77d   : > { %v2410_v1 = vpop.permute.xlu0 %2409 }
 0x77e   : > { %2806 = vperm.xlu2 %5199, %v6320_v36   ;;  %v6347_v34 = vpop.permute.xlu2 %2422  ;;  %v6432_v28 = vsub.f32 %v8235_v62, %v2410_v1 }
 0x77f   : > { %2803 = vperm.xlu1 %5198, %v6213_v32   ;;  %3957 = vperm.xlu0 %5197, %v6272_v27  }
 0x780   : > { %v6367_v58 = vpop.permute.xlu1 %2396  ;;  %8236 = vst [vmem:[#allocation29_spill] sm:$0xff] %v6432_v28 }
 0x785   : > { %v6359_v9 = vpop.permute.xlu0 %2441 }
 0x786   : > { %2815 = vperm.xlu2 %5199, %v6331_v40   ;;  %v6357_v13 = vpop.permute.xlu2 %2435 }
 0x787   : > { %2812 = vperm.xlu1 %5198, %v6335_v23   ;;  %2872 = vperm.xlu0 %5197, %v6338_v29  }
 0x78d   : > { %v6375_v25 = vpop.permute.xlu0 %2474 }
 0x78e   : > { %3894 = vperm.xlu2 %5199, %v6307_v17  }
 0x78f   : > { %3891 = vperm.xlu1 %5198, %v6311_v59   ;;  %2881 = vperm.xlu0 %5197, %v6350_v21   ;;  %v6369_v8 = vpop.permute.xlu2 %2454 }
 0x790   : > { %v6383_v30 = vpop.permute.xlu1 %2415 }
 0x795   : > { %v6396_v6 = vpop.permute.xlu0 %2506 }
 0x796   : > { %3906 = vperm.xlu2 %5199, %v6335_v23   ;;  %v8258_v23 = vld [vmem:[#allocation31_spill] sm:$0xff]  ;;  %v6611_v59 = vsub.f32 %v8263_v47, %v6396_v6 }
 0x797   : > { %3900 = vperm.xlu1 %5198, %v6320_v36   ;;  %2890 = vperm.xlu0 %5197, %v6362_v18   ;;  %v6398_v24 = vpop.permute.xlu2 %2467  ;;  %v6543_v36 = vsub.f32 %v8219_v53, %v6279_v45 }
 0x798   : > { %v2429_v27 = vpop.permute.xlu1 %2428  ;;  %8264 = vst [vmem:[#allocation36_spill] sm:$0xff] %v6611_v59 }
 0x799   : > { %v6450_v42 = vsub.f32 %v8231_v51, %v2429_v27 }
 0x79b   : > { %8239 = vst [vmem:[#allocation57_spill] sm:$0xff] %v6450_v42 }
 0x79d   : > { %v6417_v26 = vpop.permute.xlu0 %2794 }
 0x79e   : > { %2824 = vperm.xlu2 %5199, %v6373_v12  }
 0x79f   : > { %3909 = vperm.xlu1 %5198, %v6331_v40   ;;  %2899 = vperm.xlu0 %5197, %v6378_v0  }
 0x7a5   : > { %v6439_v14 = vpop.permute.xlu0 %2809 }
 0x7a6   : > { %2833 = vperm.xlu2 %5199, %v6387_v57  }
 0x7a7   : > { %2821 = vperm.xlu1 %5198, %v6391_v54   ;;  %2908 = vperm.xlu0 %5197, %v6394_v39   ;;  %v6414_v3 = vpop.permute.xlu2 %2487 }
 0x7a8   : > { %v6425_v5 = vpop.permute.xlu1 %2448 }
 0x7ad   : > { %v6459_v17 = vpop.permute.xlu0 %3888 }
 0x7ae   : > { %2842 = vperm.xlu2 %5199, %v6405_v22   ;;  %8240 = vst [vmem:[#allocation58_spill] sm:$0xff] %v6459_v17  ;;  %v6478_v17 = vsub.f32 %v8221_v46, %v6296_v49 }
 0x7af   : > { %2830 = vperm.xlu1 %5198, %v6409_v19   ;;  %2917 = vperm.xlu0 %5197, %v6412_v43   ;;  %v6435_v50 = vpop.permute.xlu2 %2500 }
 0x7b0   : > { %v6452_v1 = vpop.permute.xlu1 %2461  ;;  %8243 = vst [vmem:[#allocation61_spill] sm:$0xff] %v6478_v17 }
 0x7b5   : > { %v6480_v55 = vpop.permute.xlu0 %3897 }
 0x7b6   : > { %2851 = vperm.xlu2 %5199, %v6423_v31   ;;  %8244 = vst [vmem:[#allocation62_spill] sm:$0xff] %v6480_v55 }
 0x7b7   : > { %2839 = vperm.xlu1 %5198, %v6429_v35   ;;  %2926 = vperm.xlu0 %5197, %v6432_v28  }
 0x7bd   : > { %v6494_v46 = vpop.permute.xlu0 %3903 }
 0x7be   : > { %2860 = vperm.xlu2 %5199, %v6443_v41   ;;  %8246 = vst [vmem:[#allocation64_spill] sm:$0xff] %v6494_v46 }
 0x7bf   : > { %2848 = vperm.xlu1 %5198, %v6447_v60   ;;  %2935 = vperm.xlu0 %5197, %v6450_v42   ;;  %v6457_v40 = vpop.permute.xlu2 %2519 }
 0x7c0   : > { %v6469_v20 = vpop.permute.xlu1 %2480 }
 0x7c5   : > { %v6509_v46 = vpop.permute.xlu0 %2818 }
 0x7c6   : > { %3915 = vperm.xlu2 %5199, %v6391_v54   ;;  %v6491_v54 = vsub.f32 %v8218_v63, %v6302_v7 }
 0x7c7   : > { %2857 = vperm.xlu1 %5198, %v6463_v11   ;;  %3990 = vperm.xlu0 %5197, %v6467_v44   ;;  %v6474_v27 = vpop.permute.xlu2 %2532 }
 0x7c8   : > { %v6485_v48 = vpop.permute.xlu1 %2493  ;;  %8245 = vst [vmem:[#allocation63_spill] sm:$0xff] %v6491_v54 }
 0x7ce   : > { %3924 = vperm.xlu2 %5199, %v6409_v19   ;;  %v6519_v19 = vsub.f32 %v8218_v63, %v6300_v2 }
 0x7cf   : > { %3918 = vperm.xlu1 %5198, %v6373_v12   ;;  %3996 = vperm.xlu0 %5197, %v6478_v17   ;;  %v6504_v12 = vsub.f32 %v8219_v53, %v6292_v52 }
 0x7d0   : > { %v6487_v16 = vpop.permute.xlu2 %2800  ;;  %8248 = vst [vmem:[#allocation66_spill] sm:$0xff] %v6519_v19 }
 0x7d1   : > { %8247 = vst [vmem:[#allocation65_spill] sm:$0xff] %v6504_v12 }
 0x7d6   : > { %3933 = vperm.xlu2 %5199, %v6429_v35   ;;  %v6515_v35 = vsub.f32 %v8219_v53, %v6284_v33  ;;  %v6532_v33 = vsub.f32 %v8218_v63, %v6268_v56 }
 0x7d7   : > { %3927 = vperm.xlu1 %5198, %v6387_v57   ;;  %3960 = vperm.xlu0 %5197, %v6491_v54  }
 0x7d8   : > { %v6498_v49 = vpop.permute.xlu1 %2513  ;;  %v6500_v55 = vpop.permute.xlu2 %2806 }
 0x7de   : > { %3942 = vperm.xlu2 %5199, %v6447_v60   ;;  %v6528_v60 = vpop.permute.xlu0 %2827 }
 0x7df   : > { %3936 = vperm.xlu1 %5198, %v6405_v22   ;;  %3969 = vperm.xlu0 %5197, %v6504_v12  }
 0x7e0   : > { %v2527_v7 = vpop.permute.xlu1 %2526  ;;  %v6511_v57 = vpop.permute.xlu2 %2815 }
 0x7e1   : > { %v6627_v32 = vsub.f32 %v8258_v23, %v2527_v7 }
 0x7e6   : > { %2869 = vperm.xlu2 %5199, %v6515_v35  }
 0x7e7   : > { %3945 = vperm.xlu1 %5198, %v6423_v31   ;;  %3978 = vperm.xlu0 %5197, %v6519_v19  }
 0x7e8   : > { %v6526_v22 = vpop.permute.xlu2 %3894 }
 0x7e9   : > { %v6524_v52 = vpop.permute.xlu1 %2797  ;;  %8249 = vst [vmem:[#allocation67_spill] sm:$0xff] %v6526_v22  ;;  %v6545_v22 = vpop.permute.xlu0 %2836 }
 0x7ee   : > { %2878 = vperm.xlu2 %5199, %v6532_v33  }
 0x7ef   : > { %3951 = vperm.xlu1 %5198, %v6463_v11   ;;  %4011 = vperm.xlu0 %5197, %v6412_v43   ;;  %v8251_v43 = vld [vmem:[#allocation33_spill] sm:$0xff] }
 0x7f0   : > { %v6539_v31 = vpop.permute.xlu2 %3906  ;;  %v6556_v11 = vsub.f32 %v8251_v43, %v6425_v5 }
 0x7f1   : > { %v6537_v2 = vpop.permute.xlu1 %2803  ;;  %8250 = vst [vmem:[#allocation68_spill] sm:$0xff] %v6539_v31  ;;  %v6559_v45 = vpop.permute.xlu0 %2845 }
 0x7f6   : > { %2887 = vperm.xlu2 %5199, %v6543_v36  }
 0x7f7   : > { %3954 = vperm.xlu1 %5198, %v6443_v41   ;;  %4029 = vperm.xlu0 %5197, %v6450_v42   ;;  %v6569_v42 = vsub.f32 %v8224_v38, %v6345_v10  ;;  %v8254_v41 = vld [vmem:[#allocation32_spill] sm:$0xff]  ;;  %v6586_v10 = vsub.f32 %v8235_v62, %v6355_v4  ;;  %v6603_v4 = vsub.f32 %v8231_v51, %v6327_v61 }
 0x7f8   : > { %v6552_v63 = vpop.permute.xlu2 %2824  ;;  %v6573_v5 = vsub.f32 %v8254_v41, %v6398_v24  ;;  %v6590_v24 = vsub.f32 %v8258_v23, %v6414_v3  ;;  %v6607_v3 = vsub.f32 %v8224_v38, %v6286_v37  ;;  %v6622_v61 = vsub.f32 %v8235_v62, %v6347_v34 }
 0x7f9   : > { %v6550_v56 = vpop.permute.xlu1 %2812  ;;  %8253 = vst [vmem:[#allocation69_spill] sm:$0xff] %v6569_v42 }
 0x7fa   : > { %8255 = vst [vmem:[#allocation32_spill] sm:$0xff] %v6573_v5 }
 0x7fb   : > { %8257 = vst [vmem:[#allocation71_spill] sm:$0xff] %v6586_v10 }
 0x7fc   : > { %8259 = vst [vmem:[#allocation31_spill] sm:$0xff] %v6590_v24 }
 0x7fd   : > { %8262 = vst [vmem:[#allocation74_spill] sm:$0xff] %v6603_v4 }
 0x7fe   : > { %2896 = vperm.xlu2 %5199, %v6467_v44   ;;  %v6578_v44 = vpop.permute.xlu0 %2854 }
 0x7ff   : > { %2866 = vperm.xlu1 %5198, %v6491_v54   ;;  %2944 = vperm.xlu0 %5197, %v6556_v11  }
 0x800   : > { %v6565_v31 = vpop.permute.xlu2 %2833 }
 0x801   : > { %v6563_v53 = vpop.permute.xlu1 %3891 }
 0x802   : > { %8252 = vst [vmem:[#allocation33_spill] sm:$0xff] %v6563_v53 }
 0x806   : > { %2905 = vperm.xlu2 %5199, %v6569_v42  }
 0x807   : > { %2875 = vperm.xlu1 %5198, %v6504_v12   ;;  %2953 = vperm.xlu0 %5197, %v6573_v5  }
 0x808   : > { %v6582_v53 = vpop.permute.xlu2 %2842 }
 0x809   : > { %v6580_v54 = vpop.permute.xlu1 %3900 }
 0x80a   : > { %8256 = vst [vmem:[#allocation70_spill] sm:$0xff] %v6580_v54  ;;  %v6599_v54 = vpop.permute.xlu0 %2863 }
 0x80b   : > { %8261 = vst [vmem:[#allocation73_spill] sm:$0xff] %v6599_v54 }
 0x80e   : > { %2914 = vperm.xlu2 %5199, %v6586_v10  }
 0x80f   : > { %2884 = vperm.xlu1 %5198, %v6519_v19   ;;  %2962 = vperm.xlu0 %5197, %v6590_v24  }
 0x810   : > { %v6597_v12 = vpop.permute.xlu2 %2851 }
 0x811   : > { %v6595_v5 = vpop.permute.xlu1 %3909 }
 0x812   : > { %8260 = vst [vmem:[#allocation72_spill] sm:$0xff] %v6595_v5  ;;  %v6624_v37 = vpop.permute.xlu0 %3912 }
 0x813   : > { %8266 = vst [vmem:[#allocation76_spill] sm:$0xff] %v6624_v37 }
 0x816   : > { %2923 = vperm.xlu2 %5199, %v6603_v4  }
 0x817   : > { %2893 = vperm.xlu1 %5198, %v6607_v3   ;;  %2971 = vperm.xlu0 %5197, %v6611_v59  }
 0x818   : > { %v6618_v19 = vpop.permute.xlu2 %2860 }
 0x819   : > { %v6616_v5 = vpop.permute.xlu1 %2821  ;;  %8265 = vst [vmem:[#allocation75_spill] sm:$0xff] %v6618_v19  ;;  %v6638_v19 = vsub.f32 %v8224_v38, %v6340_v15 }
 0x81a   : > { %v6641_v34 = vpop.permute.xlu0 %3921 }
 0x81b   : > { %8268 = vst [vmem:[#allocation78_spill] sm:$0xff] %v6638_v19 }
 0x81c   : > { %8269 = vst [vmem:[#allocation79_spill] sm:$0xff] %v6641_v34  ;;  %v6664_v34 = vsub.f32 %v8231_v51, %v6383_v30  ;;  %v6681_v30 = vsub.f32 %v8251_v43, %v6357_v13 }
 0x81e   : > { %2932 = vperm.xlu2 %5199, %v6622_v61  }
 0x81f   : > { %2902 = vperm.xlu1 %5198, %v6478_v17   ;;  %2980 = vperm.xlu0 %5197, %v6627_v32   ;;  %v6651_v17 = vsub.f32 %v8235_v62, %v6367_v58  ;;  %v6668_v58 = vsub.f32 %v8258_v23, %v6498_v49 }
 0x820   : > { %v6634_v54 = vpop.permute.xlu2 %3915 }
 0x821   : > { %v6632_v6 = vpop.permute.xlu1 %2830  ;;  %8267 = vst [vmem:[#allocation77_spill] sm:$0xff] %v6634_v54 }
 0x822   : > { %8271 = vst [vmem:[#allocation81_spill] sm:$0xff] %v6651_v17  ;;  %v6656_v15 = vpop.permute.xlu0 %3930 }
 0x823   : > { %8272 = vst [vmem:[#allocation82_spill] sm:$0xff] %v6656_v15 }
 0x826   : > { %3984 = vperm.xlu2 %5199, %v6362_v18  }
 0x827   : > { %2911 = vperm.xlu1 %5198, %v6638_v19   ;;  %4056 = vperm.xlu0 %5197, %v6590_v24  }
 0x828   : > { %v6647_v37 = vpop.permute.xlu2 %3924 }
 0x829   : > { %v6645_v7 = vpop.permute.xlu1 %2839  ;;  %8270 = vst [vmem:[#allocation80_spill] sm:$0xff] %v6647_v37 }
 0x82a   : > { %v6677_v37 = vpop.permute.xlu0 %3939 }
 0x82b   : > { %8275 = vst [vmem:[#allocation85_spill] sm:$0xff] %v6677_v37 }
 0x82e   : > { %3993 = vperm.xlu2 %5199, %v6378_v0  }
 0x82f   : > { %2920 = vperm.xlu1 %5198, %v6651_v17   ;;  %4065 = vperm.xlu0 %5197, %v6611_v59  }
 0x830   : > { %v6660_v54 = vpop.permute.xlu2 %3933 }
 0x831   : > { %v6658_v38 = vpop.permute.xlu1 %2848  ;;  %8273 = vst [vmem:[#allocation83_spill] sm:$0xff] %v6660_v54  ;;  %v6692_v54 = vsub.f32 %v8254_v41, %v6369_v8 }
 0x833   : > { %8277 = vst [vmem:[#allocation87_spill] sm:$0xff] %v6692_v54 }
 0x836   : > { %3999 = vperm.xlu2 %5199, %v6569_v42  }
 0x837   : > { %2929 = vperm.xlu1 %5198, %v6664_v34   ;;  %4068 = vperm.xlu0 %5197, %v6668_v58  }
 0x838   : > { %v6675_v15 = vpop.permute.xlu2 %3942 }
 0x839   : > { %v6673_v62 = vpop.permute.xlu1 %2857  ;;  %8274 = vst [vmem:[#allocation84_spill] sm:$0xff] %v6675_v15  ;;  %v6694_v15 = vpop.permute.xlu0 %3948 }
 0x83a   : > { %8278 = vst [vmem:[#allocation88_spill] sm:$0xff] %v6694_v15 }
 0x83e   : > { %4002 = vperm.xlu2 %5199, %v6394_v39   ;;  %v8284_v39 = vld [vmem:[#allocation5_spill] sm:$0xff] }
 0x83f   : > { %3987 = vperm.xlu1 %5198, %v6607_v3   ;;  %4032 = vperm.xlu0 %5197, %v6681_v30   ;;  %v3005_v42 = vperm.slane %v6632_v6, %v8284_v39 }
 0x840   : > { %v6688_v49 = vpop.permute.xlu2 %2869 }
 0x841   : > { %v6686_v51 = vpop.permute.xlu1 %3918 }
 0x842   : > { %8276 = vst [vmem:[#allocation86_spill] sm:$0xff] %v6686_v51  ;;  %v6704_v51 = vpop.permute.xlu0 %3957 }
 0x843   : > { %8280 = vst [vmem:[#allocation90_spill] sm:$0xff] %v6704_v51 }
 0x846   : > { %3963 = vperm.xlu2 %5199, %v6515_v35  }
 0x847   : > { %4005 = vperm.xlu1 %5198, %v6638_v19   ;;  %4041 = vperm.xlu0 %5197, %v6692_v54  }
 0x848   : > { %v6701_v37 = vpop.permute.xlu2 %2878 }
 0x849   : > { %v6699_v13 = vpop.permute.xlu1 %3927 }
 0x84a   : > { %8279 = vst [vmem:[#allocation89_spill] sm:$0xff] %v6699_v13  ;;  %v6713_v15 = vpop.permute.xlu0 %2872 }
 0x84e   : > { %3972 = vperm.xlu2 %5199, %v6532_v33  }
 0x84f   : > { %3966 = vperm.xlu1 %5198, %v6338_v29  }
 0x850   : > { %v6709_v59 = vpop.permute.xlu2 %2887 }
 0x851   : > { %v6707_v8 = vpop.permute.xlu1 %3936 }
 0x852   : > { %8281 = vst [vmem:[#allocation91_spill] sm:$0xff] %v6707_v8  ;;  %v6724_v8 = vadd.s32 4294967288, %v8284_v39  ;;  %v6726_v0 = vpop.permute.xlu0 %2881 }
 0x854   : > { %v3000_v19 = vperm.slane %v6616_v5, %v6724_v8  ;;  %v3003_v5 = vperm.slane %v6528_v60, %v6724_v8 }
 0x856   : > { %3981 = vperm.xlu2 %5199, %v6543_v36  }
 0x857   : > { %3975 = vperm.xlu1 %5198, %v6350_v21  }
 0x858   : > { %v6718_v13 = vpop.permute.xlu2 %2896 }
 0x859   : > { %v6715_v24 = vpop.permute.xlu1 %3945 }
 0x85a   : > { %8282 = vst [vmem:[#allocation92_spill] sm:$0xff] %v6715_v24  ;;  %v2999_v24 = vperm.slane %v6509_v46, %v8284_v39  ;;  %v3008_v46 = vperm.slane %v6545_v22, %v8284_v39  ;;  %v2891_v22 = vpop.permute.xlu0 %2890 }
 0x85c   : > { %v3001_v6 = vsel %vm2988_vm1, %v3000_v19, %v2999_v24  ;;  %v6776_v24 = vsub.f32 %v8254_v41, %v6469_v20 }
 0x85e   : > { %4014 = vperm.xlu2 %5199, %v6651_v17   ;;  %v3002_v17 = vperm.slane %v6552_v63, %v8284_v39  ;;  %8286 = vst [vmem:[#allocation94_spill] sm:$0xff] %v6776_v24 }
 0x85f   : > { %4008 = vperm.xlu1 %5198, %v6586_v10   ;;  %v3006_v10 = vperm.slane %v6565_v31, %v6724_v8 }
 0x860   : > { %v2906_v18 = vpop.permute.xlu2 %2905 }
 0x861   : > { %v6721_v51 = vpop.permute.xlu1 %3951  ;;  %v3007_v63 = vsel %vm2988_vm1, %v3006_v10, %v3005_v42 }
 0x862   : > { %8283 = vst [vmem:[#allocation93_spill] sm:$0xff] %v6721_v51  ;;  %v3009_v51 = vperm.slane %v6645_v7, %v6724_v8 }
 0x864   : > { %v3010_v21 = vsel %vm2988_vm1, %v3009_v51, %v3008_v46  ;;  %v6786_v46 = vsub.f32 %v8258_v23, %v6435_v50 }
 0x866   : > { %4020 = vperm.xlu2 %5199, %v6432_v28   ;;  %v3004_v28 = vsel %vm2988_vm1, %v3003_v5, %v3002_v17 }
 0x867   : > { %4017 = vperm.xlu1 %5198, %v6603_v4   ;;  %v3086_v31 = vsel %vm1001_vm0, %v3004_v28, %v3001_v6  ;;  %v6755_v4 = vsub.f32 %v8254_v41, %v6359_v9  ;;  %v6768_v9 = vsub.f32 %v8251_v43, %v6452_v1  ;;  %v2900_v28 = vpop.permute.xlu0 %2899 }
 0x868   : > { %v3087_v60 = vsel %vm1003_vm10, %v3007_v63, %v3086_v31  ;;  %v6764_v10 = vpop.permute.xlu2 %2914  ;;  %v6796_v63 = vsub.f32 %v8263_v47, %v6457_v40  ;;  %v6800_v31 = vsub.f32 %v8251_v43, %v6375_v25  ;;  %v3035_v25 = vperm.slane %v2891_v22, %v8284_v39 }
 0x869   : > { %v6748_v7 = vpop.permute.xlu1 %3954  ;;  %v3088_v19 = vsel %vm1005_vm2, %v3010_v21, %v3087_v60  ;;  %v6808_v60 = vsub.f32 %v8263_v47, %v6485_v48  ;;  %v3038_v43 = vperm.slane %v6718_v13, %v8284_v39  ;;  %v3039_v48 = vperm.slane %v2900_v28, %v6724_v8 }
 0x86a   : > { %8285 = vst [vmem:[#allocation5_spill] sm:$0xff] %v6748_v7  ;;  %v3118_v42 = vsel %vm1427_vm15, %v3088_v19, inf  ;;  %v3042_v7 = vperm.slane %v2906_v18, %v6724_v8 }
 0x86b   : > { %8287 = vst [vmem:[#allocation95_spill] sm:$0xff] %v6800_v31  ;;  %v3040_v22 = vsel %vm2988_vm1, %v3039_v48, %v3038_v43 }
 0x86c   : > { %8289 = vst [vmem:[#allocation97_spill] sm:$0xff] %v6808_v60 }
 0x86e   : > { %2941 = vperm.xlu2 %5199, %v6755_v4  }
 0x86f   : > { %4023 = vperm.xlu1 %5198, %v6664_v34   ;;  %v2909_v5 = vpop.permute.xlu0 %2908 }
 0x870   : > { %v6778_v51 = vpop.permute.xlu2 %2923 }
 0x871   : > { %v6762_v17 = vpop.permute.xlu1 %2866  ;;  %3119 = vmin.xlane.f32.xlu0 %v3118_v42 }
 0x876   : > { %2950 = vperm.xlu2 %5199, %v6768_v9  }
 0x877   : > { %4026 = vperm.xlu1 %5198, %v6622_v61   ;;  %v6792_v20 = vpop.permute.xlu0 %2917 }
 0x878   : > { %v6789_v6 = vpop.permute.xlu2 %2932 }
 0x879   : > { %v6772_v21 = vpop.permute.xlu1 %2875 }
 0x87e   : > { %2959 = vperm.xlu2 %5199, %v6776_v24  }
 0x87f   : > { %2938 = vperm.xlu1 %5198, %v6681_v30   ;;  %v6811_v42 = vpop.permute.xlu0 %2926 }
 0x880   : > { %v6804_v23 = vpop.permute.xlu2 %3984 }
 0x881   : > { %v6782_v1 = vpop.permute.xlu1 %2884  ;;  %8288 = vst [vmem:[#allocation96_spill] sm:$0xff] %v6804_v23 }
 0x886   : > { %2968 = vperm.xlu2 %5199, %v6786_v46  }
 0x887   : > { %2947 = vperm.xlu1 %5198, %v6692_v54  }
 0x888   : > { %v6826_v13 = vpop.permute.xlu2 %3993 }
 0x889   : > { %v2894_v41 = vpop.permute.xlu1 %2893  ;;  %8290 = vst [vmem:[#allocation98_spill] sm:$0xff] %v6826_v13  ;;  %v2996_v13 = vperm.slane %v6550_v56, %v8284_v39 }
 0x88a   : > { %v3036_v19 = vperm.slane %v2894_v41, %v6724_v8 }
 0x88c   : > { %v3037_v23 = vsel %vm2988_vm1, %v3036_v19, %v3035_v25  ;;  %v6834_v19 = vpop.permute.xlu0 %2935 }
 0x88d   : > { %v3095_v54 = vsel %vm1001_vm0, %v3040_v22, %v3037_v23 }
 0x88e   : > { %2977 = vperm.xlu2 %5199, %v6796_v63  }
 0x88f   : > { %2956 = vperm.xlu1 %5198, %v6800_v31  }
 0x891   : > { %v2903_v50 = vpop.permute.xlu1 %2902 }
 0x892   : > { %v3041_v40 = vperm.slane %v2903_v50, %v8284_v39  ;;  %v3044_v50 = vperm.slane %v2909_v5, %v8284_v39  ;;  %v6841_v5 = vsub.f32 %v8263_v47, %v6474_v27 }
 0x894   : > { %v3043_v41 = vsel %vm2988_vm1, %v3042_v7, %v3041_v40 }
 0x896   : > { %4059 = vperm.xlu2 %5199, %v6808_v60  }
 0x897   : > { %2965 = vperm.xlu1 %5198, %v6808_v60   ;;  %v3096_v60 = vsel %vm1003_vm10, %v3043_v41, %v3095_v54  ;;  %v6847_v54 = vpop.permute.xlu0 %3990 }
 0x898   : > { %8292 = vst [vmem:[#allocation100_spill] sm:$0xff] %v6847_v54 }
 0x899   : > { %v2912_v24 = vpop.permute.xlu1 %2911 }
 0x89a   : > { %v3045_v31 = vperm.slane %v2912_v24, %v6724_v8 }
 0x89c   : > { %v3046_v18 = vsel %vm2988_vm1, %v3045_v31, %v3044_v50  ;;  %v6843_v31 = vpop.permute.xlu2 %3999 }
 0x89d   : > { %v3097_v28 = vsel %vm1005_vm2, %v3046_v18, %v3096_v60  ;;  %8291 = vst [vmem:[#allocation99_spill] sm:$0xff] %v6843_v31  ;;  %v2987_v31 = vperm.slane %v6524_v52, %v6724_v8 }
 0x89e   : > { %4071 = vperm.xlu2 %5199, %v6796_v63   ;;  %v3127_v7 = vsel %vm1427_vm15, %v3097_v28, inf  ;;  %v2991_v28 = vperm.slane %v6537_v2, %v6724_v8  ;;  %v2993_v2 = vperm.slane %v6500_v55, %v8284_v39 }
 0x89f   : > { %2974 = vperm.xlu1 %5198, %v6668_v58   ;;  %3128 = vmin.xlane.f32.xlu0 %v3127_v7  ;;  %v6857_v47 = vpop.permute.xlu0 %3996 }
 0x8a0   : > { %8295 = vst [vmem:[#allocation103_spill] sm:$0xff] %v6857_v47 }
 0x8a1   : > { %v6837_v24 = vpop.permute.xlu1 %2920 }
 0x8a4   : > { %v6852_v60 = vpop.permute.xlu2 %4002 }
 0x8a5   : > { %8293 = vst [vmem:[#allocation101_spill] sm:$0xff] %v6852_v60  ;;  %v2990_v60 = vperm.slane %v6487_v16, %v8284_v39  ;;  %v2994_v16 = vperm.slane %v6439_v14, %v6724_v8  ;;  %v3023_v14 = vperm.slane %v6762_v17, %v8284_v39 }
 0x8a6   : > { %4074 = vperm.xlu2 %5199, %v6627_v32  }
 0x8a7   : > { %2983 = vperm.xlu1 %5198, %v6841_v5   ;;  %v6865_v43 = vpop.permute.xlu0 %3960  ;;  %v2992_v54 = vsel %vm2988_vm1, %v2991_v28, %v2990_v60  ;;  %v3027_v60 = vperm.slane %v6772_v21, %v6724_v8  ;;  %v2995_v28 = vsel %vm2988_vm1, %v2994_v16, %v2993_v2  ;;  %v3011_v21 = vperm.slane %v6582_v53, %v8284_v39 }
 0x8a8   : > { %v3012_v53 = vperm.slane %v6559_v45, %v6724_v8  ;;  %v3029_v2 = vperm.slane %v6701_v37, %v8284_v39  ;;  %v8298_v37 = vld [vmem:[#allocation75_spill] sm:$0xff] }
 0x8a9   : > { %v6849_v23 = vpop.permute.xlu1 %2929 }
 0x8ac   : > { %v6861_v27 = vpop.permute.xlu2 %3963 }
 0x8ae   : > { %4035 = vperm.xlu2 %5199, %v6755_v4  }
 0x8af   : > { %4062 = vperm.xlu1 %5198, %v6786_v46   ;;  %v6872_v50 = vpop.permute.xlu0 %3969 }
 0x8b1   : > { %v6855_v40 = vpop.permute.xlu1 %3987 }
 0x8b2   : > { %8294 = vst [vmem:[#allocation102_spill] sm:$0xff] %v6855_v40 }
 0x8b4   : > { %v6870_v41 = vpop.permute.xlu2 %3972 }
 0x8b6   : > { %4044 = vperm.xlu2 %5199, %v6768_v9  }
 0x8b7   : > { %4077 = vperm.xlu1 %5198, %v6841_v5   ;;  %v6880_v7 = vpop.permute.xlu0 %3978 }
 0x8b9   : > { %v6863_v25 = vpop.permute.xlu1 %4005 }
 0x8ba   : > { %8296 = vst [vmem:[#allocation104_spill] sm:$0xff] %v6863_v25  ;;  %v2985_v25 = vperm.slane %v6417_v26, %v8284_v39 }
 0x8bc   : > { %v6876_v18 = vpop.permute.xlu2 %3981  ;;  %v2989_v40 = vsel %vm2988_vm1, %v2987_v31, %v2985_v25  ;;  %v3014_v31 = vperm.slane %v6658_v38, %v8284_v39  ;;  %v3024_v38 = vperm.slane %v6688_v49, %v6724_v8  ;;  %v3032_v25 = vperm.slane %v6782_v1, %v8284_v39 }
 0x8bd   : > { %v3083_v26 = vsel %vm1001_vm0, %v2992_v54, %v2989_v40  ;;  %v3030_v1 = vperm.slane %v6726_v0, %v6724_v8 }
 0x8be   : > { %v3084_v54 = vsel %vm1003_vm10, %v2995_v28, %v3083_v26  ;;  %v3025_v49 = vsel %vm2988_vm1, %v3024_v38, %v3023_v14  ;;  %v8299_v14 = vld [vmem:[#allocation73_spill] sm:$0xff] }
 0x8bf   : > { %4038 = vperm.xlu1 %5198, %v6556_v11   ;;  %v6920_v40 = vpop.permute.xlu0 %4011 }
 0x8c1   : > { %v6868_v48 = vpop.permute.xlu1 %3966 }
 0x8c4   : > { %v6900_v52 = vpop.permute.xlu2 %4014 }
 0x8c9   : > { %v6874_v22 = vpop.permute.xlu1 %3975 }
 0x8d1   : > { %v6882_v47 = vpop.permute.xlu1 %4008 }
 0x8d2   : > { %8297 = vst [vmem:[#allocation105_spill] sm:$0xff] %v6882_v47  ;;  %v2997_v47 = vperm.slane %v6511_v57, %v6724_v8  ;;  %v3026_v57 = vperm.slane %v6713_v15, %v8284_v39  ;;  %v3015_v15 = vperm.slane %v6597_v12, %v6724_v8  ;;  %v3033_v12 = vperm.slane %v6709_v59, %v6724_v8 }
 0x8d3   : > { %v3031_v59 = vsel %vm2988_vm1, %v3030_v1, %v3029_v2 }
 0x8d4   : > { %v2998_v56 = vsel %vm2988_vm1, %v2997_v47, %v2996_v13  ;;  %v3018_v13 = vperm.slane %v6673_v62, %v6724_v8  ;;  %v3028_v17 = vsel %vm2988_vm1, %v3027_v60, %v3026_v57  ;;  %v3017_v62 = vperm.slane %v6578_v44, %v8284_v39  ;;  %v6950_v57 = vpop.permute.xlu2 %4020 }
 0x8d5   : > { %v3085_v47 = vsel %vm1005_vm2, %v2998_v56, %v3084_v54  ;;  %v3016_v16 = vsel %vm2988_vm1, %v3015_v15, %v3014_v31  ;;  %v3092_v44 = vsel %vm1001_vm0, %v3028_v17, %v3025_v49  ;;  %v3013_v60 = vsel %vm2988_vm1, %v3012_v53, %v3011_v21 }
 0x8d6   : > { %v3115_v26 = vsel %vm1427_vm15, %v3085_v47, inf  ;;  %v3019_v45 = vsel %vm2988_vm1, %v3018_v13, %v3017_v62  ;;  %v3020_v56 = vperm.slane %v8298_v37, %v8284_v39  ;;  %v3034_v28 = vsel %vm2988_vm1, %v3033_v12, %v3032_v25  ;;  %v6971_v62 = vpop.permute.xlu0 %4029 }
 0x8d7   : > { %v3089_v0 = vsel %vm1001_vm0, %v3016_v16, %v3013_v60  ;;  %v3021_v54 = vperm.slane %v8299_v14, %v6724_v8  ;;  %v3050_v13 = vperm.slane %v6837_v24, %v8284_v39  ;;  %v3093_v21 = vsel %vm1003_vm10, %v3031_v59, %v3092_v44 }
 0x8d8   : > { %v3090_v47 = vsel %vm1003_vm10, %v3019_v45, %v3089_v0  ;;  %v3054_v15 = vperm.slane %v6849_v23, %v6724_v8  ;;  %v3094_v38 = vsel %vm1005_vm2, %v3034_v28, %v3093_v21  ;;  %v3047_v17 = vperm.slane %v6764_v10, %v8284_v39 }
 0x8d9   : > { %v6907_v55 = vpop.permute.xlu1 %4017  ;;  %v3051_v25 = vperm.slane %v6778_v51, %v6724_v8  ;;  %v3022_v53 = vsel %vm2988_vm1, %v3021_v54, %v3020_v56  ;;  %v3053_v24 = vperm.slane %v6811_v42, %v8284_v39  ;;  %v3048_v23 = vperm.slane %v6792_v20, %v6724_v8 }
 0x8da   : > { %v3091_v2 = vsel %vm1005_vm2, %v3022_v53, %v3090_v47  ;;  %v3124_v12 = vsel %vm1427_vm15, %v3094_v38, inf  ;;  %v3056_v49 = vperm.slane %v6789_v6, %v8284_v39  ;;  %v3057_v20 = vperm.slane %v6834_v19, %v6724_v8 }
 0x8db   : > { %v3052_v16 = vsel %vm2988_vm1, %v3051_v25, %v3050_v13  ;;  %v3055_v10 = vsel %vm2988_vm1, %v3054_v15, %v3053_v24  ;;  %v3049_v51 = vsel %vm2988_vm1, %v3048_v23, %v3047_v17  ;;  %v3121_v42 = vsel %vm1427_vm15, %v3091_v2, inf }
 0x8dc   : > { %v3098_v1 = vsel %vm1001_vm0, %v3052_v16, %v3049_v51  ;;  %v2942_v44 = vpop.permute.xlu2 %2941  ;;  %v3058_v60 = vsel %vm2988_vm1, %v3057_v20, %v3056_v49 }
 0x8dd   : > { %v3099_v45 = vsel %vm1003_vm10, %v3055_v10, %v3098_v1  ;;  %v3060_v21 = vperm.slane %v2942_v44, %v6724_v8 }
 0x8de   : > { %v3100_v37 = vsel %vm1005_vm2, %v3058_v60, %v3099_v45  ;;  %v2945_v56 = vpop.permute.xlu0 %2944 }
 0x8df   : > { %3116 = vmin.xlane.f32.xlu2 %v3115_v26  ;;  %v3130_v6 = vsel %vm1427_vm15, %v3100_v37, inf  ;;  %v3062_v13 = vperm.slane %v2945_v56, %v8284_v39 }
 0x8e1   : > { %v6952_v31 = vpop.permute.xlu1 %4023 }
 0x8e4   : > { %v2951_v59 = vpop.permute.xlu2 %2950 }
 0x8e5   : > { %v3065_v15 = vperm.slane %v2951_v59, %v8284_v39 }
 0x8e6   : > { %v2954_v0 = vpop.permute.xlu0 %2953 }
 0x8e7   : > { %3125 = vmin.xlane.f32.xlu2 %v3124_v12  ;;  %v3066_v25 = vperm.slane %v2954_v0, %v6724_v8 }
 0x8e9   : > { %v6983_v26 = vpop.permute.xlu1 %4026  ;;  %3122 = vmin.xlane.f32.xlu1 %v3121_v42  ;;  %v3067_v12 = vsel %vm2988_vm1, %v3066_v25, %v3065_v15 }
 0x8ec   : > { %v2960_v38 = vpop.permute.xlu2 %2959 }
 0x8ed   : > { %v3069_v2 = vperm.slane %v2960_v38, %v6724_v8 }
 0x8ee   : > { %v2963_v16 = vpop.permute.xlu0 %2962 }
 0x8f1   : > { %v2939_v28 = vpop.permute.xlu1 %2938  ;;  %3131 = vmin.xlane.f32.xlu1 %v3130_v6  ;;  %v3071_v6 = vperm.slane %v2963_v16, %v8284_v39 }
 0x8f2   : > { %v3059_v19 = vperm.slane %v2939_v28, %v8284_v39 }
 0x8f4   : > { %v3061_v17 = vsel %vm2988_vm1, %v3060_v21, %v3059_v19  ;;  %v2969_v20 = vpop.permute.xlu2 %2968 }
 0x8f5   : > { %v3074_v28 = vperm.slane %v2969_v20, %v8284_v39 }
 0x8f6   : > { %v2972_v45 = vpop.permute.xlu0 %2971 }
 0x8f9   : > { %v2948_v14 = vpop.permute.xlu1 %2947 }
 0x8fa   : > { %v3063_v54 = vperm.slane %v2948_v14, %v6724_v8  ;;  %v3075_v14 = vperm.slane %v2972_v45, %v6724_v8 }
 0x8fc   : > { %v3064_v47 = vsel %vm2988_vm1, %v3063_v54, %v3062_v13  ;;  %v2978_v60 = vpop.permute.xlu2 %2977 }
 0x8fd   : > { %v3101_v24 = vsel %vm1001_vm0, %v3064_v47, %v3061_v17  ;;  %v3078_v0 = vperm.slane %v2978_v60, %v6724_v8  ;;  %v3076_v47 = vsel %vm2988_vm1, %v3075_v14, %v3074_v28  ;;  %v8306_v28 = vld [vmem:[#allocation34_spill] sm:$0xff]  ;;  %v8307_v14 = vld [vmem:[#allocation35_spill] sm:$0xff] }
 0x8fe   : > { %v3102_v51 = vsel %vm1003_vm10, %v3067_v12, %v3101_v24  ;;  %v2981_v59 = vpop.permute.xlu0 %2980 }
 0x8ff   : > { %v3080_v21 = vperm.slane %v2981_v59, %v8284_v39 }
 0x901   : > { %v2957_v53 = vpop.permute.xlu1 %2956 }
 0x902   : > { %v3068_v23 = vperm.slane %v2957_v53, %v8284_v39 }
 0x904   : > { %v3070_v10 = vsel %vm2988_vm1, %v3069_v2, %v3068_v23  ;;  %v7024_v2 = vpop.permute.xlu2 %4059 }
 0x905   : > { %v3103_v49 = vsel %vm1005_vm2, %v3070_v10, %v3102_v51 }
 0x906   : > { %v3133_v42 = vsel %vm1427_vm15, %v3103_v49, inf  ;;  %v7026_v23 = vpop.permute.xlu0 %4056 }
 0x907   : > { %3134 = vmin.xlane.f32.xlu2 %v3133_v42 }
 0x909   : > { %v2966_v1 = vpop.permute.xlu1 %2965 }
 0x90a   : > { %v3072_v37 = vperm.slane %v2966_v1, %v6724_v8 }
 0x90c   : > { %v3073_v54 = vsel %vm2988_vm1, %v3072_v37, %v3071_v6  ;;  %v7028_v16 = vpop.permute.xlu2 %4071  ;;  %v8303_v37 = vld [vmem:[#allocation39_spill] sm:$0xff]  ;;  %v8305_v6 = vld [vmem:[#allocation37_spill] sm:$0xff] }
 0x90d   : > { %v3104_v38 = vsel %vm1001_vm0, %v3076_v47, %v3073_v54  ;;  %v8308_v47 = vld [vmem:[#allocation47_spill] sm:$0xff] }
 0x90e   : > { %v7030_v12 = vpop.permute.xlu0 %4065 }
 0x911   : > { %v2975_v44 = vpop.permute.xlu1 %2974 }
 0x912   : > { %v3077_v56 = vperm.slane %v2975_v44, %v8284_v39 }
 0x914   : > { %v3079_v13 = vsel %vm2988_vm1, %v3078_v0, %v3077_v56  ;;  %v7032_v10 = vpop.permute.xlu2 %4074  ;;  %v8304_v56 = vld [vmem:[#allocation44_spill] sm:$0xff] }
 0x915   : > { %v3105_v25 = vsel %vm1003_vm10, %v3079_v13, %v3104_v38 }
 0x916   : > { %v7034_v51 = vpop.permute.xlu0 %4068 }
 0x919   : > { %v2984_v19 = vpop.permute.xlu1 %2983 }
 0x91a   : > { %v3081_v15 = vperm.slane %v2984_v19, %v6724_v8 }
 0x91c   : > { %v3082_v17 = vsel %vm2988_vm1, %v3081_v15, %v3080_v21  ;;  %v7036_v49 = vpop.permute.xlu2 %4035  ;;  %v8309_v15 = vld [vmem:[#allocation45_spill] sm:$0xff] }
 0x91d   : > { %v3106_v53 = vsel %vm1005_vm2, %v3082_v17, %v3105_v25  ;;  %v8310_v17 = vld [vmem:[#allocation43_spill] sm:$0xff] }
 0x91e   : > { %v3136_v24 = vsel %vm1427_vm15, %v3106_v53, inf  ;;  %v7038_v42 = vpop.permute.xlu0 %4032 }
 0x91f   : > { %3137 = vmin.xlane.f32.xlu0 %v3136_v24  ;;  %8300 = vst [vmem:[#allocation75_spill] sm:$0xff] %v7038_v42 }
 0x921   : > { %v7050_v21 = vpop.permute.xlu1 %4062 }
 0x924   : > { %v7040_v1 = vpop.permute.xlu2 %4044 }
 0x925   : > { %8301 = vst [vmem:[#allocation73_spill] sm:$0xff] %v7040_v1 }
 0x926   : > { %v7042_v60 = vpop.permute.xlu0 %4041 }
 0x927   : > { %8302 = vst [vmem:[#allocation106_spill] sm:$0xff] %v7042_v60 }
 0x92e   : > { %v3120_v38 = vpop.xlane.xlu0 %3119 }
 0x92f   : > { %v3151_v24 = vperm.slane %v3120_v38, 0 }
 0x952   : > { %v3117_v20 = vpop.xlane.xlu2 %3116 }
 0x953   : > { %v3148_v45 = vperm.slane %v3117_v20, 1  ;;  %v3147_v44 = vperm.slane %v3117_v20, 0  ;;  %v3150_v13 = vperm.slane %v3117_v20, 3  ;;  %v3149_v19 = vperm.slane %v3117_v20, 2  ;;  %v7058_v20 = vpop.permute.xlu1 %4077 }
 0x955   : > { %vm3214_vm6 = vcmp.le.f32.partialorder %v8303_v37, %v3148_v45  ;;  %vm3212_vm8 = vcmp.le.f32.partialorder %v8304_v56, %v3147_v44  ;;  %vm3211_vm9 = vcmp.le.f32.partialorder %v8305_v6, %v3147_v44  ;;  %vm3217_vm11 = vcmp.le.f32.partialorder %v8308_v47, %v3150_v13  ;;  %v8311_v37 = vld [vmem:[#allocation49_spill] sm:$0xff]  ;;  %v8312_v56 = vld [vmem:[#allocation46_spill] sm:$0xff] }
 0x956   : > { %v3290_v59 = vsel %vm3214_vm6, %v8306_v28, 16  ;;  %v3288_v0 = vsel %vm3212_vm8, %v8306_v28, 16  ;;  %v3287_v54 = vsel %vm3211_vm9, %v8307_v14, 16  ;;  %vm3215_vm12 = vcmp.le.f32.partialorder %v8309_v15, %v3149_v19  ;;  %v8313_v6 = vld [vmem:[#allocation38_spill] sm:$0xff]  ;;  %v8314_v15 = vld [vmem:[#allocation52_spill] sm:$0xff] }
 0x957   : > { %3361 = vperm.xlu1 %5198, %v3290_v59   ;;  %3355 = vperm.xlu2 %5199, %v3288_v0   ;;  %vm3213_vm13 = vcmp.le.f32.partialorder %v8310_v17, %v3148_v45  ;;  %v3293_v25 = vsel %vm3217_vm11, %v8307_v14, 16  ;;  %v3291_v53 = vsel %vm3215_vm12, %v8307_v14, 16  ;;  %vm3220_vm14 = vcmp.le.f32.partialorder %v8311_v37, %v3151_v24  ;;  %v8315_v17 = vld [vmem:[#allocation25_spill] sm:$0xff] }
 0x958   : > { %3352 = vperm.xlu0 %5197, %v3287_v54   ;;  %v3289_v44 = vsel %vm3213_vm13, %v8307_v14, 16  ;;  %vm3218_vm3 = vcmp.le.f32.partialorder %v8312_v56, %v3150_v13  ;;  %vm3216_vm4 = vcmp.le.f32.partialorder %v8313_v6, %v3149_v19  ;;  %v3296_v45 = vsel %vm3220_vm14, %v8306_v28, 16  ;;  %v8316_v13 = vld [vmem:[#allocation40_spill] sm:$0xff]  ;;  %v8317_v56 = vld [vmem:[#allocation54_spill] sm:$0xff] }
 0x959   : > { %v3294_v59 = vsel %vm3218_vm3, %v8306_v28, 16  ;;  %v3152_v0 = vperm.slane %v3120_v38, 1  ;;  %v3153_v54 = vperm.slane %v3120_v38, 2  ;;  %v3292_v47 = vsel %vm3216_vm4, %v8306_v28, 16  ;;  %v8318_v6 = vld [vmem:[#allocation48_spill] sm:$0xff] }
 0x95a   : > { %vm3219_vm8 = vcmp.le.f32.partialorder %v8316_v13, %v3151_v24  ;;  %v8320_v13 = vld [vmem:[#allocation56_spill] sm:$0xff] }
 0x95b   : > { %vm3223_vm5 = vcmp.le.f32.partialorder %v8314_v15, %v3153_v54  ;;  %vm3221_vm6 = vcmp.le.f32.partialorder %v8315_v17, %v3152_v0  ;;  %v3295_v37 = vsel %vm3219_vm8, %v8307_v14, 16  ;;  %vm3224_vm11 = vcmp.le.f32.partialorder %v8318_v6, %v3153_v54  ;;  %v8323_v6 = vld [vmem:[#allocation59_spill] sm:$0xff] }
 0x95c   : > { %v3299_v19 = vsel %vm3223_vm5, %v8307_v14, 16  ;;  %v3300_v24 = vsel %vm3224_vm11, %v8306_v28, 16 }
 0x95f   : > { %3370 = vperm.xlu1 %5198, %v3293_v25   ;;  %3364 = vperm.xlu2 %5199, %v3291_v53   ;;  %v7068_v25 = vpop.permute.xlu1 %4038  ;;  %v3297_v53 = vsel %vm3221_vm6, %v8307_v14, 16 }
 0x960   : > { %3358 = vperm.xlu0 %5197, %v3289_v44   ;;  %v3154_v44 = vperm.slane %v3120_v38, 3 }
 0x962   : > { %vm3226_vm9 = vcmp.le.f32.partialorder %v8317_v56, %v3154_v44 }
 0x967   : > { %3379 = vperm.xlu1 %5198, %v3296_v45   ;;  %3373 = vperm.xlu2 %5199, %v3294_v59   ;;  %v3123_v45 = vpop.xlane.xlu1 %3122  ;;  %v8319_v59 = vld [vmem:[#allocation24_spill] sm:$0xff] }
 0x968   : > { %3367 = vperm.xlu0 %5197, %v3292_v47   ;;  %vm3222_vm12 = vcmp.le.f32.partialorder %v8319_v59, %v3152_v0  ;;  %v3302_v47 = vsel %vm3226_vm9, %v8306_v28, 16  ;;  %v3155_v15 = vperm.slane %v3123_v45, 0  ;;  %v3156_v17 = vperm.slane %v3123_v45, 1  ;;  %v8324_v59 = vld [vmem:[#allocation53_spill] sm:$0xff] }
 0x969   : > { %v3298_v38 = vsel %vm3222_vm12, %v8306_v28, 16 }
 0x96a   : > { %vm3229_vm13 = vcmp.le.f32.partialorder %v8320_v13, %v3156_v17  ;;  %vm3230_vm5 = vcmp.le.f32.partialorder %v8324_v59, %v3156_v17  ;;  %v3158_v13 = vperm.slane %v3123_v45, 3  ;;  %v8329_v59 = vld [vmem:[#allocation65_spill] sm:$0xff] }
 0x96b   : > { %v3305_v54 = vsel %vm3229_vm13, %v8307_v14, 16 }
 0x96f   : > { %3388 = vperm.xlu1 %5198, %v3299_v19   ;;  %3382 = vperm.xlu2 %5199, %v3297_v53   ;;  %v8321_v19 = vld [vmem:[#allocation51_spill] sm:$0xff]  ;;  %v8322_v53 = vld [vmem:[#allocation41_spill] sm:$0xff] }
 0x970   : > { %3376 = vperm.xlu0 %5197, %v3295_v37   ;;  %vm3227_vm14 = vcmp.le.f32.partialorder %v8321_v19, %v3155_v15  ;;  %vm3225_vm3 = vcmp.le.f32.partialorder %v8322_v53, %v3154_v44  ;;  %v3157_v37 = vperm.slane %v3123_v45, 2  ;;  %v3306_v44 = vsel %vm3230_vm5, %v8306_v28, 16 }
 0x971   : > { %v3303_v0 = vsel %vm3227_vm14, %v8307_v14, 16  ;;  %v3301_v56 = vsel %vm3225_vm3, %v8307_v14, 16 }
 0x972   : > { %vm3232_vm4 = vcmp.le.f32.partialorder %v8323_v6, %v3157_v37 }
 0x977   : > { %3397 = vperm.xlu1 %5198, %v3302_v47   ;;  %3391 = vperm.xlu2 %5199, %v3300_v24   ;;  %v3126_v47 = vpop.xlane.xlu2 %3125  ;;  %v8325_v24 = vld [vmem:[#allocation22_spill] sm:$0xff] }
 0x978   : > { %3385 = vperm.xlu0 %5197, %v3298_v38   ;;  %vm3228_vm6 = vcmp.le.f32.partialorder %v8325_v24, %v3155_v15  ;;  %v3308_v38 = vsel %vm3232_vm4, %v8306_v28, 16  ;;  %v3159_v53 = vperm.slane %v3126_v47, 0  ;;  %v3160_v45 = vperm.slane %v3126_v47, 1  ;;  %v8330_v24 = vld [vmem:[#allocation42_spill] sm:$0xff] }
 0x979   : > { %v3304_v19 = vsel %vm3228_vm6, %v8306_v28, 16  ;;  %vm3234_vm14 = vcmp.le.f32.partialorder %v8330_v24, %v3158_v13  ;;  %v8333_v24 = vld [vmem:[#allocation60_spill] sm:$0xff] }
 0x97a   : > { %vm3236_vm12 = vcmp.le.f32.partialorder %v6515_v35, %v3159_v53  ;;  %vm3238_vm13 = vcmp.le.f32.partialorder %v8329_v59, %v3160_v45  ;;  %v3129_v35 = vpop.xlane.xlu0 %3128  ;;  %vm3237_vm5 = vcmp.le.f32.partialorder %v6338_v29, %v3160_v45 }
 0x97f   : > { %3406 = vperm.xlu1 %5198, %v3305_v54   ;;  %3400 = vperm.xlu2 %5199, %v3303_v0   ;;  %v8326_v54 = vld [vmem:[#allocation55_spill] sm:$0xff]  ;;  %v7116_v59 = vpop.xlane.xlu2 %3134 }
 0x980   : > { %3394 = vperm.xlu0 %5197, %v3301_v56   ;;  %vm3233_vm8 = vcmp.le.f32.partialorder %v8326_v54, %v3158_v13  ;;  %v8327_v0 = vld [vmem:[#allocation63_spill] sm:$0xff]  ;;  %v3162_v54 = vperm.slane %v3126_v47, 3 }
 0x981   : > { %vm3235_vm9 = vcmp.le.f32.partialorder %v8327_v0, %v3159_v53  ;;  %v8328_v56 = vld [vmem:[#allocation23_spill] sm:$0xff]  ;;  %v3309_v17 = vsel %vm3233_vm8, %v8307_v14, 16  ;;  %v8331_v0 = vld [vmem:[#allocation66_spill] sm:$0xff] }
 0x982   : > { %vm3231_vm11 = vcmp.le.f32.partialorder %v8328_v56, %v3157_v37  ;;  %v3311_v15 = vsel %vm3235_vm9, %v8307_v14, 16  ;;  %v3314_v37 = vsel %vm3238_vm13, %v8306_v28, 16  ;;  %vm3241_vm4 = vcmp.le.f32.partialorder %v8331_v0, %v3162_v54  ;;  %v8336_v0 = vld [vmem:[#allocation69_spill] sm:$0xff] }
 0x983   : > { %v3307_v6 = vsel %vm3231_vm11, %v8307_v14, 16  ;;  %v3317_v53 = vsel %vm3241_vm4, %v8307_v14, 16  ;;  %v3163_v56 = vperm.slane %v3129_v35, 0  ;;  %vm3242_vm6 = vcmp.le.f32.partialorder %v6543_v36, %v3162_v54  ;;  %v8334_v36 = vld [vmem:[#allocation61_spill] sm:$0xff] }
 0x985   : > { %vm3244_vm8 = vcmp.le.f32.partialorder %v6607_v3, %v3163_v56  ;;  %v8335_v3 = vld [vmem:[#allocation26_spill] sm:$0xff] }
 0x986   : > { %v3320_v29 = vsel %vm3244_vm8, %v8306_v28, 16  ;;  %vm3243_vm13 = vcmp.le.f32.partialorder %v8335_v3, %v3163_v56 }
 0x987   : > { %3415 = vperm.xlu1 %5198, %v3308_v38   ;;  %3409 = vperm.xlu2 %5199, %v3306_v44   ;;  %v3312_v38 = vsel %vm3236_vm12, %v8306_v28, 16  ;;  %v3310_v44 = vsel %vm3234_vm14, %v8306_v28, 16 }
 0x988   : > { %3403 = vperm.xlu0 %5197, %v3304_v19   ;;  %v3161_v19 = vperm.slane %v3126_v47, 2  ;;  %v3318_v47 = vsel %vm3242_vm6, %v8306_v28, 16 }
 0x98a   : > { %vm3239_vm3 = vcmp.le.f32.partialorder %v6532_v33, %v3161_v19  ;;  %v8332_v33 = vld [vmem:[#allocation27_spill] sm:$0xff] }
 0x98b   : > { %v3315_v13 = vsel %vm3239_vm3, %v8307_v14, 16  ;;  %vm3240_vm9 = vcmp.le.f32.partialorder %v8332_v33, %v3161_v19  ;;  %v3319_v19 = vsel %vm3243_vm13, %v8307_v14, 16 }
 0x98c   : > { %v3316_v45 = vsel %vm3240_vm9, %v8306_v28, 16 }
 0x98f   : > { %3418 = vperm.xlu2 %5199, %v3309_v17   ;;  %3424 = vperm.xlu1 %5198, %v3311_v15   ;;  %v3313_v17 = vsel %vm3237_vm5, %v8307_v14, 16  ;;  %v3164_v15 = vperm.slane %v3129_v35, 1 }
 0x990   : > { %3412 = vperm.xlu0 %5197, %v3307_v6   ;;  %v3165_v6 = vperm.slane %v3129_v35, 2 }
 0x991   : > { %vm3245_vm11 = vcmp.le.f32.partialorder %v8333_v24, %v3164_v15  ;;  %v8339_v24 = vld [vmem:[#allocation71_spill] sm:$0xff] }
 0x992   : > { %vm3247_vm12 = vcmp.le.f32.partialorder %v8334_v36, %v3165_v6  ;;  %vm3248_vm14 = vcmp.le.f32.partialorder %v8336_v0, %v3165_v6  ;;  %v8340_v6 = vld [vmem:[#allocation81_spill] sm:$0xff]  ;;  %v8341_v36 = vld [vmem:[#allocation50_spill] sm:$0xff]  ;;  %v7140_v0 = vpop.xlane.xlu0 %3137 }
 0x993   : > { %v3324_v56 = vsel %vm3248_vm14, %v8306_v28, 16 }
 0x997   : > { %3427 = vperm.xlu2 %5199, %v3312_v38   ;;  %3433 = vperm.xlu1 %5198, %v3314_v37   ;;  %v3321_v38 = vsel %vm3245_vm11, %v8307_v14, 16  ;;  %v3323_v37 = vsel %vm3247_vm12, %v8307_v14, 16 }
 0x998   : > { %3421 = vperm.xlu0 %5197, %v3310_v44   ;;  %v3166_v44 = vperm.slane %v3129_v35, 3 }
 0x99a   : > { %vm3249_vm8 = vcmp.le.f32.partialorder %v8341_v36, %v3166_v44 }
 0x99f   : > { %3436 = vperm.xlu2 %5199, %v3315_v13   ;;  %3442 = vperm.xlu1 %5198, %v3317_v53   ;;  %v8337_v13 = vld [vmem:[#allocation78_spill] sm:$0xff]  ;;  %v3132_v53 = vpop.xlane.xlu1 %3131 }
 0x9a0   : > { %3430 = vperm.xlu0 %5197, %v3313_v17   ;;  %vm3250_vm3 = vcmp.le.f32.partialorder %v8337_v13, %v3166_v44  ;;  %v8338_v17 = vld [vmem:[#allocation30_spill] sm:$0xff] }
 0x9a1   : > { %vm3246_vm4 = vcmp.le.f32.partialorder %v8338_v17, %v3164_v15  ;;  %v3326_v33 = vsel %vm3250_vm3, %v8306_v28, 16  ;;  %v8342_v13 = vld [vmem:[#allocation74_spill] sm:$0xff]  ;;  %v8343_v17 = vld [vmem:[#allocation28_spill] sm:$0xff] }
 0x9a2   : > { %v3322_v35 = vsel %vm3246_vm4, %v8306_v28, 16 }
 0x9a7   : > { %3445 = vperm.xlu2 %5199, %v3318_v47   ;;  %3451 = vperm.xlu1 %5198, %v3320_v29   ;;  %v3167_v47 = vperm.slane %v3132_v53, 0  ;;  %v3168_v29 = vperm.slane %v3132_v53, 1 }
 0x9a8   : > { %3439 = vperm.xlu0 %5197, %v3316_v45  }
 0x9a9   : > { %vm3251_vm5 = vcmp.le.f32.partialorder %v8339_v24, %v3167_v47  ;;  %vm3253_vm6 = vcmp.le.f32.partialorder %v8340_v6, %v3168_v29  ;;  %vm3254_vm9 = vcmp.le.f32.partialorder %v8342_v13, %v3168_v29  ;;  %vm3252_vm12 = vcmp.le.f32.partialorder %v8343_v17, %v3167_v47 }
 0x9aa   : > { %v3327_v15 = vsel %vm3251_vm5, %v8307_v14, 16  ;;  %v3329_v3 = vsel %vm3253_vm6, %v8307_v14, 16  ;;  %v3330_v44 = vsel %vm3254_vm9, %v8306_v28, 16  ;;  %v3328_v24 = vsel %vm3252_vm12, %v8306_v28, 16 }
 0x9ab   : > { %v3172_v13 = vperm.slane %v7116_v59, 1 }
 0x9af   : > { %3454 = vperm.xlu2 %5199, %v3321_v38   ;;  %3460 = vperm.xlu1 %5198, %v3323_v37   ;;  %v3169_v38 = vperm.slane %v3132_v53, 2  ;;  %v3325_v37 = vsel %vm3249_vm8, %v8307_v14, 16 }
 0x9b0   : > { %3448 = vperm.xlu0 %5197, %v3319_v19  }
 0x9b1   : > { %v3356_v54 = vpop.permute.xlu2 %3355  ;;  %vm3256_vm11 = vcmp.le.f32.partialorder %v6664_v34, %v3169_v38 }
 0x9b2   : > { %v3544_v34 = vperm.slane %v3356_v54, %v6724_v8 }
 0x9b7   : > { %3463 = vperm.xlu2 %5199, %v3324_v56   ;;  %3469 = vperm.xlu1 %5198, %v3326_v33   ;;  %v3332_v56 = vsel %vm3256_vm11, %v8306_v28, 16  ;;  %v3170_v33 = vperm.slane %v3132_v53, 3  ;;  %v8344_v53 = vld [vmem:[#allocation29_spill] sm:$0xff]  ;;  %vm3261_vm11 = vcmp.le.f32.partialorder %v6556_v11, %v3172_v13 }
 0x9b8   : > { %3457 = vperm.xlu0 %5197, %v3322_v35   ;;  %v3171_v35 = vperm.slane %v7116_v59, 0  ;;  %vm3255_vm3 = vcmp.le.f32.partialorder %v8344_v53, %v3169_v38 }
 0x9b9   : > { %v7130_v45 = vpop.permute.xlu2 %3364  ;;  %vm3257_vm13 = vcmp.le.f32.partialorder %v6622_v61, %v3170_v33  ;;  %v3331_v17 = vsel %vm3255_vm3, %v8307_v14, 16 }
 0x9ba   : > { %vm3259_vm14 = vcmp.le.f32.partialorder %v6681_v30, %v3171_v35  ;;  %vm3260_vm4 = vcmp.le.f32.partialorder %v6755_v4, %v3171_v35 }
 0x9bf   : > { %3472 = vperm.xlu2 %5199, %v3327_v15   ;;  %3478 = vperm.xlu1 %5198, %v3329_v3   ;;  %v3333_v3 = vsel %vm3257_vm13, %v8307_v14, 16 }
 0x9c0   : > { %3466 = vperm.xlu0 %5197, %v3325_v37   ;;  %v3335_v37 = vsel %vm3259_vm14, %v8307_v14, 16 }
 0x9c1   : > { %v7138_v19 = vpop.permute.xlu2 %3373 }
 0x9c7   : > { %3481 = vperm.xlu2 %5199, %v3330_v44   ;;  %3487 = vperm.xlu1 %5198, %v3332_v56   ;;  %v8345_v56 = vld [vmem:[#allocation87_spill] sm:$0xff] }
 0x9c8   : > { %3475 = vperm.xlu0 %5197, %v3328_v24   ;;  %vm3262_vm5 = vcmp.le.f32.partialorder %v8345_v56, %v3172_v13  ;;  %v8346_v24 = vld [vmem:[#allocation57_spill] sm:$0xff]  ;;  %v8348_v13 = vld [vmem:[#allocation94_spill] sm:$0xff] }
 0x9c9   : > { %v3362_v6 = vpop.permute.xlu1 %3361  ;;  %v7149_v36 = vpop.permute.xlu2 %3382  ;;  %vm3258_vm6 = vcmp.le.f32.partialorder %v8346_v24, %v3170_v33  ;;  %v3338_v53 = vsel %vm3262_vm5, %v8306_v28, 16  ;;  %v3175_v24 = vperm.slane %v7140_v0, 0 }
 0x9ca   : > { %v3353_v29 = vpop.permute.xlu0 %3352  ;;  %v3547_v38 = vperm.slane %v3362_v6, %v6724_v8  ;;  %v3174_v6 = vperm.slane %v7116_v59, 3 }
 0x9cb   : > { %v3543_v47 = vperm.slane %v3353_v29, %v8284_v39 }
 0x9cc   : > { %vm3266_vm12 = vcmp.le.f32.partialorder %v8348_v13, %v3174_v6 }
 0x9cd   : > { %v3545_v15 = vsel %vm2988_vm1, %v3544_v34, %v3543_v47  ;;  %v3336_v47 = vsel %vm3260_vm4, %v8306_v28, 16 }
 0x9cf   : > { %3490 = vperm.xlu2 %5199, %v3333_v3   ;;  %3496 = vperm.xlu1 %5198, %v3335_v37   ;;  %v3173_v3 = vperm.slane %v7116_v59, 2  ;;  %v3334_v37 = vsel %vm3258_vm6, %v8306_v28, 16 }
 0x9d0   : > { %3484 = vperm.xlu0 %5197, %v3331_v17  }
 0x9d1   : > { %v7161_v54 = vpop.permute.xlu1 %3370  ;;  %v7163_v61 = vpop.permute.xlu2 %3391  ;;  %vm3263_vm8 = vcmp.le.f32.partialorder %v6768_v9, %v3173_v3 }
 0x9d2   : > { %v3359_v30 = vpop.permute.xlu0 %3358 }
 0x9d3   : > { %v3546_v44 = vperm.slane %v3359_v30, %v8284_v39  ;;  %v8347_v30 = vld [vmem:[#allocation95_spill] sm:$0xff] }
 0x9d4   : > { %vm3265_vm9 = vcmp.le.f32.partialorder %v8347_v30, %v3174_v6 }
 0x9d5   : > { %v3548_v29 = vsel %vm2988_vm1, %v3547_v38, %v3546_v44  ;;  %v3339_v44 = vsel %vm3263_vm8, %v8307_v14, 16  ;;  %v3341_v56 = vsel %vm3265_vm9, %v8307_v14, 16 }
 0x9d6   : > { %v3639_v34 = vsel %vm1001_vm0, %v3548_v29, %v3545_v15  ;;  %v3549_v15 = vperm.slane %v7130_v45, %v8284_v39  ;;  %v3337_v45 = vsel %vm3261_vm11, %v8307_v14, 16 }
 0x9d7   : > { %3499 = vperm.xlu2 %5199, %v3336_v47   ;;  %3505 = vperm.xlu1 %5198, %v3338_v53   ;;  %v8350_v47 = vld [vmem:[#allocation32_spill] sm:$0xff]  ;;  %v3342_v53 = vsel %vm3266_vm12, %v8306_v28, 16 }
 0x9d8   : > { %3493 = vperm.xlu0 %5197, %v3334_v37   ;;  %vm3264_vm14 = vcmp.le.f32.partialorder %v8350_v47, %v3173_v3  ;;  %v8351_v3 = vld [vmem:[#allocation31_spill] sm:$0xff] }
 0x9d9   : > { %v7177_v4 = vpop.permute.xlu1 %3379  ;;  %v7179_v33 = vpop.permute.xlu2 %3400  ;;  %vm3267_vm5 = vcmp.le.f32.partialorder %v8351_v3, %v3175_v24 }
 0x9da   : > { %v3368_v35 = vpop.permute.xlu0 %3367 }
 0x9db   : > { %v3550_v17 = vperm.slane %v3368_v35, %v6724_v8  ;;  %v3176_v35 = vperm.slane %v7140_v0, 1 }
 0x9dd   : > { %v3551_v59 = vsel %vm2988_vm1, %v3550_v17, %v3549_v15  ;;  %v3177_v15 = vperm.slane %v7140_v0, 2  ;;  %v3340_v17 = vsel %vm3264_vm14, %v8306_v28, 16  ;;  %vm3269_vm3 = vcmp.le.f32.partialorder %v6786_v46, %v3176_v35 }
 0x9de   : > { %v7189_v38 = vsel %vm1003_vm10, %v3551_v59, %v3639_v34  ;;  %v8349_v34 = vld [vmem:[#allocation97_spill] sm:$0xff] }
 0x9df   : > { %3508 = vperm.xlu2 %5199, %v3339_v44   ;;  %3514 = vperm.xlu1 %5198, %v3341_v56   ;;  %vm3268_vm13 = vcmp.le.f32.partialorder %v8349_v34, %v3175_v24  ;;  %vm3271_vm4 = vcmp.le.f32.partialorder %v6668_v58, %v3177_v15  ;;  %v3345_v56 = vsel %vm3269_vm3, %v8307_v14, 16  ;;  %v3178_v34 = vperm.slane %v7140_v0, 3  ;;  %v8352_v58 = vld [vmem:[#allocation36_spill] sm:$0xff] }
 0x9e0   : > { %3502 = vperm.xlu0 %5197, %v3337_v45   ;;  %v3344_v37 = vsel %vm3268_vm13, %v8306_v28, 16  ;;  %v3347_v45 = vsel %vm3271_vm4, %v8307_v14, 16  ;;  %vm3272_vm6 = vcmp.le.f32.partialorder %v6796_v63, %v3177_v15  ;;  %vm3270_vm9 = vcmp.le.f32.partialorder %v8352_v58, %v3176_v35 }
 0x9e1   : > { %v7195_v9 = vpop.permute.xlu1 %3388  ;;  %v7197_v29 = vpop.permute.xlu2 %3409  ;;  %vm3274_vm8 = vcmp.le.f32.partialorder %v6841_v5, %v3178_v34  ;;  %v3348_v24 = vsel %vm3272_vm6, %v8306_v28, 16  ;;  %v3346_v3 = vsel %vm3270_vm9, %v8306_v28, 16  ;;  %vm3273_vm11 = vcmp.le.f32.partialorder %v6627_v32, %v3178_v34 }
 0x9e2   : > { %v3377_v11 = vpop.permute.xlu0 %3376  ;;  %v3350_v0 = vsel %vm3274_vm8, %v8306_v28, 16  ;;  %v3349_v5 = vsel %vm3273_vm11, %v8307_v14, 16  ;;  %v3558_v28 = vperm.slane %v7149_v36, %v8284_v39  ;;  %v3552_v32 = vperm.slane %v7161_v54, %v8284_v39 }
 0x9e3   : > { %v3556_v34 = vperm.slane %v7177_v4, %v6724_v8  ;;  %v3562_v54 = vperm.slane %v7163_v61, %v6724_v8 }
 0x9e7   : > { %3517 = vperm.xlu2 %5199, %v3342_v53   ;;  %3523 = vperm.xlu1 %5198, %v3344_v37   ;;  %v3343_v53 = vsel %vm3267_vm5, %v8307_v14, 16 }
 0x9e8   : > { %3511 = vperm.xlu0 %5197, %v3340_v17  }
 0x9e9   : > { %v3398_v59 = vpop.permute.xlu1 %3397  ;;  %v7207_v6 = vpop.permute.xlu2 %3418 }
 0x9ea   : > { %v3386_v44 = vpop.permute.xlu0 %3385 }
 0x9eb   : > { %v3559_v1 = vperm.slane %v3386_v44, %v6724_v8  ;;  %v3553_v44 = vperm.slane %v7138_v19, %v6724_v8 }
 0x9ed   : > { %v3560_v14 = vsel %vm2988_vm1, %v3559_v1, %v3558_v28  ;;  %v3554_v1 = vsel %vm2988_vm1, %v3553_v44, %v3552_v32 }
 0x9ee   : > { %v3641_v19 = vsel %vm1005_vm2, %v3554_v1, %v7189_v38  ;;  %v3571_v38 = vperm.slane %v7197_v29, %v6724_v8 }
 0x9ef   : > { %3526 = vperm.xlu2 %5199, %v3345_v56   ;;  %3532 = vperm.xlu1 %5198, %v3347_v45  }
 0x9f0   : > { %3520 = vperm.xlu0 %5197, %v3343_v53  }
 0x9f1   : > { %v7216_v37 = vpop.permute.xlu1 %3406  ;;  %v7221_v46 = vpop.permute.xlu2 %3427 }
 0x9f2   : > { %v3395_v17 = vpop.permute.xlu0 %3394 }
 0x9f7   : > { %3535 = vperm.xlu2 %5199, %v3348_v24   ;;  %3541 = vperm.xlu1 %5198, %v3350_v0   ;;  %v3555_v24 = vperm.slane %v3377_v11, %v8284_v39  ;;  %v3564_v0 = vperm.slane %v3395_v17, %v8284_v39  ;;  %v3565_v11 = vperm.slane %v3398_v59, %v6724_v8 }
 0x9f8   : > { %3529 = vperm.xlu0 %5197, %v3346_v3   ;;  %v3561_v3 = vperm.slane %v7195_v9, %v8284_v39 }
 0x9f9   : > { %v3416_v56 = vpop.permute.xlu1 %3415  ;;  %v7227_v63 = vpop.permute.xlu2 %3436  ;;  %v3557_v36 = vsel %vm2988_vm1, %v3556_v34, %v3555_v24  ;;  %v3566_v17 = vsel %vm2988_vm1, %v3565_v11, %v3564_v0  ;;  %v3570_v34 = vperm.slane %v7216_v37, %v8284_v39  ;;  %v7264_v0 = vsel %vm1427_vm15, %v3641_v19, 2147483647 }
 0x9fa   : > { %v3404_v45 = vpop.permute.xlu0 %3403  ;;  %v3563_v9 = vsel %vm2988_vm1, %v3562_v54, %v3561_v3  ;;  %v3567_v3 = vperm.slane %v7179_v33, %v8284_v39  ;;  %v3574_v44 = vperm.slane %v3416_v56, %v6724_v8  ;;  %v3576_v11 = vperm.slane %v7207_v6, %v8284_v39 }
 0x9fb   : > { %v3568_v24 = vperm.slane %v3404_v45, %v6724_v8  ;;  %v3580_v33 = vperm.slane %v7221_v46, %v6724_v8  ;;  %v3572_v56 = vsel %vm2988_vm1, %v3571_v38, %v3570_v34  ;;  %v3585_v6 = vperm.slane %v7227_v63, %v8284_v39 }
 0x9fd   : > { %v3569_v54 = vsel %vm2988_vm1, %v3568_v24, %v3567_v3 }
 0xa00   : > { %3538 = vperm.xlu0 %5197, %v3349_v5   ;;  %v3642_v5 = vsel %vm1001_vm0, %v3560_v14, %v3557_v36 }
 0xa01   : > { %v3425_v35 = vpop.permute.xlu1 %3424  ;;  %v3446_v53 = vpop.permute.xlu2 %3445  ;;  %v3643_v59 = vsel %vm1003_vm10, %v3563_v9, %v3642_v5  ;;  %v3645_v9 = vsel %vm1001_vm0, %v3572_v56, %v3569_v54 }
 0xa02   : > { %v3413_v15 = vpop.permute.xlu0 %3412  ;;  %v3644_v61 = vsel %vm1005_vm2, %v3566_v17, %v3643_v59  ;;  %v3579_v36 = vperm.slane %v3425_v35, %v8284_v39  ;;  %v3589_v59 = vperm.slane %v3446_v53, %v6724_v8 }
 0xa03   : > { %v3573_v32 = vperm.slane %v3413_v15, %v8284_v39  ;;  %v7275_v15 = vsel %vm1427_vm15, %v3644_v61, 2147483647 }
 0xa04   : > { %v3581_v19 = vsel %vm2988_vm1, %v3580_v33, %v3579_v36 }
 0xa05   : > { %v3575_v35 = vsel %vm2988_vm1, %v3574_v44, %v3573_v32 }
 0xa06   : > { %v3646_v24 = vsel %vm1003_vm10, %v3575_v35, %v3645_v9 }
 0xa09   : > { %v3434_v58 = vpop.permute.xlu1 %3433  ;;  %v7252_v42 = vpop.permute.xlu2 %3454 }
 0xa0a   : > { %v3422_v60 = vpop.permute.xlu0 %3421  ;;  %v3583_v37 = vperm.slane %v3434_v58, %v6724_v8 }
 0xa0b   : > { %v3577_v45 = vperm.slane %v3422_v60, %v6724_v8  ;;  %v3665_v60 = vshra.s32 %v7264_v0, 16 }
 0xa0d   : > { %v3578_v17 = vsel %vm2988_vm1, %v3577_v45, %v3576_v11 }
 0xa0e   : > { %v3647_v3 = vsel %vm1005_vm2, %v3578_v17, %v3646_v24 }
 0xa0f   : > { %v7312_v36 = vsel %vm1427_vm15, %v3647_v3, 2147483647 }
 0xa10   : > { %v3695_v33 = vshra.s32 %v7312_v36, 16 }
 0xa11   : > { %v3443_v4 = vpop.permute.xlu1 %3442  ;;  %v3464_v61 = vpop.permute.xlu2 %3463 }
 0xa12   : > { %v3431_v28 = vpop.permute.xlu0 %3430  ;;  %v3588_v5 = vperm.slane %v3443_v4, %v8284_v39  ;;  %v7319_v56 = vcvt.s32.f32 %v3695_v33  ;;  %v3598_v24 = vperm.slane %v3464_v61, %v6724_v8 }
 0xa13   : > { %v3582_v14 = vperm.slane %v3431_v28, %v8284_v39  ;;  %v3680_v28 = vshra.s32 %v7275_v15, 16 }
 0xa14   : > { %v3590_v63 = vsel %vm2988_vm1, %v3589_v59, %v3588_v5 }
 0xa15   : > { %v3584_v58 = vsel %vm2988_vm1, %v3583_v37, %v3582_v14  ;;  %v7300_v14 = vcvt.s32.f32 %v3665_v60  ;;  %v7303_v38 = vcvt.s32.f32 %v3680_v28 }
 0xa16   : > { %v3648_v4 = vsel %vm1001_vm0, %v3584_v58, %v3581_v19 }
 0xa19   : > { %v3452_v29 = vpop.permute.xlu1 %3451  ;;  %v3473_v60 = vpop.permute.xlu2 %3472 }
 0xa1a   : > { %v3440_v1 = vpop.permute.xlu0 %3439  ;;  %v3592_v17 = vperm.slane %v3452_v29, %v6724_v8 }
 0xa1b   : > { %v3586_v46 = vperm.slane %v3440_v1, %v6724_v8  ;;  %v3594_v1 = vperm.slane %v7252_v42, %v8284_v39 }
 0xa1d   : > { %v3587_v34 = vsel %vm2988_vm1, %v3586_v46, %v3585_v6 }
 0xa1e   : > { %v3649_v32 = vsel %vm1003_vm10, %v3587_v34, %v3648_v4 }
 0xa1f   : > { %v3650_v45 = vsel %vm1005_vm2, %v3590_v63, %v3649_v32 }
 0xa20   : > { %3668 = vmin.xlane.f32.xlu2 %v7300_v14  ;;  %v7308_v53 = vsel %vm1427_vm15, %v3650_v45, 2147483647 }
 0xa21   : > { %v3461_v44 = vpop.permute.xlu1 %3460  ;;  %3683 = vmin.xlane.f32.xlu1 %v7303_v38  ;;  %v3710_v11 = vshra.s32 %v7308_v53, 16  ;;  %v3482_v19 = vpop.permute.xlu2 %3481 }
 0xa22   : > { %v3449_v37 = vpop.permute.xlu0 %3448  ;;  %v3597_v28 = vperm.slane %v3461_v44, %v8284_v39 }
 0xa23   : > { %v7316_v54 = vcvt.s32.f32 %v3710_v11  ;;  %v3591_v6 = vperm.slane %v3449_v37, %v8284_v39 }
 0xa24   : > { %v3599_v32 = vsel %vm2988_vm1, %v3598_v24, %v3597_v28  ;;  %v3607_v24 = vperm.slane %v3482_v19, %v6724_v8 }
 0xa25   : > { %v3593_v9 = vsel %vm2988_vm1, %v3592_v17, %v3591_v6 }
 0xa28   : > { %3713 = vmin.xlane.f32.xlu2 %v7316_v54 }
 0xa29   : > { %v3470_v35 = vpop.permute.xlu1 %3469 }
 0xa2a   : > { %v3458_v58 = vpop.permute.xlu0 %3457  ;;  %3698 = vmin.xlane.f32.xlu0 %v7319_v56  ;;  %v3601_v63 = vperm.slane %v3470_v35, %v6724_v8  ;;  %v3491_v35 = vpop.permute.xlu2 %3490 }
 0xa2b   : > { %v3595_v5 = vperm.slane %v3458_v58, %v6724_v8 }
 0xa2d   : > { %v3596_v46 = vsel %vm2988_vm1, %v3595_v5, %v3594_v1 }
 0xa2e   : > { %v3651_v4 = vsel %vm1001_vm0, %v3596_v46, %v3593_v9  ;;  %v3603_v46 = vperm.slane %v3473_v60, %v8284_v39 }
 0xa2f   : > { %v3652_v3 = vsel %vm1003_vm10, %v3599_v32, %v3651_v4  ;;  %v3612_v32 = vperm.slane %v3491_v35, %v8284_v39 }
 0xa31   : > { %v3479_v59 = vpop.permute.xlu1 %3478 }
 0xa32   : > { %v3467_v34 = vpop.permute.xlu0 %3466  ;;  %v3500_v1 = vpop.permute.xlu2 %3499  ;;  %v3606_v28 = vperm.slane %v3479_v59, %v8284_v39 }
 0xa33   : > { %v3600_v42 = vperm.slane %v3467_v34, %v8284_v39 }
 0xa35   : > { %v3602_v29 = vsel %vm2988_vm1, %v3601_v63, %v3600_v42 }
 0xa36   : > { %v3653_v45 = vsel %vm1005_vm2, %v3602_v29, %v3652_v3  ;;  %v3608_v29 = vsel %vm2988_vm1, %v3607_v24, %v3606_v28  ;;  %v3616_v24 = vperm.slane %v3500_v1, %v6724_v8 }
 0xa37   : > { %v7339_v44 = vsel %vm1427_vm15, %v3653_v45, 2147483647 }
 0xa38   : > { %v3725_v61 = vshra.s32 %v7339_v44, 16 }
 0xa39   : > { %v3488_v37 = vpop.permute.xlu1 %3487 }
 0xa3a   : > { %v3476_v11 = vpop.permute.xlu0 %3475  ;;  %v7342_v33 = vcvt.s32.f32 %v3725_v61  ;;  %v3610_v9 = vperm.slane %v3488_v37, %v6724_v8  ;;  %v3509_v61 = vpop.permute.xlu2 %3508 }
 0xa3b   : > { %v3604_v6 = vperm.slane %v3476_v11, %v6724_v8 }
 0xa3c   : > { %3728 = vmin.xlane.f32.xlu1 %v7342_v33 }
 0xa3d   : > { %v3605_v4 = vsel %vm2988_vm1, %v3604_v6, %v3603_v46 }
 0xa3e   : > { %v3654_v60 = vsel %vm1001_vm0, %v3608_v29, %v3605_v4 }
 0xa41   : > { %v3497_v58 = vpop.permute.xlu1 %3496 }
 0xa42   : > { %v3485_v5 = vpop.permute.xlu0 %3484  ;;  %v3615_v46 = vperm.slane %v3497_v58, %v8284_v39 }
 0xa43   : > { %v3609_v17 = vperm.slane %v3485_v5, %v8284_v39 }
 0xa45   : > { %v3611_v63 = vsel %vm2988_vm1, %v3610_v9, %v3609_v17  ;;  %v3518_v9 = vpop.permute.xlu2 %3517 }
 0xa46   : > { %v3655_v59 = vsel %vm1003_vm10, %v3611_v63, %v3654_v60  ;;  %v3625_v60 = vperm.slane %v3518_v9, %v6724_v8 }
 0xa49   : > { %v3506_v34 = vpop.permute.xlu1 %3505 }
 0xa4a   : > { %v3494_v42 = vpop.permute.xlu0 %3493  ;;  %v3619_v28 = vperm.slane %v3506_v34, %v6724_v8 }
 0xa4b   : > { %v3613_v3 = vperm.slane %v3494_v42, %v6724_v8 }
 0xa4d   : > { %v3614_v45 = vsel %vm2988_vm1, %v3613_v3, %v3612_v32  ;;  %v3621_v32 = vperm.slane %v3509_v61, %v8284_v39  ;;  %v3617_v3 = vsel %vm2988_vm1, %v3616_v24, %v3615_v46 }
 0xa4e   : > { %v3656_v19 = vsel %vm1005_vm2, %v3614_v45, %v3655_v59 }
 0xa4f   : > { %v7361_v37 = vsel %vm1427_vm15, %v3656_v19, 2147483647 }
 0xa50   : > { %v3740_v11 = vshra.s32 %v7361_v37, 16 }
 0xa51   : > { %v3515_v35 = vpop.permute.xlu1 %3514 }
 0xa52   : > { %v3503_v5 = vpop.permute.xlu0 %3502  ;;  %v7364_v6 = vcvt.s32.f32 %v3740_v11  ;;  %v3624_v63 = vperm.slane %v3515_v35, %v8284_v39 }
 0xa53   : > { %v3618_v17 = vperm.slane %v3503_v5, %v8284_v39 }
 0xa54   : > { %3743 = vmin.xlane.f32.xlu0 %v7364_v6  ;;  %v3626_v1 = vsel %vm2988_vm1, %v3625_v60, %v3624_v63 }
 0xa55   : > { %v3620_v4 = vsel %vm2988_vm1, %v3619_v28, %v3618_v17  ;;  %v3527_v17 = vpop.permute.xlu2 %3526 }
 0xa56   : > { %v3657_v58 = vsel %vm1001_vm0, %v3620_v4, %v3617_v3  ;;  %v3630_v24 = vperm.slane %v3527_v17, %v8284_v39 }
 0xa59   : > { %v3524_v59 = vpop.permute.xlu1 %3523 }
 0xa5a   : > { %v3512_v42 = vpop.permute.xlu0 %3511 }
 0xa5b   : > { %v3622_v29 = vperm.slane %v3512_v42, %v6724_v8  ;;  %v3628_v42 = vperm.slane %v3524_v59, %v6724_v8 }
 0xa5d   : > { %v3623_v34 = vsel %vm2988_vm1, %v3622_v29, %v3621_v32  ;;  %v3536_v63 = vpop.permute.xlu2 %3535 }
 0xa5e   : > { %v3658_v45 = vsel %vm1003_vm10, %v3623_v34, %v3657_v58  ;;  %v3634_v58 = vperm.slane %v3536_v63, %v6724_v8 }
 0xa5f   : > { %v3659_v19 = vsel %vm1005_vm2, %v3626_v1, %v3658_v45 }
 0xa60   : > { %v7383_v11 = vsel %vm1427_vm15, %v3659_v19, 2147483647 }
 0xa61   : > { %v3755_v61 = vshra.s32 %v7383_v11, 16  ;;  %v3533_v46 = vpop.permute.xlu1 %3532 }
 0xa62   : > { %v3521_v5 = vpop.permute.xlu0 %3520  ;;  %v3633_v29 = vperm.slane %v3533_v46, %v8284_v39 }
 0xa63   : > { %v7386_v35 = vcvt.s32.f32 %v3755_v61  ;;  %v3627_v4 = vperm.slane %v3521_v5, %v8284_v39 }
 0xa64   : > { %v3635_v61 = vsel %vm2988_vm1, %v3634_v58, %v3633_v29 }
 0xa65   : > { %3758 = vmin.xlane.f32.xlu2 %v7386_v35  ;;  %v3629_v60 = vsel %vm2988_vm1, %v3628_v42, %v3627_v4  ;;  %v3679_v4 = vand.u32 65535, %v7275_v15  ;;  %v3694_v15 = vand.u32 65535, %v7312_v36 }
 0xa67   : > { %v3681_v29 = vcvt.s32.f32 %v3679_v4 }
 0xa69   : > { %v3542_v3 = vpop.permute.xlu1 %3541 }
 0xa6a   : > { %v3530_v28 = vpop.permute.xlu0 %3529  ;;  %v3637_v45 = vperm.slane %v3542_v3, %v6724_v8 }
 0xa6b   : > { %v3631_v9 = vperm.slane %v3530_v28, %v6724_v8 }
 0xa6d   : > { %v3632_v32 = vsel %vm2988_vm1, %v3631_v9, %v3630_v24  ;;  %v3664_v24 = vand.u32 65535, %v7264_v0  ;;  %v3709_v0 = vand.u32 65535, %v7308_v53  ;;  %v3724_v53 = vand.u32 65535, %v7339_v44 }
 0xa6e   : > { %v3660_v34 = vsel %vm1001_vm0, %v3632_v32, %v3629_v60  ;;  %v3754_v44 = vand.u32 65535, %v7383_v11  ;;  %v8353_v11 = vld [vmem:[#allocation33_spill] sm:$0xff] }
 0xa6f   : > { %v3661_v5 = vsel %vm1003_vm10, %v3635_v61, %v3660_v34  ;;  %v3666_v42 = vcvt.s32.f32 %v3664_v24  ;;  %v3711_v34 = vcvt.s32.f32 %v3709_v0  ;;  %v3726_v36 = vcvt.s32.f32 %v3724_v53  ;;  %v8360_v53 = vld [vmem:[#allocation77_spill] sm:$0xff] }
 0xa72   : > { %v3539_v1 = vpop.permute.xlu0 %3538 }
 0xa73   : > { %v3636_v19 = vperm.slane %v3539_v1, %v8284_v39 }
 0xa75   : > { %v3638_v59 = vsel %vm2988_vm1, %v3637_v45, %v3636_v19  ;;  %v3696_v45 = vcvt.s32.f32 %v3694_v15 }
 0xa76   : > { %v3662_v17 = vsel %vm1005_vm2, %v3638_v59, %v3661_v5 }
 0xa77   : > { %v3768_v46 = vsel %vm1427_vm15, %v3662_v17, 2147483647 }
 0xa78   : > { %v3770_v28 = vshra.s32 %v3768_v46, 16 }
 0xa7a   : > { %v3772_v9 = vcvt.s32.f32 %v3770_v28  ;;  %v3756_v28 = vcvt.s32.f32 %v3754_v44 }
 0xa7c   : > { %3773 = vmin.xlane.f32.xlu1 %v3772_v9 }
 0xa93   : > { %v7407_v63 = vpop.xlane.xlu2 %3668 }
 0xa94   : > { %vm3670_vm12 = vcmp.eq.f32.partialorder %v7300_v14, %v7407_v63  ;;  %v7411_v32 = vpop.xlane.xlu1 %3683 }
 0xa95   : > { %vm3685_vm13 = vcmp.eq.f32.partialorder %v7303_v38, %v7411_v32  ;;  %v3671_v3 = vsel %vm3670_vm12, %v3666_v42, inf  ;;  %v4080_v42 = vperm.slane %v8353_v11, %v6724_v8 }
 0xa96   : > { %3672 = vmin.xlane.f32.xlu0 %v3671_v3  ;;  %v3686_v60 = vsel %vm3685_vm13, %v3681_v29, inf  ;;  %v8354_v29 = vld [vmem:[#allocation86_spill] sm:$0xff]  ;;  %v3675_v3 = vcvt.f32.s32 %v7407_v63  ;;  %v4092_v63 = vperm.slane %v8360_v53, %v6724_v8 }
 0xa97   : > { %3687 = vmin.xlane.f32.xlu2 %v3686_v60  ;;  %v8356_v60 = vld [vmem:[#allocation89_spill] sm:$0xff] }
 0xa98   : > { %v4098_v0 = vperm.slane %v8356_v60, %v6724_v8 }
 0xa9b   : > { %v7417_v58 = vpop.xlane.xlu2 %3713 }
 0xa9c   : > { %vm3715_vm14 = vcmp.eq.f32.partialorder %v7316_v54, %v7417_v58  ;;  %v3739_v54 = vand.u32 65535, %v7361_v37  ;;  %v3769_v37 = vand.u32 65535, %v3768_v46 }
 0xa9d   : > { %v7421_v14 = vpop.xlane.xlu0 %3698  ;;  %v3716_v1 = vsel %vm3715_vm14, %v3711_v34, inf  ;;  %v8358_v34 = vld [vmem:[#allocation64_spill] sm:$0xff] }
 0xa9e   : > { %vm3700_vm3 = vcmp.eq.f32.partialorder %v7319_v56, %v7421_v14  ;;  %3717 = vmin.xlane.f32.xlu0 %v3716_v1  ;;  %v3741_v5 = vcvt.s32.f32 %v3739_v54  ;;  %v4086_v1 = vperm.slane %v8358_v34, %v6724_v8  ;;  %v8362_v54 = vld [vmem:[#allocation67_spill] sm:$0xff] }
 0xa9f   : > { %v3701_v38 = vsel %vm3700_vm3, %v3696_v45, inf  ;;  %v8359_v45 = vld [vmem:[#allocation79_spill] sm:$0xff] }
 0xaa0   : > { %3702 = vmin.xlane.f32.xlu1 %v3701_v38  ;;  %v4095_v38 = vperm.slane %v8359_v45, %v6724_v8  ;;  %v8366_v45 = vld [vmem:[#allocation83_spill] sm:$0xff] }
 0xaa1   : > { %v4101_v53 = vperm.slane %v8366_v45, %v6724_v8 }
 0xaaf   : > { %v7426_v19 = vpop.xlane.xlu1 %3728 }
 0xab0   : > { %vm3730_vm4 = vcmp.eq.f32.partialorder %v7342_v33, %v7426_v19 }
 0xab1   : > { %v3731_v61 = vsel %vm3730_vm4, %v3726_v36, inf  ;;  %v8361_v36 = vld [vmem:[#allocation76_spill] sm:$0xff] }
 0xab2   : > { %3732 = vmin.xlane.f32.xlu2 %v3731_v61  ;;  %v4091_v61 = vperm.slane %v8361_v36, %v8284_v39 }
 0xab4   : > { %v4093_v34 = vsel %vm2988_vm1, %v4092_v63, %v4091_v61  ;;  %v5418_v63 = vmov 0.0  }
 0xac7   : > { %v7431_v59 = vpop.xlane.xlu0 %3743 }
 0xac8   : > { %vm3745_vm5 = vcmp.eq.f32.partialorder %v7364_v6, %v7431_v59  ;;  %v3771_v6 = vcvt.s32.f32 %v3769_v37 }
 0xac9   : > { %v3746_v56 = vsel %vm3745_vm5, %v3741_v5, inf  ;;  %v4082_v5 = vperm.slane %v8362_v54, %v8284_v39 }
 0xaca   : > { %3747 = vmin.xlane.f32.xlu1 %v3746_v56  ;;  %v8363_v56 = vld [vmem:[#allocation80_spill] sm:$0xff] }
 0xacb   : > { %v4097_v44 = vperm.slane %v8363_v56, %v8284_v39  ;;  %v8368_v56 = vld [vmem:[#allocation68_spill] sm:$0xff] }
 0xad8   : > { %v7436_v17 = vpop.xlane.xlu2 %3758 }
 0xad9   : > { %vm3760_vm6 = vcmp.eq.f32.partialorder %v7386_v35, %v7436_v17  ;;  %v4094_v35 = vperm.slane %v8354_v29, %v8284_v39 }
 0xada   : > { %v3761_v33 = vsel %vm3760_vm6, %v3756_v28, inf }
 0xadb   : > { %3762 = vmin.xlane.f32.xlu0 %v3761_v33  ;;  %v8364_v33 = vld [vmem:[#allocation70_spill] sm:$0xff] }
 0xadc   : > { %v4085_v37 = vperm.slane %v8364_v33, %v8284_v39 }
 0xae3   : > { %4047 = vperm.xlu1 %5198, %v8350_v47   ;;  %v8355_v47 = vld [vmem:[#allocation58_spill] sm:$0xff] }
 0xae4   : > { %v4079_v46 = vperm.slane %v8355_v47, %v8284_v39  ;;  %v8365_v47 = vld [vmem:[#allocation72_spill] sm:$0xff] }
 0xae5   : > { %v4089_v60 = vperm.slane %v8365_v47, %v6724_v8  ;;  %v4119_v47 = vperm.slane %v6872_v50, %v6724_v8 }
 0xaef   : > { %v7441_v24 = vpop.xlane.xlu1 %3773  ;;  %4050 = vperm.xlu0 %5197, %v8347_v30   ;;  %v3690_v30 = vcvt.f32.s32 %v7411_v32  ;;  %v4081_v32 = vsel %vm2988_vm1, %v4080_v42, %v4079_v46 }
 0xaf0   : > { %vm3775_vm8 = vcmp.eq.f32.partialorder %v3772_v9, %v7441_v24  ;;  %v8357_v9 = vld [vmem:[#allocation62_spill] sm:$0xff] }
 0xaf1   : > { %v3776_v4 = vsel %vm3775_vm8, %v3771_v6, inf  ;;  %v4083_v15 = vperm.slane %v8357_v9, %v6724_v8  ;;  %v4096_v6 = vsel %vm2988_vm1, %v4095_v38, %v4094_v35  ;;  %v4099_v9 = vsel %vm2988_vm1, %v4098_v0, %v4097_v44  ;;  %v8367_v35 = vld [vmem:[#allocation82_spill] sm:$0xff] }
 0xaf2   : > { %3777 = vmin.xlane.f32.xlu2 %v3776_v4  ;;  %v3676_v4 = vshll.u32 %v3675_v3, 16  ;;  %v3691_v42 = vshll.u32 %v3690_v30, 16  ;;  %v4100_v3 = vperm.slane %v8367_v35, %v8284_v39  ;;  %v4178_v54 = vsel %vm1001_vm0, %v4096_v6, %v4093_v34 }
 0xaf3   : > { %v3720_v0 = vcvt.f32.s32 %v7417_v58  ;;  %v4179_v30 = vsel %vm1003_vm10, %v4099_v9, %v4178_v54  ;;  %v4118_v6 = vperm.slane %v6868_v48, %v8284_v39  ;;  %v4116_v48 = vperm.slane %v6861_v27, %v6724_v8 }
 0xaf4   : > { %v4102_v33 = vsel %vm2988_vm1, %v4101_v53, %v4100_v3  ;;  %v4121_v9 = vperm.slane %v6870_v41, %v8284_v39  ;;  %v4115_v34 = vperm.slane %v6865_v43, %v8284_v39  ;;  %v4125_v41 = vperm.slane %v6876_v18, %v6724_v8 }
 0xaf5   : > { %v4120_v50 = vsel %vm2988_vm1, %v4119_v47, %v4118_v6  ;;  %v4124_v3 = vperm.slane %v6880_v7, %v8284_v39  ;;  %v3705_v18 = vcvt.f32.s32 %v7421_v14  ;;  %v8370_v14 = vld [vmem:[#allocation96_spill] sm:$0xff] }
 0xaf6   : > { %v4117_v53 = vsel %vm2988_vm1, %v4116_v48, %v4115_v34  ;;  %v4127_v6 = vperm.slane %v8370_v14, %v8284_v39  ;;  %v8373_v47 = vld [vmem:[#allocation100_spill] sm:$0xff] }
 0xaf7   : > { %v4184_v35 = vsel %vm1001_vm0, %v4120_v50, %v4117_v53  ;;  %v4126_v54 = vsel %vm2988_vm1, %v4125_v41, %v4124_v3  ;;  %v4130_v48 = vperm.slane %v8373_v47, %v8284_v39 }
 0xb09   : > { %v3673_v28 = vpop.xlane.xlu0 %3672 }
 0xb0a   : > { %4053 = vperm.xlu2 %5199, %v8348_v13   ;;  %v3674_v11 = vcvt.f32.s32 %v3673_v28  ;;  %v3688_v29 = vpop.xlane.xlu2 %3687  ;;  %v4084_v13 = vsel %vm2988_vm1, %v4083_v15, %v4082_v5  ;;  %v4088_v28 = vperm.slane %v8368_v56, %v8284_v39  ;;  %v4087_v5 = vsel %vm2988_vm1, %v4086_v1, %v4085_v37 }
 0xb0b   : > { %v3689_v46 = vcvt.f32.s32 %v3688_v29  ;;  %v4175_v15 = vsel %vm1001_vm0, %v4084_v13, %v4081_v32  ;;  %v7506_v32 = vsel %vm1005_vm2, %v4102_v33, %v4179_v30  ;;  %v3721_v1 = vshll.u32 %v3720_v0, 16 }
 0xb0c   : > { %v3677_v36 = vadd.s32 %v3676_v4, %v3674_v11  ;;  %v4090_v58 = vsel %vm2988_vm1, %v4089_v60, %v4088_v28  ;;  %v4122_v4 = vperm.slane %v6874_v22, %v6724_v8  ;;  %v4176_v60 = vsel %vm1003_vm10, %v4087_v5, %v4175_v15  ;;  %v8369_v15 = vld [vmem:[#allocation102_spill] sm:$0xff] }
 0xb0d   : > { %v3692_v38 = vadd.s32 %v3691_v42, %v3689_v46  ;;  %v7522_v46 = vsel %vm1005_vm2, %v4090_v58, %v4176_v60  ;;  %v3706_v30 = vshll.u32 %v3705_v18, 16  ;;  %v4128_v5 = vperm.slane %v8369_v15, %v6724_v8  ;;  %v8380_v18 = vld [vmem:[#allocation5_spill] sm:$0xff] }
 0xb0e   : > { %vm3783_vm9 = vcmp.eq.s32.totalorder %v8284_v39, %v3677_v36  ;;  %v4123_v45 = vsel %vm2988_vm1, %v4122_v4, %v4121_v9  ;;  %v3735_v33 = vcvt.f32.s32 %v7426_v19  ;;  %v8371_v4 = vld [vmem:[#allocation98_spill] sm:$0xff]  ;;  %v8375_v9 = vld [vmem:[#allocation92_spill] sm:$0xff]  ;;  %v8376_v19 = vld [vmem:[#allocation93_spill] sm:$0xff] }
 0xb0f   : > { %vm3784_vm11 = vcmp.eq.s32.totalorder %v8284_v39, %v3692_v38  ;;  %v7491_v61 = vsel %vm3783_vm9, 1.0, %v5418_v63  ;;  %v4185_v13 = vsel %vm1003_vm10, %v4123_v45, %v4184_v35  ;;  %v4110_v34 = vperm.slane %v8376_v19, %v6724_v8  ;;  %v8377_v45 = vld [vmem:[#allocation104_spill] sm:$0xff] }
 0xb10   : > { %v7496_v44 = vsel %vm3784_vm11, 1.0, %v5418_v63  ;;  %vm3815_vm13 = vcmp.gt.f32.partialorder %v7491_v61, 0.5  ;;  %v7548_v56 = vsel %vm1005_vm2, %v4126_v54, %v4185_v13  ;;  %v4129_v50 = vsel %vm2988_vm1, %v4128_v5, %v4127_v6  ;;  %v8382_v5 = vld [vmem:[#allocation88_spill] sm:$0xff]  ;;  %v8383_v6 = vld [vmem:[#allocation103_spill] sm:$0xff] }
 0xb11   : > { %v3718_v11 = vpop.xlane.xlu0 %3717  ;;  %vm3816_vm12 = vcmp.gt.f32.partialorder %v7496_v44, 0.5  ;;  %v7528_v27 = vsel %vm3815_vm13, 1e+30, %v7522_v46  ;;  %v4137_v53 = vperm.slane %v8377_v45, %v6724_v8  ;;  %v3736_v3 = vshll.u32 %v3735_v33, 16 }
 0xb12   : > { %v3719_v37 = vcvt.f32.s32 %v3718_v11  ;;  %v7509_v29 = vsel %vm3816_vm12, 1e+30, %v7506_v32  ;;  %v4215_v43 = vsel %vm1427_vm15, %v7528_v27, inf  ;;  %v4131_v11 = vperm.slane %v8371_v4, %v6724_v8 }
 0xb13   : > { %v4218_v22 = vsel %vm1427_vm15, %v7509_v29, inf  ;;  %v3703_v38 = vpop.xlane.xlu1 %3702  ;;  %v4109_v14 = vperm.slane %v8382_v5, %v8284_v39  ;;  %v4133_v33 = vperm.slane %v8383_v6, %v8284_v39 }
 0xb14   : > { %v3722_v42 = vadd.s32 %v3721_v1, %v3719_v37  ;;  %4219 = vmin.xlane.f32.xlu1 %v4218_v22  ;;  %v3704_v0 = vcvt.f32.s32 %v3703_v38  ;;  %v8372_v1 = vld [vmem:[#allocation85_spill] sm:$0xff]  ;;  %v8374_v22 = vld [vmem:[#allocation84_spill] sm:$0xff]  ;;  %v8379_v38 = vld [vmem:[#allocation91_spill] sm:$0xff] }
 0xb15   : > { %v4104_v37 = vperm.slane %v8372_v1, %v6724_v8  ;;  %v4106_v60 = vperm.slane %v8374_v22, %v8284_v39  ;;  %v4103_v54 = vperm.slane %v8379_v38, %v8284_v39  ;;  %v8384_v1 = vld [vmem:[#allocation90_spill] sm:$0xff]  ;;  %v3750_v38 = vcvt.f32.s32 %v7431_v59 }
 0xb16   : > { %vm3786_vm14 = vcmp.eq.s32.totalorder %v8284_v39, %v3722_v42  ;;  %v3707_v58 = vadd.s32 %v3706_v30, %v3704_v0  ;;  %v4107_v42 = vperm.slane %v8375_v9, %v6724_v8  ;;  %v4112_v0 = vperm.slane %v8380_v18, %v8284_v39 }
 0xb17   : > { %v7536_v36 = vsel %vm3786_vm14, 1.0, %v5418_v63  ;;  %v4132_v30 = vsel %vm2988_vm1, %v4131_v11, %v4130_v48  ;;  %v4113_v47 = vperm.slane %v8384_v1, %v6724_v8  ;;  %v4111_v48 = vsel %vm2988_vm1, %v4110_v34, %v4109_v14 }
 0xb18   : > { %vm3818_vm3 = vcmp.gt.f32.partialorder %v7536_v36, 0.5  ;;  %vm3785_vm4 = vcmp.eq.s32.totalorder %v8284_v39, %v3707_v58  ;;  %v4187_v58 = vsel %vm1001_vm0, %v4132_v30, %v4129_v50  ;;  %v4108_v22 = vsel %vm2988_vm1, %v4107_v42, %v4106_v60  ;;  %v8385_v30 = vld [vmem:[#allocation105_spill] sm:$0xff] }
 0xb19   : > { %4216 = vmin.xlane.f32.xlu0 %v4215_v43  ;;  %v7551_v28 = vsel %vm3818_vm3, 1e+30, %v7548_v56  ;;  %v8378_v43 = vld [vmem:[#allocation99_spill] sm:$0xff]  ;;  %v7595_v11 = vsel %vm3785_vm4, 1.0, %v5418_v63  ;;  %v4105_v45 = vsel %vm2988_vm1, %v4104_v37, %v4103_v54  ;;  %v4114_v60 = vsel %vm2988_vm1, %v4113_v47, %v4112_v0 }
 0xb1a   : > { %v4224_v7 = vsel %vm1427_vm15, %v7551_v28, inf  ;;  %v4134_v35 = vperm.slane %v8378_v43, %v6724_v8  ;;  %vm3817_vm8 = vcmp.gt.f32.partialorder %v7595_v11, 0.5  ;;  %v4181_v34 = vsel %vm1001_vm0, %v4108_v22, %v4105_v45 }
 0xb1b   : > { %v4182_v37 = vsel %vm1003_vm10, %v4111_v48, %v4181_v34  ;;  %v4143_v54 = vperm.slane %v6907_v55, %v6724_v8  ;;  %v4146_v18 = vperm.slane %v6952_v31, %v6724_v8  ;;  %v4142_v0 = vperm.slane %v6900_v52, %v8284_v39 }
 0xb1c   : > { %v4135_v19 = vsel %vm2988_vm1, %v4134_v35, %v4133_v33  ;;  %v7619_v35 = vsel %vm1005_vm2, %v4114_v60, %v4182_v37  ;;  %v4145_v14 = vperm.slane %v6950_v57, %v8284_v39  ;;  %v3751_v59 = vshll.u32 %v3750_v38, 16 }
 0xb1d   : > { %v4140_v55 = vperm.slane %v6920_v40, %v6724_v8  ;;  %v4149_v31 = vperm.slane %v6971_v62, %v6724_v8  ;;  %v4144_v52 = vsel %vm2988_vm1, %v4143_v54, %v4142_v0  ;;  %v4166_v48 = vperm.slane %v7050_v21, %v8284_v39 }
 0xb1e   : > { %v4147_v33 = vsel %vm2988_vm1, %v4146_v18, %v4145_v14  ;;  %v3780_v45 = vcvt.f32.s32 %v7441_v24  ;;  %v4164_v60 = vperm.slane %v7024_v2, %v6724_v8  ;;  %v4163_v37 = vperm.slane %v7026_v23, %v8284_v39  ;;  %v8386_v14 = vld [vmem:[#allocation75_spill] sm:$0xff] }
 0xb1f   : > { %v4172_v2 = vperm.slane %v7032_v10, %v8284_v39  ;;  %v4169_v23 = vperm.slane %v7034_v51, %v8284_v39  ;;  %v4151_v10 = vperm.slane %v8386_v14, %v8284_v39 }
 0xb20   : > { %v3781_v24 = vshll.u32 %v3780_v45, 16  ;;  %v4165_v18 = vsel %vm2988_vm1, %v4164_v60, %v4163_v37 }
 0xb21   : > { %4225 = vmin.xlane.f32.xlu0 %v4224_v7  ;;  %v8381_v7 = vld [vmem:[#allocation101_spill] sm:$0xff] }
 0xb22   : > { %v4136_v15 = vperm.slane %v8381_v7, %v8284_v39  ;;  %v4139_v7 = vperm.slane %v8385_v30, %v8284_v39 }
 0xb24   : > { %v4138_v9 = vsel %vm2988_vm1, %v4137_v53, %v4136_v15  ;;  %v4148_v15 = vperm.slane %v6983_v26, %v8284_v39 }
 0xb25   : > { %v3733_v41 = vpop.xlane.xlu2 %3732 }
 0xb26   : > { %v3734_v13 = vcvt.f32.s32 %v3733_v41  ;;  %v4188_v41 = vsel %vm1003_vm10, %v4135_v19, %v4187_v58  ;;  %v4141_v58 = vsel %vm2988_vm1, %v4140_v55, %v4139_v7  ;;  %v4150_v26 = vsel %vm2988_vm1, %v4149_v31, %v4148_v15 }
 0xb27   : > { %v7608_v42 = vsel %vm1005_vm2, %v4138_v9, %v4188_v41  ;;  %v4190_v57 = vsel %vm1001_vm0, %v4144_v52, %v4141_v58  ;;  %v3765_v19 = vcvt.f32.s32 %v7436_v17  ;;  %v4167_v41 = vperm.slane %v7030_v12, %v6724_v8 }
 0xb28   : > { %v3737_v4 = vadd.s32 %v3736_v3, %v3734_v13  ;;  %v7622_v3 = vsel %vm3817_vm8, 1e+30, %v7619_v35  ;;  %v4191_v40 = vsel %vm1003_vm10, %v4147_v33, %v4190_v57  ;;  %v4170_v17 = vperm.slane %v7028_v16, %v6724_v8 }
 0xb29   : > { %v4221_v13 = vsel %vm1427_vm15, %v7622_v3, inf  ;;  %v7655_v62 = vsel %vm1005_vm2, %v4150_v26, %v4191_v40  ;;  %v3766_v21 = vshll.u32 %v3765_v19, 16  ;;  %v4152_v16 = vperm.slane %v7036_v49, %v6724_v8 }
 0xb2a   : > { %vm3787_vm5 = vcmp.eq.s32.totalorder %v8284_v39, %v3737_v4  ;;  %v4171_v51 = vsel %vm2988_vm1, %v4170_v17, %v4169_v23 }
 0xb2b   : > { %v7602_v50 = vsel %vm3787_vm5, 1.0, %v5418_v63  ;;  %v4153_v58 = vsel %vm2988_vm1, %v4152_v16, %v4151_v10 }
 0xb2c   : > { %vm3819_vm6 = vcmp.gt.f32.partialorder %v7602_v50, 0.5 }
 0xb2d   : > { %v7613_v53 = vsel %vm3819_vm6, 1e+30, %v7608_v42 }
 0xb2e   : > { %v4227_v43 = vsel %vm1427_vm15, %v7613_v53, inf }
 0xb2f   : > { %4228 = vmin.xlane.f32.xlu1 %v4227_v43  ;;  %v4168_v43 = vsel %vm2988_vm1, %v4167_v41, %v4166_v48 }
 0xb30   : > { %v4196_v7 = vsel %vm1001_vm0, %v4168_v43, %v4165_v18 }
 0xb31   : > { %v4197_v52 = vsel %vm1003_vm10, %v4171_v51, %v4196_v7 }
 0xb33   : > { %4222 = vmin.xlane.f32.xlu2 %v4221_v13  ;;  %v4173_v13 = vperm.slane %v7058_v20, %v6724_v8  ;;  %v4154_v20 = vperm.slane %v7068_v25, %v8284_v39  ;;  %v8388_v25 = vld [vmem:[#allocation73_spill] sm:$0xff] }
 0xb34   : > { %v4157_v55 = vperm.slane %v8388_v25, %v8284_v39 }
 0xb35   : > { %v4174_v15 = vsel %vm2988_vm1, %v4173_v13, %v4172_v2 }
 0xb3d   : > { %v3748_v5 = vpop.xlane.xlu1 %3747 }
 0xb3e   : > { %v3749_v6 = vcvt.f32.s32 %v3748_v5 }
 0xb40   : > { %v3752_v4 = vadd.s32 %v3751_v59, %v3749_v6  ;;  %v8387_v59 = vld [vmem:[#allocation106_spill] sm:$0xff] }
 0xb41   : > { %v4155_v6 = vperm.slane %v8387_v59, %v6724_v8 }
 0xb42   : > { %vm3788_vm9 = vcmp.eq.s32.totalorder %v8284_v39, %v3752_v4  ;;  %v7705_v4 = vsel %vm1005_vm2, %v4174_v15, %v4197_v52 }
 0xb43   : > { %v7650_v1 = vsel %vm3788_vm9, 1.0, %v5418_v63  ;;  %v4156_v33 = vsel %vm2988_vm1, %v4155_v6, %v4154_v20 }
 0xb44   : > { %vm3820_vm11 = vcmp.gt.f32.partialorder %v7650_v1, 0.5  ;;  %v4193_v45 = vsel %vm1001_vm0, %v4156_v33, %v4153_v58 }
 0xb45   : > { %v7658_v47 = vsel %vm3820_vm11, 1e+30, %v7655_v62 }
 0xb46   : > { %v4230_v22 = vsel %vm1427_vm15, %v7658_v47, inf }
 0xb47   : > { %4231 = vmin.xlane.f32.xlu2 %v4230_v22 }
 0xb4e   : > { %v3763_v9 = vpop.xlane.xlu0 %3762 }
 0xb4f   : > { %v3764_v34 = vcvt.f32.s32 %v3763_v9 }
 0xb51   : > { %v3767_v0 = vadd.s32 %v3766_v21, %v3764_v34 }
 0xb53   : > { %vm3789_vm13 = vcmp.eq.s32.totalorder %v8284_v39, %v3767_v0 }
 0xb54   : > { %v7714_v19 = vsel %vm3789_vm13, 1.0, %v5418_v63 }
 0xb55   : > { %v4048_v54 = vpop.permute.xlu1 %4047  ;;  %vm3821_vm3 = vcmp.gt.f32.partialorder %v7714_v19, 0.5 }
 0xb56   : > { %v4158_v5 = vperm.slane %v4048_v54, %v6724_v8 }
 0xb58   : > { %v4159_v26 = vsel %vm2988_vm1, %v4158_v5, %v4157_v55 }
 0xb59   : > { %v4194_v60 = vsel %vm1003_vm10, %v4159_v26, %v4193_v45 }
 0xb61   : > { %v4051_v49 = vpop.permute.xlu0 %4050 }
 0xb62   : > { %v4160_v22 = vperm.slane %v4051_v49, %v8284_v39 }
 0xb65   : > { %v3778_v38 = vpop.xlane.xlu2 %3777 }
 0xb66   : > { %v3779_v12 = vcvt.f32.s32 %v3778_v38 }
 0xb68   : > { %v3782_v30 = vadd.s32 %v3781_v24, %v3779_v12 }
 0xb6a   : > { %vm3790_vm12 = vcmp.eq.s32.totalorder %v8284_v39, %v3782_v30 }
 0xb6b   : > { %v7699_v31 = vsel %vm3790_vm12, 1.0, %v5418_v63 }
 0xb6c   : > { %vm3822_vm14 = vcmp.gt.f32.partialorder %v7699_v31, 0.5 }
 0xb6d   : > { %v4054_v57 = vpop.permute.xlu2 %4053  ;;  %v4214_v40 = vsel %vm3822_vm14, 1e+30, %v7705_v4 }
 0xb6e   : > { %v4161_v9 = vperm.slane %v4054_v57, %v6724_v8  ;;  %v4236_v48 = vsel %vm1427_vm15, %v4214_v40, inf }
 0xb6f   : > { %4237 = vmin.xlane.f32.xlu1 %v4236_v48 }
 0xb70   : > { %v4162_v41 = vsel %vm2988_vm1, %v4161_v9, %v4160_v22 }
 0xb71   : > { %v7721_v34 = vsel %vm1005_vm2, %v4162_v41, %v4194_v60 }
 0xb72   : > { %v4213_v37 = vsel %vm3821_vm3, 1e+30, %v7721_v34 }
 0xb73   : > { %v4233_v8 = vsel %vm1427_vm15, %v4213_v37, inf }
 0xb74   : > { %4234 = vmin.xlane.f32.xlu0 %v4233_v8 }
 0xb87   : > { %v4220_v43 = vpop.xlane.xlu1 %4219 }
 0xb88   : > { %vm4240_vm4 = vcmp.le.f32.partialorder %v7509_v29, %v4220_v43 }
 0xb89   : > { %v4248_v13 = vsel %vm4240_vm4, %v8284_v39, 16 }
 0xb8a   : > { %v4270_v21 = vsel %vm1427_vm15, %v4248_v13, 2147483647 }
 0xb8b   : > { %v4272_v38 = vshra.s32 %v4270_v21, 16  ;;  %v4271_v45 = vand.u32 65535, %v4270_v21 }
 0xb8c   : > { %v4217_v17 = vpop.xlane.xlu0 %4216 }
 0xb8d   : > { %vm4239_vm0 = vcmp.le.f32.partialorder %v7528_v27, %v4217_v17  ;;  %v4274_v24 = vcvt.s32.f32 %v4272_v38  ;;  %v4273_v60 = vcvt.s32.f32 %v4271_v45 }
 0xb8e   : > { %v4247_v54 = vsel %vm4239_vm0, %v8284_v39, 16 }
 0xb8f   : > { %v4255_v12 = vsel %vm1427_vm15, %v4247_v54, 2147483647  ;;  %4275 = vmin.xlane.f32.xlu2 %v4274_v24 }
 0xb90   : > { %v4257_v18 = vshra.s32 %v4255_v12, 16 }
 0xb92   : > { %v4259_v2 = vcvt.s32.f32 %v4257_v18 }
 0xb94   : > { %v4226_v0 = vpop.xlane.xlu0 %4225  ;;  %4260 = vmin.xlane.f32.xlu1 %v4259_v2 }
 0xb95   : > { %vm4242_vm10 = vcmp.le.f32.partialorder %v7551_v28, %v4226_v0 }
 0xb96   : > { %v4250_v29 = vsel %vm4242_vm10, %v8284_v39, 16 }
 0xb97   : > { %v4300_v23 = vsel %vm1427_vm15, %v4250_v29, 2147483647 }
 0xb98   : > { %v4302_v20 = vshra.s32 %v4300_v23, 16  ;;  %v4301_v38 = vand.u32 65535, %v4300_v23 }
 0xb9a   : > { %v4304_v30 = vcvt.s32.f32 %v4302_v20  ;;  %v4303_v54 = vcvt.s32.f32 %v4301_v38 }
 0xb9c   : > { %4305 = vmin.xlane.f32.xlu1 %v4304_v30 }
 0xba2   : > { %v4229_v27 = vpop.xlane.xlu1 %4228 }
 0xba3   : > { %vm4243_vm2 = vcmp.le.f32.partialorder %v7613_v53, %v4229_v27 }
 0xba4   : > { %v4251_v7 = vsel %vm4243_vm2, %v8284_v39, 16 }
 0xba5   : > { %v4315_v16 = vsel %vm1427_vm15, %v4251_v7, 2147483647 }
 0xba6   : > { %v4317_v15 = vshra.s32 %v4315_v16, 16  ;;  %v4223_v5 = vpop.xlane.xlu2 %4222  ;;  %v4316_v0 = vand.u32 65535, %v4315_v16 }
 0xba7   : > { %vm4241_vm1 = vcmp.le.f32.partialorder %v7622_v3, %v4223_v5 }
 0xba8   : > { %v4249_v28 = vsel %vm4241_vm1, %v8284_v39, 16  ;;  %v4319_v14 = vcvt.s32.f32 %v4317_v15  ;;  %v4318_v20 = vcvt.s32.f32 %v4316_v0 }
 0xba9   : > { %v4285_v10 = vsel %vm1427_vm15, %v4249_v28, 2147483647 }
 0xbaa   : > { %v4287_v59 = vshra.s32 %v4285_v10, 16  ;;  %4320 = vmin.xlane.f32.xlu2 %v4319_v14  ;;  %v4286_v29 = vand.u32 65535, %v4285_v10 }
 0xbac   : > { %v4289_v6 = vcvt.s32.f32 %v4287_v59 }
 0xbae   : > { %4290 = vmin.xlane.f32.xlu0 %v4289_v6 }
 0xbba   : > { %v4232_v51 = vpop.xlane.xlu2 %4231 }
 0xbbb   : > { %vm4244_vm5 = vcmp.le.f32.partialorder %v7658_v47, %v4232_v51 }
 0xbbc   : > { %v4252_v53 = vsel %vm4244_vm5, %v8284_v39, 16 }
 0xbbd   : > { %v4330_v25 = vsel %vm1427_vm15, %v4252_v53, 2147483647 }
 0xbbe   : > { %v4332_v55 = vshra.s32 %v4330_v25, 16  ;;  %v4331_v27 = vand.u32 65535, %v4330_v25 }
 0xbc0   : > { %v4334_v49 = vcvt.s32.f32 %v4332_v55  ;;  %v4333_v7 = vcvt.s32.f32 %v4331_v27 }
 0xbc2   : > { %4335 = vmin.xlane.f32.xlu0 %v4334_v49 }
 0xbe2   : > { %v4238_v3 = vpop.xlane.xlu1 %4237 }
 0xbe3   : > { %vm4246_vm6 = vcmp.le.f32.partialorder %v4214_v40, %v4238_v3  ;;  %v4256_v40 = vand.u32 65535, %v4255_v12 }
 0xbe4   : > { %v4254_v52 = vsel %vm4246_vm6, %v8284_v39, 16 }
 0xbe5   : > { %v4360_v33 = vsel %vm1427_vm15, %v4254_v52, 2147483647  ;;  %v4258_v13 = vcvt.s32.f32 %v4256_v40 }
 0xbe6   : > { %v4362_v58 = vshra.s32 %v4360_v33, 16  ;;  %v4361_v15 = vand.u32 65535, %v4360_v33 }
 0xbe7   : > { %v4235_v26 = vpop.xlane.xlu0 %4234 }
 0xbe8   : > { %vm4245_vm8 = vcmp.le.f32.partialorder %v4213_v37, %v4235_v26  ;;  %v4364_v57 = vcvt.s32.f32 %v4362_v58  ;;  %v4363_v28 = vcvt.s32.f32 %v4361_v15 }
 0xbe9   : > { %v4253_v22 = vsel %vm4245_vm8, %v8284_v39, 16 }
 0xbea   : > { %v4345_v47 = vsel %vm1427_vm15, %v4253_v22, 2147483647  ;;  %4365 = vmin.xlane.f32.xlu2 %v4364_v57 }
 0xbeb   : > { %v4347_v9 = vshra.s32 %v4345_v47, 16 }
 0xbed   : > { %v4349_v48 = vcvt.s32.f32 %v4347_v9 }
 0xbef   : > { %4350 = vmin.xlane.f32.xlu1 %v4349_v48 }
 0xc02   : > { %v4276_v41 = vpop.xlane.xlu2 %4275 }
 0xc03   : > { %vm4277_vm9 = vcmp.eq.f32.partialorder %v4274_v24, %v4276_v41  ;;  %v4282_v53 = vcvt.f32.s32 %v4276_v41 }
 0xc04   : > { %v4278_v8 = vsel %vm4277_vm9, %v4273_v60, inf }
 0xc05   : > { %4279 = vmin.xlane.f32.xlu0 %v4278_v8  ;;  %v4283_v55 = vshll.u32 %v4282_v53, 16 }
 0xc07   : > { %v4261_v43 = vpop.xlane.xlu1 %4260 }
 0xc08   : > { %vm4262_vm11 = vcmp.eq.f32.partialorder %v4259_v2, %v4261_v43  ;;  %v4288_v2 = vcvt.s32.f32 %v4286_v29  ;;  %v4267_v3 = vcvt.f32.s32 %v4261_v43 }
 0xc09   : > { %v4263_v37 = vsel %vm4262_vm11, %v4258_v13, inf }
 0xc0a   : > { %4264 = vmin.xlane.f32.xlu2 %v4263_v37  ;;  %v4268_v58 = vshll.u32 %v4267_v3, 16 }
 0xc0f   : > { %v4306_v17 = vpop.xlane.xlu1 %4305 }
 0xc10   : > { %vm4307_vm12 = vcmp.eq.f32.partialorder %v4304_v30, %v4306_v17  ;;  %v4312_v9 = vcvt.f32.s32 %v4306_v17 }
 0xc11   : > { %v4308_v18 = vsel %vm4307_vm12, %v4303_v54, inf }
 0xc12   : > { %4309 = vmin.xlane.f32.xlu2 %v4308_v18  ;;  %v4313_v40 = vshll.u32 %v4312_v9, 16 }
 0xc1d   : > { %v7747_v21 = vpop.xlane.xlu2 %4320 }
 0xc1e   : > { %vm4322_vm13 = vcmp.eq.f32.partialorder %v4319_v14, %v7747_v21  ;;  %v4346_v14 = vand.u32 65535, %v4345_v47 }
 0xc1f   : > { %v4323_v24 = vsel %vm4322_vm13, %v4318_v20, inf }
 0xc20   : > { %4324 = vmin.xlane.f32.xlu0 %v4323_v24 }
 0xc21   : > { %v7750_v12 = vpop.xlane.xlu0 %4290 }
 0xc22   : > { %vm4292_vm14 = vcmp.eq.f32.partialorder %v4289_v6, %v7750_v12  ;;  %v4348_v6 = vcvt.s32.f32 %v4346_v14  ;;  %v4297_v0 = vcvt.f32.s32 %v7750_v12 }
 0xc23   : > { %v4293_v23 = vsel %vm4292_vm14, %v4288_v2, inf }
 0xc24   : > { %4294 = vmin.xlane.f32.xlu1 %v4293_v23 }
 0xc35   : > { %v7753_v30 = vpop.xlane.xlu0 %4335 }
 0xc36   : > { %vm4337_vm3 = vcmp.eq.f32.partialorder %v4334_v49, %v7753_v30 }
 0xc37   : > { %v4338_v16 = vsel %vm4337_vm3, %v4333_v7, inf }
 0xc38   : > { %4339 = vmin.xlane.f32.xlu1 %v4338_v16 }
 0xc5d   : > { %v7756_v5 = vpop.xlane.xlu2 %4365 }
 0xc5e   : > { %vm4367_vm4 = vcmp.eq.f32.partialorder %v4364_v57, %v7756_v5 }
 0xc5f   : > { %v4368_v10 = vsel %vm4367_vm4, %v4363_v28, inf  ;;  %v4342_v28 = vcvt.f32.s32 %v7753_v30  ;;  %v8389_v30 = vld [vmem:[#allocation16_spill] sm:$0xff] }
 0xc60   : > { %4369 = vmin.xlane.f32.xlu0 %v4368_v10 }
 0xc61   : > { %v4343_v14 = vshll.u32 %v4342_v28, 16 }
 0xc62   : > { %v7759_v59 = vpop.xlane.xlu1 %4350 }
 0xc63   : > { %vm4352_vm0 = vcmp.eq.f32.partialorder %v4349_v48, %v7759_v59 }
 0xc64   : > { %v4353_v51 = vsel %vm4352_vm0, %v4348_v6, inf }
 0xc65   : > { %4354 = vmin.xlane.f32.xlu2 %v4353_v51 }
 0xc78   : > { %v4280_v25 = vpop.xlane.xlu0 %4279 }
 0xc79   : > { %v4281_v49 = vcvt.f32.s32 %v4280_v25  ;;  %v8390_v25 = vld [vmem:[#allocation20_spill] sm:$0xff] }
 0xc7b   : > { %v4284_v52 = vadd.s32 %v4283_v55, %v4281_v49  ;;  %v5210_v55 = vpack.i.bf16 %v8390_v25, %v8389_v30  ;;  %v4372_v49 = vcvt.f32.s32 %v7756_v5 }
 0xc7d   : > { %vm4376_vm10 = vcmp.eq.s32.totalorder %v8284_v39, %v4284_v52  ;;  %v4265_v33 = vpop.xlane.xlu2 %4264 }
 0xc7e   : > { %v5069_v26 = vsel %vm4376_vm10, 1.0, %v5418_v63  ;;  %v4266_v57 = vcvt.f32.s32 %v4265_v33  ;;  %v4357_v33 = vcvt.f32.s32 %v7759_v59 }
 0xc7f   : > { %v7765_v22 = vadd.f32 %v5069_v26, %v7496_v44 }
 0xc80   : > { %v4269_v47 = vadd.s32 %v4268_v58, %v4266_v57  ;;  %v8391_v58 = vld [vmem:[#allocation15_spill] sm:$0xff]  ;;  %v4358_v9 = vshll.u32 %v4357_v33, 16 }
 0xc81   : > { %vm4408_vm2 = vcmp.gt.f32.partialorder %v7765_v22, 0.5 }
 0xc82   : > { %vm4375_vm1 = vcmp.eq.s32.totalorder %v8284_v39, %v4269_v47  ;;  %v7770_v48 = vsel %vm4408_vm2, 1e+30, %v7506_v32 }
 0xc83   : > { %v5068_v45 = vsel %vm4375_vm1, 1.0, %v5418_v63  ;;  %v4426_v41 = vsel %vm1427_vm15, %v7770_v48, inf }
 0xc84   : > { %4427 = vmin.xlane.f32.xlu1 %v4426_v41  ;;  %v7776_v60 = vadd.f32 %v5068_v45, %v7491_v61 }
 0xc85   : > { %v4310_v44 = vpop.xlane.xlu2 %4309 }
 0xc86   : > { %v4311_v8 = vcvt.f32.s32 %v4310_v44  ;;  %vm4407_vm5 = vcmp.gt.f32.partialorder %v7776_v60, 0.5 }
 0xc87   : > { %v7780_v43 = vsel %vm4407_vm5, 1e+30, %v7522_v46  ;;  %v4327_v46 = vcvt.f32.s32 %v7747_v21 }
 0xc88   : > { %v4314_v13 = vadd.s32 %v4313_v40, %v4311_v8  ;;  %v4423_v32 = vsel %vm1427_vm15, %v7780_v43, inf }
 0xc89   : > { %4424 = vmin.xlane.f32.xlu0 %v4423_v32  ;;  %v4328_v18 = vshll.u32 %v4327_v46, 16 }
 0xc8a   : > { %vm4378_vm6 = vcmp.eq.s32.totalorder %v8284_v39, %v4314_v13 }
 0xc8b   : > { %v5071_v37 = vsel %vm4378_vm6, 1.0, %v5418_v63 }
 0xc8c   : > { %v7787_v61 = vadd.f32 %v5071_v37, %v7536_v36  ;;  %v4298_v36 = vshll.u32 %v4297_v0, 16  ;;  %v8394_v37 = vld [vmem:[#allocation12_spill] sm:$0xff] }
 0xc8e   : > { %vm4410_vm8 = vcmp.gt.f32.partialorder %v7787_v61, 0.5 }
 0xc8f   : > { %v7791_v38 = vsel %vm4410_vm8, 1e+30, %v7548_v56 }
 0xc90   : > { %v4432_v17 = vsel %vm1427_vm15, %v7791_v38, inf }
 0xc91   : > { %4433 = vmin.xlane.f32.xlu0 %v4432_v17  ;;  %v8395_v17 = vld [vmem:[#allocation9_spill] sm:$0xff] }
 0xc93   : > { %v4325_v54 = vpop.xlane.xlu0 %4324 }
 0xc94   : > { %v4326_v29 = vcvt.f32.s32 %v4325_v54  ;;  %v8396_v54 = vld [vmem:[#allocation6_spill] sm:$0xff] }
 0xc96   : > { %v4329_v20 = vadd.s32 %v4328_v18, %v4326_v29  ;;  %v5205_v18 = vpack.i.bf16 %v8396_v54, %v8395_v17 }
 0xc97   : > { %v4295_v24 = vpop.xlane.xlu1 %4294 }
 0xc98   : > { %vm4379_vm9 = vcmp.eq.s32.totalorder %v8284_v39, %v4329_v20  ;;  %v4296_v2 = vcvt.f32.s32 %v4295_v24 }
 0xc99   : > { %v5072_v56 = vsel %vm4379_vm9, 1.0, %v5418_v63 }
 0xc9a   : > { %v4299_v23 = vadd.s32 %v4298_v36, %v4296_v2  ;;  %v7800_v21 = vadd.f32 %v5072_v56, %v7602_v50 }
 0xc9c   : > { %vm4377_vm11 = vcmp.eq.s32.totalorder %v8284_v39, %v4299_v23  ;;  %vm4411_vm12 = vcmp.gt.f32.partialorder %v7800_v21, 0.5 }
 0xc9d   : > { %v5070_v27 = vsel %vm4377_vm11, 1.0, %v5418_v63  ;;  %v7806_v12 = vsel %vm4411_vm12, 1e+30, %v7608_v42 }
 0xc9e   : > { %v4435_v7 = vsel %vm1427_vm15, %v7806_v12, inf  ;;  %v7811_v16 = vadd.f32 %v5070_v27, %v7595_v11 }
 0xc9f   : > { %4436 = vmin.xlane.f32.xlu1 %v4435_v7 }
 0xca0   : > { %vm4409_vm13 = vcmp.gt.f32.partialorder %v7811_v16, 0.5 }
 0xca1   : > { %v7815_v50 = vsel %vm4409_vm13, 1e+30, %v7619_v35 }
 0xca2   : > { %v4429_v15 = vsel %vm1427_vm15, %v7815_v50, inf }
 0xca3   : > { %4430 = vmin.xlane.f32.xlu2 %v4429_v15 }
 0xcab   : > { %v4340_v42 = vpop.xlane.xlu1 %4339 }
 0xcac   : > { %v4341_v10 = vcvt.f32.s32 %v4340_v42 }
 0xcae   : > { %v4344_v6 = vadd.s32 %v4343_v14, %v4341_v10 }
 0xcb0   : > { %vm4380_vm14 = vcmp.eq.s32.totalorder %v8284_v39, %v4344_v6 }
 0xcb1   : > { %v5073_v11 = vsel %vm4380_vm14, 1.0, %v5418_v63 }
 0xcb2   : > { %v7823_v51 = vadd.f32 %v5073_v11, %v7650_v1  ;;  %v4373_v1 = vshll.u32 %v4372_v49, 16 }
 0xcb4   : > { %vm4412_vm3 = vcmp.gt.f32.partialorder %v7823_v51, 0.5 }
 0xcb5   : > { %v7827_v35 = vsel %vm4412_vm3, 1e+30, %v7655_v62  ;;  %v8392_v62 = vld [vmem:[#allocation19_spill] sm:$0xff] }
 0xcb6   : > { %v4438_v53 = vsel %vm1427_vm15, %v7827_v35, inf  ;;  %v5215_v26 = vpack.i.bf16 %v8392_v62, %v8391_v58 }
 0xcb7   : > { %4439 = vmin.xlane.f32.xlu2 %v4438_v53 }
 0xccf   : > { %5211 = vrot.lane.b32.xlu2 %v5210_v55, %s5419_s9 }
 0xcd3   : > { %v4370_v3 = vpop.xlane.xlu0 %4369 }
 0xcd4   : > { %v4371_v52 = vcvt.f32.s32 %v4370_v3 }
 0xcd6   : > { %v4374_v57 = vadd.s32 %v4373_v1, %v4371_v52 }
 0xcd7   : > { %5216 = vrot.lane.b32.xlu2 %v5215_v26, %s5419_s9 }
 0xcd8   : > { %vm4382_vm4 = vcmp.eq.s32.totalorder %v8284_v39, %v4374_v57  ;;  %v4355_v47 = vpop.xlane.xlu2 %4354 }
 0xcd9   : > { %v5075_v45 = vsel %vm4382_vm4, 1.0, %v5418_v63  ;;  %v4356_v41 = vcvt.f32.s32 %v4355_v47 }
 0xcda   : > { %v7842_v5 = vadd.f32 %v5075_v45, %v7699_v31 }
 0xcdb   : > { %v4359_v44 = vadd.s32 %v4358_v9, %v4356_v41 }
 0xcdc   : > { %vm4414_vm0 = vcmp.gt.f32.partialorder %v7842_v5, 0.5 }
 0xcdd   : > { %vm4381_vm10 = vcmp.eq.s32.totalorder %v8284_v39, %v4359_v44  ;;  %v7847_v59 = vsel %vm4414_vm0, 1e+30, %v7705_v4  ;;  %v8393_v4 = vld [vmem:[#allocation14_spill] sm:$0xff] }
 0xcde   : > { %v5074_v40 = vsel %vm4381_vm10, 1.0, %v5418_v63  ;;  %v4444_v8 = vsel %vm1427_vm15, %v7847_v59, inf  ;;  %v5200_v46 = vpack.i.bf16 %v8394_v37, %v8393_v4 }
 0xcdf   : > { %4445 = vmin.xlane.f32.xlu1 %v4444_v8  ;;  %v7853_v13 = vadd.f32 %v5074_v40, %v7714_v19 }
 0xce1   : > { %vm4413_vm2 = vcmp.gt.f32.partialorder %v7853_v13, 0.5 }
 0xce2   : > { %v7857_v31 = vsel %vm4413_vm2, 1e+30, %v7721_v34 }
 0xce3   : > { %v4441_v32 = vsel %vm1427_vm15, %v7857_v31, inf }
 0xce4   : > { %4442 = vmin.xlane.f32.xlu0 %v4441_v32 }
 0xcf7   : > { %v4428_v0 = vpop.xlane.xlu1 %4427 }
 0xcf8   : > { %vm4448_vm1 = vcmp.le.f32.partialorder %v7770_v48, %v4428_v0  ;;  %5201 = vrot.lane.b32.xlu1 %v5200_v46, %s5419_s9  ;;  %5206 = vrot.lane.b32.xlu0 %v5205_v18, %s5419_s9  ;;  %v8397_v18 = vld [vmem:[#allocation18_spill] sm:$0xff]  ;;  %v8398_v0 = vld [vmem:[#allocation17_spill] sm:$0xff] }
 0xcf9   : > { %v4456_v19 = vsel %vm4448_vm1, %v8284_v39, 16 }
 0xcfa   : > { %v7870_v34 = vsel %vm1427_vm15, %v4456_v19, 2147483647  ;;  %v5220_v19 = vpack.i.bf16 %v8398_v0, %v8397_v18 }
 0xcfb   : > { %v4480_v29 = vshra.s32 %v7870_v34, 16  ;;  %v4479_v17 = vand.u32 65535, %v7870_v34 }
 0xcfc   : > { %v4425_v24 = vpop.xlane.xlu0 %4424 }
 0xcfd   : > { %v7873_v20 = vcvt.s32.f32 %v4480_v29  ;;  %vm4447_vm5 = vcmp.le.f32.partialorder %v7780_v43, %v4425_v24  ;;  %v4481_v24 = vcvt.s32.f32 %v4479_v17 }
 0xcfe   : > { %v4455_v56 = vsel %vm4447_vm5, %v8284_v39, 16 }
 0xcff   : > { %v7889_v43 = vsel %vm1427_vm15, %v4455_v56, 2147483647 }
 0xd00   : > { %4483 = vmin.xlane.f32.xlu2 %v7873_v20  ;;  %v4465_v42 = vshra.s32 %v7889_v43, 16  ;;  %v4464_v34 = vand.u32 65535, %v7889_v43 }
 0xd02   : > { %v7899_v10 = vcvt.s32.f32 %v4465_v42 }
 0xd04   : > { %v4434_v7 = vpop.xlane.xlu0 %4433 }
 0xd05   : > { %vm4450_vm9 = vcmp.le.f32.partialorder %v7791_v38, %v4434_v7 }
 0xd12   : > { %v4437_v36 = vpop.xlane.xlu1 %4436 }
 0xd13   : > { %vm4451_vm6 = vcmp.le.f32.partialorder %v7806_v12, %v4437_v36 }
 0xd14   : > { %v4459_v48 = vsel %vm4451_vm6, %v8284_v39, 16 }
 0xd15   : > { %v7880_v2 = vsel %vm1427_vm15, %v4459_v48, 2147483647 }
 0xd16   : > { %v4525_v23 = vshra.s32 %v7880_v2, 16  ;;  %v4431_v27 = vpop.xlane.xlu2 %4430 }
 0xd17   : > { %vm4449_vm8 = vcmp.le.f32.partialorder %v7815_v50, %v4431_v27  ;;  %v4458_v50 = vsel %vm4450_vm9, %v8284_v39, 16 }
 0xd18   : > { %v4457_v15 = vsel %vm4449_vm8, %v8284_v39, 16  ;;  %v7886_v28 = vcvt.s32.f32 %v4525_v23  ;;  %v7904_v11 = vsel %vm1427_vm15, %v4458_v50, 2147483647 }
 0xd19   : > { %v7892_v12 = vsel %vm1427_vm15, %v4457_v15, 2147483647  ;;  %v4510_v53 = vshra.s32 %v7904_v11, 16  ;;  %v4466_v15 = vcvt.s32.f32 %v4464_v34 }
 0xd1a   : > { %4528 = vmin.xlane.f32.xlu2 %v7886_v28  ;;  %v4495_v14 = vshra.s32 %v7892_v12, 16  ;;  %v4494_v48 = vand.u32 65535, %v7892_v12 }
 0xd1b   : > { %v7909_v38 = vcvt.s32.f32 %v4510_v53 }
 0xd1c   : > { %v7901_v6 = vcvt.s32.f32 %v4495_v14  ;;  %v4496_v27 = vcvt.s32.f32 %v4494_v48 }
 0xd22   : > { %4468 = vmin.xlane.f32.xlu1 %v7899_v10  ;;  %4498 = vmin.xlane.f32.xlu0 %v7901_v6 }
 0xd2a   : > { %4513 = vmin.xlane.f32.xlu1 %v7909_v38  ;;  %v4440_v30 = vpop.xlane.xlu2 %4439 }
 0xd2b   : > { %vm4452_vm11 = vcmp.le.f32.partialorder %v7827_v35, %v4440_v30 }
 0xd2c   : > { %v4460_v25 = vsel %vm4452_vm11, %v8284_v39, 16 }
 0xd2d   : > { %v7915_v55 = vsel %vm1427_vm15, %v4460_v25, 2147483647 }
 0xd2e   : > { %v4540_v49 = vshra.s32 %v7915_v55, 16  ;;  %v4539_v12 = vand.u32 65535, %v7915_v55  ;;  %v8399_v55 = vld [vmem:[#allocation7_spill] sm:$0xff] }
 0xd30   : > { %v7918_v3 = vcvt.s32.f32 %v4540_v49  ;;  %v4541_v30 = vcvt.s32.f32 %v4539_v12  ;;  %v8400_v49 = vld [vmem:[#allocation13_spill] sm:$0xff] }
 0xd32   : > { %4543 = vmin.xlane.f32.xlu0 %v7918_v3  ;;  %v5212_v1 = vpop.permute.xlu2 %5211 }
 0xd33   : > { %v5213_v52 = vunpack.i.l.bf16 %v5212_v1  ;;  %v5214_v46 = vunpack.i.h.bf16 %v5212_v1  ;;  %v5225_v1 = vpack.i.bf16 %v8400_v49, %v8399_v55 }
 0xd35   : > { %4696 = vmatpush.msrb.mxu3 %v5213_v52  ;;  %v8402_v52 = vld [vmem:[#allocation10_spill] sm:$0xff] }
 0xd3a   : > { %v5217_v33 = vpop.permute.xlu2 %5216 }
 0xd3b   : > { %v5218_v58 = vunpack.i.l.bf16 %v5217_v33  ;;  %v5219_v54 = vunpack.i.h.bf16 %v5217_v33 }
 0xd3d   : > { %4697 = vmatpush.msrb.mxu3 %v5218_v58 }
 0xd52   : > { %v4446_v62 = vpop.xlane.xlu1 %4445 }
 0xd53   : > { %vm4454_vm12 = vcmp.le.f32.partialorder %v7847_v59, %v4446_v62 }
 0xd54   : > { %v4462_v35 = vsel %vm4454_vm12, %v8284_v39, 16 }
 0xd55   : > { %v7924_v26 = vsel %vm1427_vm15, %v4462_v35, 2147483647 }
 0xd56   : > { %v4570_v57 = vshra.s32 %v7924_v26, 16  ;;  %v4569_v58 = vand.u32 65535, %v7924_v26 }
 0xd57   : > { %v4443_v47 = vpop.xlane.xlu0 %4442 }
 0xd58   : > { %vm4453_vm13 = vcmp.le.f32.partialorder %v7857_v31, %v4443_v47  ;;  %v7928_v9 = vcvt.s32.f32 %v4570_v57 }
 0xd59   : > { %v4461_v45 = vsel %vm4453_vm13, %v8284_v39, 16 }
 0xd5a   : > { %v7932_v41 = vsel %vm1427_vm15, %v4461_v45, 2147483647  ;;  %4573 = vmin.xlane.f32.xlu2 %v7928_v9 }
 0xd5b   : > { %v4555_v44 = vshra.s32 %v7932_v41, 16  ;;  %v4554_v62 = vand.u32 65535, %v7932_v41  ;;  %v8404_v41 = vld [vmem:[#allocation11_spill] sm:$0xff] }
 0xd5d   : > { %v7936_v59 = vcvt.s32.f32 %v4555_v44  ;;  %v4556_v47 = vcvt.s32.f32 %v4554_v62 }
 0xd5f   : > { %4558 = vmin.xlane.f32.xlu1 %v7936_v59 }
 0xd6a   : > { %v5202_v40 = vpop.permute.xlu1 %5201  ;;  %v5207_v8 = vpop.permute.xlu0 %5206 }
 0xd6b   : > { %v5203_v32 = vunpack.i.l.bf16 %v5202_v40  ;;  %v5208_v4 = vunpack.i.l.bf16 %v5207_v8  ;;  %v5204_v31 = vunpack.i.h.bf16 %v5202_v40  ;;  %v5209_v37 = vunpack.i.h.bf16 %v5207_v8  ;;  %v8403_v8 = vld [vmem:[#allocation21_spill] sm:$0xff] }
 0xd6d   : > { %4638 = vmatpush.msra.mxu1 %v5208_v4  ;;  %4667 = vmatpush.msra.mxu2 %v5203_v32  ;;  %v5230_v32 = vpack.i.bf16 %v8404_v41, %v8403_v8 }
 0xd6f   : > { %4639 = vmatpush.msra.mxu1 %v5209_v37  ;;  %4668 = vmatpush.msra.mxu2 %v5204_v31 }
 0xd71   : > { %4754 = vmatpush.msrb.mxu2 %v5214_v46 }
 0xd72   : > { %5221 = vrot.lane.b32.xlu2 %v5220_v19, %s5419_s9 }
 0xd73   : > { %4755 = vmatpush.msrb.mxu2 %v5219_v54  ;;  %v4484_v29 = vpop.xlane.xlu2 %4483 }
 0xd74   : > { %vm4485_vm15 = vcmp.eq.f32.partialorder %v7873_v20, %v4484_v29  ;;  %v4524_v20 = vand.u32 65535, %v7880_v2 }
 0xd75   : > { %v4486_v36 = vsel %vm4485_vm15, %v4481_v24, inf }
 0xd76   : > { %4487 = vmin.xlane.f32.xlu0 %v4486_v36  ;;  %v4526_v43 = vcvt.s32.f32 %v4524_v20 }
 0xd8d   : > { %v7952_v14 = vpop.xlane.xlu2 %4528 }
 0xd8e   : > { %vm4530_vm4 = vcmp.eq.f32.partialorder %v7886_v28, %v7952_v14 }
 0xd8f   : > { %v4531_v50 = vsel %vm4530_vm4, %v4526_v43, inf }
 0xd95   : > { %v7946_v56 = vpop.xlane.xlu1 %4468  ;;  %v4499_v23 = vpop.xlane.xlu0 %4498 }
 0xd96   : > { %vm4500_vm14 = vcmp.eq.f32.partialorder %v7901_v6, %v4499_v23  ;;  %vm4470_vm3 = vcmp.eq.f32.partialorder %v7899_v10, %v7946_v56  ;;  %v4509_v6 = vand.u32 65535, %v7904_v11  ;;  %v8401_v11 = vld [vmem:[#allocation8_spill] sm:$0xff]  ;;  %v4505_v54 = vcvt.f32.s32 %v4499_v23 }
 0xd97   : > { %v4501_v7 = vsel %vm4500_vm14, %v4496_v27, inf  ;;  %v4471_v42 = vsel %vm4470_vm3, %v4466_v15, inf  ;;  %v5235_v33 = vpack.i.bf16 %v8402_v52, %v8401_v11  ;;  %v4475_v18 = vcvt.f32.s32 %v7946_v56 }
 0xd98   : > { %4502 = vmin.xlane.f32.xlu0 %v4501_v7  ;;  %v4511_v28 = vcvt.s32.f32 %v4509_v6  ;;  %v4506_v19 = vshll.u32 %v4505_v54, 16  ;;  %vm4855_vm14 = vcmask 257024  }
 0xd99   : > { %v4476_v48 = vshll.u32 %v4475_v18, 16 }
 0xd9b   : > { %4472 = vmin.xlane.f32.xlu2 %v4471_v42 }
 0xd9d   : > { %v7958_v10 = vpop.xlane.xlu1 %4513 }
 0xd9e   : > { %vm4515_vm10 = vcmp.eq.f32.partialorder %v7909_v38, %v7958_v10  ;;  %v4571_v38 = vcvt.s32.f32 %v4569_v58 }
 0xd9f   : > { %v4516_v25 = vsel %vm4515_vm10, %v4511_v28, inf }
 0xda3   : > { %4532 = vmin.xlane.f32.xlu2 %v4531_v50  ;;  %v4520_v50 = vcvt.f32.s32 %v7958_v10 }
 0xda5   : > { %v7960_v53 = vpop.xlane.xlu0 %4543 }
 0xda6   : > { %vm4545_vm0 = vcmp.eq.f32.partialorder %v7918_v3, %v7960_v53 }
 0xda7   : > { %v4546_v2 = vsel %vm4545_vm0, %v4541_v30, inf  ;;  %v4521_v30 = vshll.u32 %v4520_v50, 16 }
 0xda8   : > { %4547 = vmin.xlane.f32.xlu1 %v4546_v2 }
 0xdab   : > { %4517 = vmin.xlane.f32.xlu2 %v4516_v25 }
 0xdc1   : > { %5226 = vrot.lane.b32.xlu1 %v5225_v1, %s5419_s9 }
 0xdc9   : > { %5236 = vrot.lane.b32.xlu1 %v5235_v33, %s5419_s9 }
 0xdcd   : > { %v7973_v3 = vpop.xlane.xlu2 %4573 }
 0xdce   : > { %vm4575_vm2 = vcmp.eq.f32.partialorder %v7928_v9, %v7973_v3  ;;  %v4490_v9 = vcvt.f32.s32 %v4484_v29 }
 0xdcf   : > { %v4576_v35 = vsel %vm4575_vm2, %v4571_v38, inf  ;;  %v4550_v38 = vcvt.f32.s32 %v7960_v53 }
 0xdd0   : > { %4577 = vmin.xlane.f32.xlu0 %v4576_v35  ;;  %v4491_v31 = vshll.u32 %v4490_v9, 16 }
 0xdd2   : > { %v7978_v57 = vpop.xlane.xlu1 %4558 }
 0xdd3   : > { %vm4560_vm1 = vcmp.eq.f32.partialorder %v7936_v59, %v7978_v57  ;;  %v4565_v33 = vcvt.f32.s32 %v7978_v57 }
 0xdd4   : > { %v4561_v45 = vsel %vm4560_vm1, %v4556_v47, inf }
 0xdd5   : > { %4562 = vmin.xlane.f32.xlu2 %v4561_v45  ;;  %v5222_v26 = vpop.permute.xlu2 %5221  ;;  %v4566_v35 = vshll.u32 %v4565_v33, 16 }
 0xdd6   : > { %v5223_v44 = vunpack.i.l.bf16 %v5222_v26  ;;  %v5224_v40 = vunpack.i.h.bf16 %v5222_v26 }
 0xdd8   : > { %4725 = vmatpush.msrb.mxu1 %v5223_v44 }
 0xdda   : > { %4726 = vmatpush.msrb.mxu1 %v5224_v40  ;;  %v4551_v40 = vshll.u32 %v4550_v38, 16 }
 0xde4   : > { %5231 = vrot.lane.b32.xlu0 %v5230_v32, %s5419_s9 }
 0xde9   : > { %v4488_v4 = vpop.xlane.xlu0 %4487 }
 0xdea   : > { %v4489_v37 = vcvt.f32.s32 %v4488_v4 }
 0xdec   : > { %v4492_v46 = vadd.s32 %v4491_v31, %v4489_v37 }
 0xdee   : > { %vm4584_vm5 = vcmp.eq.s32.totalorder %v8284_v39, %v4492_v46 }
 0xdef   : > { %v5077_v59 = vsel %vm4584_vm5, 1.0, %v5418_v63 }
 0xdf0   : > { %v4608_v17 = vadd.f32 %v5077_v59, %v7765_v22  ;;  %v4535_v22 = vcvt.f32.s32 %v7952_v14 }
 0xdf2   : > { %5085 = vmatmul.msk.f32.vlgmr.msra.gmra.mxu2 %vm1620_vm7, %v4608_v17  ;;  %v4536_v20 = vshll.u32 %v4535_v22, 16 }
 0xe0b   : > { %v4503_v0 = vpop.xlane.xlu0 %4502 }
 0xe0c   : > { %v4504_v24 = vcvt.f32.s32 %v4503_v0 }
 0xe0e   : > { %v4507_v36 = vadd.s32 %v4506_v19, %v4504_v24  ;;  %v4473_v29 = vpop.xlane.xlu2 %4472 }
 0xe0f   : > { %v4474_v34 = vcvt.f32.s32 %v4473_v29 }
 0xe10   : > { %vm4585_vm6 = vcmp.eq.s32.totalorder %v8284_v39, %v4507_v36 }
 0xe11   : > { %v5078_v27 = vsel %vm4585_vm6, 1.0, %v5418_v63  ;;  %v4477_v7 = vadd.s32 %v4476_v48, %v4474_v34 }
 0xe12   : > { %v4609_v15 = vadd.f32 %v5078_v27, %v7811_v16 }
 0xe13   : > { %vm4583_vm8 = vcmp.eq.s32.totalorder %v8284_v39, %v4477_v7 }
 0xe14   : > { %v5076_v56 = vsel %vm4583_vm8, 1.0, %v5418_v63  ;;  %5086 = vmatmul.msk.f32.vlgmr.msrb.gmra.mxu3 %vm1620_vm7, %v4609_v15 }
 0xe15   : > { %v4607_v23 = vadd.f32 %v5076_v56, %v7776_v60 }
 0xe16   : > { %v4533_v42 = vpop.xlane.xlu2 %4532 }
 0xe17   : > { %v4534_v43 = vcvt.f32.s32 %v4533_v42  ;;  %5084 = vmatmul.msk.f32.vlgmr.msra.gmra.mxu1 %vm1620_vm7, %v4607_v23 }
 0xe19   : > { %v4537_v12 = vadd.s32 %v4536_v20, %v4534_v43 }
 0xe1b   : > { %vm4587_vm9 = vcmp.eq.s32.totalorder %v8284_v39, %v4537_v12  ;;  %v4548_v10 = vpop.xlane.xlu1 %4547 }
 0xe1c   : > { %v5080_v16 = vsel %vm4587_vm9, 1.0, %v5418_v63  ;;  %v4549_v45 = vcvt.f32.s32 %v4548_v10 }
 0xe1d   : > { %v4611_v14 = vadd.f32 %v5080_v16, %v7800_v21 }
 0xe1e   : > { %v4518_v6 = vpop.xlane.xlu2 %4517  ;;  %v4552_v41 = vadd.s32 %v4551_v40, %v4549_v45 }
 0xe1f   : > { %v4519_v2 = vcvt.f32.s32 %v4518_v6  ;;  %5088 = vmatmul.msk.f32.vlgmr.msrb.gmra.mxu2 %vm1620_vm7, %v4611_v14 }
 0xe20   : > { %vm4588_vm13 = vcmp.eq.s32.totalorder %v8284_v39, %v4552_v41 }
 0xe21   : > { %v4522_v60 = vadd.s32 %v4521_v30, %v4519_v2  ;;  %v5081_v53 = vsel %vm4588_vm13, 1.0, %v5418_v63 }
 0xe22   : > { %v4612_v46 = vadd.f32 %v5081_v53, %v7823_v51 }
 0xe23   : > { %vm4586_vm11 = vcmp.eq.s32.totalorder %v8284_v39, %v4522_v60 }
 0xe24   : > { %v5079_v28 = vsel %vm4586_vm11, 1.0, %v5418_v63 }
 0xe25   : > { %v4610_v25 = vadd.f32 %v5079_v28, %v7787_v61  ;;  %v4580_v61 = vcvt.f32.s32 %v7973_v3 }
 0xe27   : > { %5087 = vmatmul.msk.f32.vlgmr.msrb.gmra.mxu1 %vm1620_vm7, %v4610_v25  ;;  %v4581_v8 = vshll.u32 %v4580_v61, 16 }
 0xe33   : > { %v5227_v55 = vpop.permute.xlu1 %5226 }
 0xe34   : > { %v5229_v49 = vunpack.i.h.bf16 %v5227_v55  ;;  %v5228_v1 = vunpack.i.l.bf16 %v5227_v55 }
 0xe36   : > { %4783 = vmatpush.msra.mxu3 %v5228_v1  ;;  %4841 = vmatpush.msra.mxu2 %v5229_v49 }
 0xe3b   : > { %v5237_v21 = vpop.permute.xlu1 %5236 }
 0xe3c   : > { %v5238_v11 = vunpack.i.l.bf16 %v5237_v21  ;;  %v5239_v52 = vunpack.i.h.bf16 %v5237_v21 }
 0xe3e   : > { %4812 = vmatpush.msra.mxu1 %v5238_v11 }
 0xe40   : > { %4813 = vmatpush.msra.mxu1 %v5239_v52 }
 0xe43   : > { %v4578_v58 = vpop.xlane.xlu0 %4577 }
 0xe44   : > { %v4579_v26 = vcvt.f32.s32 %v4578_v58 }
 0xe46   : > { %v4582_v32 = vadd.s32 %v4581_v8, %v4579_v26 }
 0xe48   : > { %v4563_v62 = vpop.xlane.xlu2 %4562  ;;  %vm4590_vm15 = vcmp.eq.s32.totalorder %v8284_v39, %v4582_v32 }
 0xe49   : > { %v4564_v47 = vcvt.f32.s32 %v4563_v62  ;;  %v5083_v3 = vsel %vm4590_vm15, 1.0, %v5418_v63 }
 0xe4a   : > { %v4614_v59 = vadd.f32 %v5083_v3, %v7842_v5 }
 0xe4b   : > { %v4567_v44 = vadd.s32 %v4566_v35, %v4564_v47 }
 0xe4d   : > { %vm4589_vm12 = vcmp.eq.s32.totalorder %v8284_v39, %v4567_v44 }
 0xe4e   : > { %v5082_v9 = vsel %vm4589_vm12, 1.0, %v5418_v63 }
 0xe4f   : > { %v4613_v57 = vadd.f32 %v5082_v9, %v7853_v13 }
 0xe51   : > { %5090 = vmatmul.msk.f32.vlgmr.msra.gmra.mxu1 %vm1620_vm7, %v4613_v57 }
 0xe56   : > { %v5232_v4 = vpop.permute.xlu0 %5231 }
 0xe57   : > { %v5234_v31 = vunpack.i.h.bf16 %v5232_v4  ;;  %v5233_v37 = vunpack.i.l.bf16 %v5232_v4 }
 0xe59   : > { %4784 = vmatpush.msra.mxu3 %v5233_v37  ;;  %4842 = vmatpush.msra.mxu2 %v5234_v31 }
 0xe5a   : > { %5089 = vmatmul.msk.f32.vlgmr.msra.gmra.mxu3 %vm1620_vm7, %v4612_v46  ;;  %5091 = vmatmul.msk.f32.vlgmr.msra.gmra.mxu2 %vm1620_vm7, %v4614_v59 }
 0xe75   : > { %v4670_v39 = vpop.f32.mrf.mxu2 }
 0xe76   : > { %v4848_v13 = vmul.f32 0.33333334, %v4670_v39 }
 0xe78   : > { %4857 = vst.msk [vmem:[%s239_s10 + $0x4] sm:$0xf] %vm4855_vm14, %v4848_v13 }
 0xe94   : > { %v4641_v63 = vpop.f32.mrf.mxu1 }
 0xe95   : > { %v4847_v51 = vmul.f32 0.33333334, %v4641_v63 }
 0xe97   : > { %4856 = vst.msk [vmem:[%s239_s10] sm:$0xf] %vm4855_vm14, %v4847_v51  ;;  %v4699_v5 = vpop.f32.mrf.mxu3 }
 0xe98   : > { %v4849_v17 = vmul.f32 0.33333334, %v4699_v5 }
 0xe9a   : > { %4858 = vst.msk [vmem:[%s239_s10 + $0x8] sm:$0xf] %vm4855_vm14, %v4849_v17 }
 0xea2   : > { %v4757_v54 = vpop.f32.mrf.mxu2 }
 0xea3   : > { %v4851_v18 = vmul.f32 0.33333334, %v4757_v54 }
 0xea4   : > { %v4728_v0 = vpop.f32.mrf.mxu1 }
 0xea5   : > { %4860 = vst.msk [vmem:[%s239_s10 + $0x10] sm:$0xf] %vm4855_vm14, %v4851_v18  ;;  %v4850_v19 = vmul.f32 0.33333334, %v4728_v0 }
 0xea7   : > { %4859 = vst.msk [vmem:[%s239_s10 + $0xc] sm:$0xf] %vm4855_vm14, %v4850_v19 }
 0xece   : > { %v4815_v24 = vpop.f32.mrf.mxu1 }
 0xecf   : > { %v4853_v36 = vmul.f32 0.33333334, %v4815_v24 }
 0xed1   : > { %4862 = vst.msk [vmem:[%s239_s10 + $0x18] sm:$0xf] %vm4855_vm14, %v4853_v36 }
 0xedd   : > { %v4786_v29 = vpop.f32.mrf.mxu3  ;;  %v4844_v48 = vpop.f32.mrf.mxu2 }
 0xede   : > { %v4852_v34 = vmul.f32 0.33333334, %v4786_v29  ;;  %v4854_v27 = vmul.f32 0.33333334, %v4844_v48 }
 0xee0   : > { %4861 = vst.msk [vmem:[%s239_s10 + $0x14] sm:$0xf] %vm4855_vm14, %v4852_v34 }
 0xee1   : > { %4863 = vst.msk [vmem:[%s239_s10 + $0x1c] sm:$0xf] %vm4855_vm14, %v4854_v27 }
 0xee2   : > { %5377 = shalt.err (!%p5374_p3)
}
 0xee3   : > { %s5420_s26 = smov 64  }
 0xee4   : > { %5108 = dma.vmem_to_hbm [thread:$0]  (%p5489_p5), %s4892_s15, 512, %s4894_s16, %s4874_s17, %s5420_s26, %s5420_s26, %s5417_s23  }
 0xee5 PF: > { %p5114_p4 = scmp.ge.s32.totalorder %s5412_s21, 2  ;;  %s4912_s10 = sand.u32 1, %s5400_s18  }
 0xee6   : > { %s4913_s11 = scalar_lea.sflag [#allocation3], %s4912_s10 }
 0xee7   : > { %p5111_p7 = pnand %p5114_p4, %p5493_p6 }
 0xee9   : > { %p5112_p8 = pneg %p5111_p7 }
 0xeeb   : > { %5395 = dma.done.wait (%p5112_p8), %s4913_s11, 512  }
 0xeec   : > { %5397 = vsyncadd (%p5112_p8), %s4913_s11, 4294966784  ;;  %p16_p9 = scmp.ge.s32.totalorder %s5476_s24, 4   ;;  %s8405_s18 = smov %s5404_s19 }
 0xeed   : > { %s8406_s19 = smov %s5408_s20  ;;  %s8407_s20 = smov %s5487_s27 }
 0xeee   : > { %s8408_s21 = smov %s5476_s24  ;;  %18 = sbr.rel (!%p16_p9) target bundleno = 3 (0x3), region = 86 }
 0xef3   :  { %4927 = vsyncpa [#allocation3], 1 }
 0xef4   :  { %4929 = vsyncpa [#allocation3 + $0x1], 1 }

</bundles_post_ra>
